<compile_context>
chip_gen: v7x
topology: tpu7x:2x2x1
jax: 0.10.0
libtpu: 0.0.40
codegen_flags: <defaults>
</compile_context>

<pallas_src>
import functools
import numpy as np
import jax
import jax.numpy as jnp
from jax.experimental import pallas as pl
from jax.experimental.pallas import tpu as pltpu

LANES = 128


def _round_up(v, m=LANES):
    return ((v + m - 1) // m) * m


def _pad2(a, rows, cols):
    return jnp.pad(a, ((0, rows - a.shape[0]), (0, cols - a.shape[1])))


# ---------------------------------------------------------------------------
# Fused kernel
# ---------------------------------------------------------------------------
def pna_fused_kernel(
    # SMEM
    edge_dst_ref,                              # (E,) int32 : destination node per edge
    # data (VMEM, whole arrays)
    x0_ref,                                    # (N, Din_p) f32  raw node features (padded)
    ef_ref,                                    # (E, De_p)  f32  edge features (padded)
    sin_ref, sout_ref,                         # (E, N)     bf16 one-hot gather matrices
    sout_t_ref,                                # (N, E)     bf16 transposed scatter matrix
    gsel_ref,                                  # (G, N)     bf16 graph membership
    ew_ref,                                    # (E, 1)     f32  edge weights
    invdeg_ref, amp_ref, att_ref, hedge_ref,   # (N, 1)     f32  precomputed degree scalers
    # weights (zero-padded to 128 lanes, per-layer stacked on axis 0)
    wnode_ref, bnode_ref,                      # (Din_p, F), (1, F)
    wenc_ref, benc_ref,                        # (L, De_p, F), (L, 1, F)
    wpre_in_ref, wpre_out_ref, wpre_e_ref, bpre_ref,   # (L, F, F) x3, (L, 1, F)
    wpost_ref, bpost_ref,                      # (L*13, F, F), (L, 1, F)
    wupd_ref, bupd_ref,                        # (L, F, F), (L, 1, F)
    # outputs
    nodefeat_ref,                              # (N, F) f32
    graphfeat_ref,                             # (G, F) f32
    # scratch
    msg_ref, mx_ref, mn_ref,                   # (E, F), (N, F), (N, F) f32
    *, num_layers, num_edges,
):
    f32 = jnp.float32

    def mm(a, b):
        return jnp.dot(a, b, preferred_element_type=f32)

    # ---- node encoder (no activation, matching the reference) -------------
    x = mm(x0_ref[...], wnode_ref[...]) + bnode_ref[...]

    # ---- layer-invariant operands, hoisted out of the layer loop ----------
    s_in = sin_ref[...].astype(f32)            # (E, N)
    s_out = sout_ref[...].astype(f32)          # (E, N)
    s_out_t = sout_t_ref[...].astype(f32)      # (N, E)
    ef = ef_ref[...]
    ew = ew_ref[...]
    inv_deg = invdeg_ref[...]
    amp = amp_ref[...]
    att = att_ref[...]
    has_edge = hedge_ref[...] > 0.0

    for l in range(num_layers):
        # ---- message: pre_mlp(cat[x_in, x_out, e_attr]) as split matmuls ---
        # (S @ X) @ W == S @ (X @ W): contract the cheap node dimension first.
        e_attr = mm(ef, wenc_ref[l]) + benc_ref[l]
        msg = (
            mm(s_in, mm(x, wpre_in_ref[l]))
            + mm(s_out, mm(x, wpre_out_ref[l]))
            + mm(e_attr, wpre_e_ref[l])
            + bpre_ref[l]
        )
        msg = msg * ew                          # (E, F) * edge_weight
        msg_ref[...] = msg

        # ---- mean / std: scatter-sum on the MXU (pre-transposed S, no .T) --
        sum_agg = mm(s_out_t, msg)
        sum_sq = mm(s_out_t, msg * msg)
        mean_agg = sum_agg * inv_deg
        mean_sq = sum_sq * inv_deg
        var_agg = mean_sq - mean_agg * mean_agg
        std_agg = jnp.sqrt(jnp.maximum(var_agg, 0.0) + 1e-5)

        # ---- min / max: running VMEM accumulators (no (E, N, F) temporary) -
        mx_ref[...] = jnp.full(mx_ref.shape, -jnp.inf, dtype=f32)
        mn_ref[...] = jnp.full(mn_ref.shape, jnp.inf, dtype=f32)

        @pl.loop(0, num_edges)
        def _(e):
            j = edge_dst_ref[e]
            m = msg_ref[pl.ds(e, 1), :]
            mx_ref[pl.ds(j, 1), :] = jnp.maximum(mx_ref[pl.ds(j, 1), :], m)
            mn_ref[pl.ds(j, 1), :] = jnp.minimum(mn_ref[pl.ds(j, 1), :], m)

        max_agg = jnp.where(has_edge, mx_ref[...], 0.0)   # empty segments -> 0
        min_agg = jnp.where(has_edge, mn_ref[...], 0.0)

        # ---- combine: post_mlp(cat[x, scaled aggregates]) as split matmuls -
        # w_post row-block order matches the reference concat:
        #   [x | identity(mean,min,max,std) | amp(...) | att(...)]
        base = l * 13

        def post_block(off):
            return (mm(mean_agg, wpost_ref[base + off + 0])
                    + mm(min_agg, wpost_ref[base + off + 1])
                    + mm(max_agg, wpost_ref[base + off + 2])
                    + mm(std_agg, wpost_ref[base + off + 3]))

        out = (mm(x, wpost_ref[base])
               + post_block(1)                  # identity scaler
               + amp * post_block(5)            # amplification
               + att * post_block(9)            # attenuation
               + bpost_ref[l])
        out = mm(out, wupd_ref[l]) + bupd_ref[l]
        x = jnp.maximum(out, 0.0)               # PNA.forward activation (relu)

    nodefeat_ref[...] = x
    graphfeat_ref[...] = mm(gsel_ref[...].astype(f32), x)   # SumReadout


# ---------------------------------------------------------------------------
# Wrapper
# ---------------------------------------------------------------------------
def pna_forward(packed, node_input, edge_feat, edge_dst, s_in, s_out,
                edge_weight, graph_sel, avg_log, hidden_dim):
    N = node_input.shape[0]
    E = edge_feat.shape[0]
    G = graph_sel.shape[0]
    L = packed["num_layers"]
    Din_p, F_p = packed["w_node"].shape
    De_p = packed["w_enc"].shape[1]

    # lane-pad activations to 128
    x0_p = _pad2(node_input, N, Din_p)
    ef_p = _pad2(edge_feat, E, De_p)

    # graph-structure scalers, computed once per forward (layer-invariant)
    deg = jnp.sum(s_out, axis=0).reshape(N, 1).astype(jnp.float32)
    inv_deg = 1.0 / jnp.maximum(deg, 1.0)
    log_deg = jnp.log(deg + 1.0)
    amp = log_deg / avg_log
    att = jnp.where(deg > 0.0, avg_log / jnp.where(deg > 0.0, log_deg, 1.0), 1.0)
    has_edge = (deg > 0.0).astype(jnp.float32)

    # 0/1 selection matrices are exact in bf16 (and bf16 maps to every MXU,
    # including v7x which has no int path): halves HBM bytes of the (E, N) ops.
    s_in_b = s_in.astype(jnp.bfloat16)
    s_out_b = s_out.astype(jnp.bfloat16)
    s_out_t_b = s_out.T.astype(jnp.bfloat16)
    gsel_b = graph_sel.astype(jnp.bfloat16)

    args = (
        edge_dst.astype(jnp.int32),
        x0_p, ef_p, s_in_b, s_out_b, s_out_t_b, gsel_b, edge_weight,
        inv_deg, amp, att, has_edge,
        packed["w_node"], packed["b_node"],
        packed["w_enc"], packed["b_enc"],
        packed["w_pre_in"], packed["w_pre_out"], packed["w_pre_e"], packed["b_pre"],
        packed["w_post"], packed["b_post"],
        packed["w_upd"], packed["b_upd"],
    )

    smem = pl.BlockSpec(memory_space=pltpu.MemorySpace.SMEM)
    vmem = pl.BlockSpec(memory_space=pltpu.MemorySpace.VMEM)

    node_p, graph_p = pl.pallas_call(
        functools.partial(pna_fused_kernel, num_layers=L, num_edges=E),
        out_shape=(jax.ShapeDtypeStruct((N, F_p), jnp.float32),
                   jax.ShapeDtypeStruct((G, F_p), jnp.float32)),
        in_specs=[smem] + [vmem] * (len(args) - 1),
        out_specs=(vmem, vmem),
        scratch_shapes=[pltpu.VMEM((E, F_p), jnp.float32),
                        pltpu.VMEM((N, F_p), jnp.float32),
                        pltpu.VMEM((N, F_p), jnp.float32)],
    )(*args)

    return {"graph_feature": graph_p[:, :hidden_dim],
            "node_feature": node_p[:, :hidden_dim]}


# ---------------------------------------------------------------------------
# Parameter init (deterministic, synthetic) — pre-split / pre-padded layout
# ---------------------------------------------------------------------------
def _lin_init(key, d_in, d_out):
    k1, k2 = jax.random.split(key)
    bound = 1.0 / np.sqrt(d_in)
    w = jax.random.uniform(k1, (d_in, d_out), jnp.float32, -bound, bound)
    b = jax.random.uniform(k2, (1, d_out), jnp.float32, -bound, bound)
    return w, b


def init_packed_params(key, input_dim, hidden_dim, edge_dim, num_layer,
                       num_aggr=4, num_scaler=3):
    F = hidden_dim
    F_p, Din_p, De_p = _round_up(F), _round_up(input_dim), _round_up(edge_dim)
    n_blk = num_aggr * num_scaler + 1           # 13 row-blocks of w_post

    keys = jax.random.split(key, 1 + num_layer)
    w_node, b_node = _lin_init(keys[0], input_dim, F)

    wenc, benc = [], []
    wpre_in, wpre_out, wpre_e, bpre = [], [], [], []
    wpost, bpost, wupd, bupd = [], [], [], []
    for i in range(num_layer):
        lk = jax.random.split(keys[1 + i], 4)
        w_e, b_e = _lin_init(lk[0], edge_dim, F)
        w_pre, b_pre = _lin_init(lk[1], 3 * F, F)
        w_post, b_post = _lin_init(lk[2], n_blk * F, F)
        w_upd, b_upd = _lin_init(lk[3], F, F)

        wenc.append(_pad2(w_e, De_p, F_p)); benc.append(_pad2(b_e, 1, F_p))
        wpre_in.append(_pad2(w_pre[0:F], F_p, F_p))
        wpre_out.append(_pad2(w_pre[F:2 * F], F_p, F_p))
        wpre_e.append(_pad2(w_pre[2 * F:3 * F], F_p, F_p))
        bpre.append(_pad2(b_pre, 1, F_p))
        for j in range(n_blk):                   # [x | id*4 | amp*4 | att*4]
            wpost.append(_pad2(w_post[j * F:(j + 1) * F], F_p, F_p))
        bpost.append(_pad2(b_post, 1, F_p))
        wupd.append(_pad2(w_upd, F_p, F_p)); bupd.append(_pad2(b_upd, 1, F_p))

    return {
        "num_layers": num_layer,
        "w_node": _pad2(w_node, Din_p, F_p), "b_node": _pad2(b_node, 1, F_p),
        "w_enc": jnp.stack(wenc), "b_enc": jnp.stack(benc),
        "w_pre_in": jnp.stack(wpre_in), "w_pre_out": jnp.stack(wpre_out),
        "w_pre_e": jnp.stack(wpre_e), "b_pre": jnp.stack(bpre),
        "w_post": jnp.stack(wpost), "b_post": jnp.stack(bpost),
        "w_upd": jnp.stack(wupd), "b_upd": jnp.stack(bupd),
    }


# ---------------------------------------------------------------------------
# Main
# ---------------------------------------------------------------------------
if __name__ == "__main__":
    key = jax.random.PRNGKey(0)

    input_dim, hidden_dim, edge_dim, num_layer = 16, 32, 8, 2
    nodes_per_graph, num_graph = 8, 2
    N = nodes_per_graph * num_graph                      # 16 nodes

    # two deterministic ring-like edge sets (each node gets in-degree 2)
    node_in, node_out = [], []
    for g in range(num_graph):
        base = g * nodes_per_graph
        for i in range(nodes_per_graph):
            node_in.append(base + i); node_out.append(base + (i + 1) % nodes_per_graph)
            node_in.append(base + i); node_out.append(base + (i + 3) % nodes_per_graph)
    node_in = np.array(node_in, dtype=np.int32)
    node_out = np.array(node_out, dtype=np.int32)
    E = node_in.shape[0]                                  # 32 edges

    s_in = jnp.asarray(np.eye(N, dtype=np.float32)[node_in])        # (E, N)
    s_out = jnp.asarray(np.eye(N, dtype=np.float32)[node_out])      # (E, N)
    graph_id = np.repeat(np.arange(num_graph), nodes_per_graph)
    graph_sel = jnp.asarray(
        (graph_id[None, :] == np.arange(num_graph)[:, None]).astype(np.float32))
    edge_weight = jnp.ones((E, 1), jnp.float32)

    # degree histogram -> avg_deg['log'] used by amplification / attenuation
    deg_hist = np.array([0.0, 3.0, 8.0, 5.0, 2.0], dtype=np.float32)
    bins = np.arange(len(deg_hist), dtype=np.float32)
    avg_log = float((np.log(bins + 1.0) * deg_hist).sum() / deg_hist.sum())

    k_feat, k_edge, k_param = jax.random.split(key, 3)
    node_input = jax.random.normal(k_feat, (N, input_dim), jnp.float32)
    edge_feat = jax.random.normal(k_edge, (E, edge_dim), jnp.float32)
    params = init_packed_params(k_param, input_dim, hidden_dim, edge_dim, num_layer)

    out = pna_forward(params, node_input, edge_feat, jnp.asarray(node_out),
                      s_in, s_out, edge_weight, graph_sel, avg_log, hidden_dim)
    jax.block_until_ready(out)

    assert out["node_feature"].shape == (N, hidden_dim)
    assert out["graph_feature"].shape == (num_graph, hidden_dim)
    assert bool(jnp.all(jnp.isfinite(out["node_feature"])))
    assert bool(jnp.all(jnp.isfinite(out["graph_feature"])))
    print("KERNEL_OK")
</pallas_src>

<mosaic_0001>
module attributes {stable_mosaic.version = 11 : i64} {
  func.func @pna_fused_kernel(%arg0: memref<32xi32, #tpu.memory_space<smem>>, %arg1: memref<16x128xf32, #tpu.memory_space<vmem>>, %arg2: memref<32x128xf32, #tpu.memory_space<vmem>>, %arg3: memref<32x16xbf16, #tpu.memory_space<vmem>>, %arg4: memref<32x16xbf16, #tpu.memory_space<vmem>>, %arg5: memref<16x32xbf16, #tpu.memory_space<vmem>>, %arg6: memref<2x16xbf16, #tpu.memory_space<vmem>>, %arg7: memref<32x1xf32, #tpu.memory_space<vmem>>, %arg8: memref<16x1xf32, #tpu.memory_space<vmem>>, %arg9: memref<16x1xf32, #tpu.memory_space<vmem>>, %arg10: memref<16x1xf32, #tpu.memory_space<vmem>>, %arg11: memref<16x1xf32, #tpu.memory_space<vmem>>, %arg12: memref<128x128xf32, #tpu.memory_space<vmem>>, %arg13: memref<1x128xf32, #tpu.memory_space<vmem>>, %arg14: memref<2x128x128xf32, #tpu.memory_space<vmem>>, %arg15: memref<2x1x128xf32, #tpu.memory_space<vmem>>, %arg16: memref<2x128x128xf32, #tpu.memory_space<vmem>>, %arg17: memref<2x128x128xf32, #tpu.memory_space<vmem>>, %arg18: memref<2x128x128xf32, #tpu.memory_space<vmem>>, %arg19: memref<2x1x128xf32, #tpu.memory_space<vmem>>, %arg20: memref<26x128x128xf32, #tpu.memory_space<vmem>>, %arg21: memref<2x1x128xf32, #tpu.memory_space<vmem>>, %arg22: memref<2x128x128xf32, #tpu.memory_space<vmem>>, %arg23: memref<2x1x128xf32, #tpu.memory_space<vmem>>, %arg24: memref<16x128xf32, #tpu.memory_space<vmem>>, %arg25: memref<2x128xf32, #tpu.memory_space<vmem>>, %arg26: memref<32x128xf32, #tpu.memory_space<vmem>>, %arg27: memref<16x128xf32, #tpu.memory_space<vmem>>, %arg28: memref<16x128xf32, #tpu.memory_space<vmem>>) attributes {dimension_semantics = [], scalar_prefetch = 0 : i64, scratch_operands = 3 : i64, tpu.core_type = #tpu.core_type<tc>} {
    %c0 = arith.constant 0 : index
    %c0_0 = arith.constant 0 : index
    %0 = vector.load %arg1[%c0, %c0_0] : memref<16x128xf32, #tpu.memory_space<vmem>>, vector<16x128xf32>
    %c0_1 = arith.constant 0 : index
    %c0_2 = arith.constant 0 : index
    %1 = vector.load %arg12[%c0_1, %c0_2] : memref<128x128xf32, #tpu.memory_space<vmem>>, vector<128x128xf32>
    %cst = arith.constant dense<0.000000e+00> : vector<16x128xf32>
    %2 = tpu.matmul %0, %1, %cst {dimension_numbers = #tpu.dot_dimension_numbers<[1], [0], [0], [1], [0, 0, 1, 1], [], []>} : vector<16x128xf32>, vector<128x128xf32>, vector<16x128xf32> -> vector<16x128xf32>
    %c0_3 = arith.constant 0 : index
    %c0_4 = arith.constant 0 : index
    %3 = vector.load %arg13[%c0_3, %c0_4] : memref<1x128xf32, #tpu.memory_space<vmem>>, vector<1x128xf32>
    %4 = vector.broadcast %3 : vector<1x128xf32> to vector<16x128xf32>
    %5 = arith.addf %2, %4 : vector<16x128xf32>
    %c0_5 = arith.constant 0 : index
    %c0_6 = arith.constant 0 : index
    %6 = vector.load %arg3[%c0_5, %c0_6] : memref<32x16xbf16, #tpu.memory_space<vmem>>, vector<32x16xbf16>
    %7 = arith.extf %6 : vector<32x16xbf16> to vector<32x16xf32>
    %c0_7 = arith.constant 0 : index
    %c0_8 = arith.constant 0 : index
    %8 = vector.load %arg4[%c0_7, %c0_8] : memref<32x16xbf16, #tpu.memory_space<vmem>>, vector<32x16xbf16>
    %9 = arith.extf %8 : vector<32x16xbf16> to vector<32x16xf32>
    %c0_9 = arith.constant 0 : index
    %c0_10 = arith.constant 0 : index
    %10 = vector.load %arg5[%c0_9, %c0_10] : memref<16x32xbf16, #tpu.memory_space<vmem>>, vector<16x32xbf16>
    %11 = arith.extf %10 : vector<16x32xbf16> to vector<16x32xf32>
    %c0_11 = arith.constant 0 : index
    %c0_12 = arith.constant 0 : index
    %12 = vector.load %arg2[%c0_11, %c0_12] : memref<32x128xf32, #tpu.memory_space<vmem>>, vector<32x128xf32>
    %c0_13 = arith.constant 0 : index
    %c0_14 = arith.constant 0 : index
    %13 = vector.load %arg7[%c0_13, %c0_14] : memref<32x1xf32, #tpu.memory_space<vmem>>, vector<32x1xf32>
    %c0_15 = arith.constant 0 : index
    %c0_16 = arith.constant 0 : index
    %14 = vector.load %arg8[%c0_15, %c0_16] : memref<16x1xf32, #tpu.memory_space<vmem>>, vector<16x1xf32>
    %c0_17 = arith.constant 0 : index
    %c0_18 = arith.constant 0 : index
    %15 = vector.load %arg9[%c0_17, %c0_18] : memref<16x1xf32, #tpu.memory_space<vmem>>, vector<16x1xf32>
    %c0_19 = arith.constant 0 : index
    %c0_20 = arith.constant 0 : index
    %16 = vector.load %arg10[%c0_19, %c0_20] : memref<16x1xf32, #tpu.memory_space<vmem>>, vector<16x1xf32>
    %c0_21 = arith.constant 0 : index
    %c0_22 = arith.constant 0 : index
    %17 = vector.load %arg11[%c0_21, %c0_22] : memref<16x1xf32, #tpu.memory_space<vmem>>, vector<16x1xf32>
    %cst_23 = arith.constant 0.000000e+00 : f32
    %18 = vector.broadcast %cst_23 : f32 to vector<16x1xf32>
    %19 = arith.cmpf ogt, %17, %18 : vector<16x1xf32>
    %c0_24 = arith.constant 0 : index
    %c0_25 = arith.constant 0 : index
    %c0_26 = arith.constant 0 : index
    %20 = vector.load %arg14[%c0_24, %c0_25, %c0_26] : memref<2x128x128xf32, #tpu.memory_space<vmem>>, vector<1x128x128xf32>
    %21 = vector.shape_cast %20 : vector<1x128x128xf32> to vector<128x128xf32>
    %cst_27 = arith.constant dense<0.000000e+00> : vector<32x128xf32>
    %22 = tpu.matmul %12, %21, %cst_27 {dimension_numbers = #tpu.dot_dimension_numbers<[1], [0], [0], [1], [0, 0, 1, 1], [], []>} : vector<32x128xf32>, vector<128x128xf32>, vector<32x128xf32> -> vector<32x128xf32>
    %c0_28 = arith.constant 0 : index
    %c0_29 = arith.constant 0 : index
    %c0_30 = arith.constant 0 : index
    %23 = vector.load %arg15[%c0_28, %c0_29, %c0_30] : memref<2x1x128xf32, #tpu.memory_space<vmem>>, vector<1x1x128xf32>
    %24 = vector.shape_cast %23 : vector<1x1x128xf32> to vector<1x128xf32>
    %25 = vector.broadcast %24 : vector<1x128xf32> to vector<32x128xf32>
    %26 = arith.addf %22, %25 : vector<32x128xf32>
    %c0_31 = arith.constant 0 : index
    %c0_32 = arith.constant 0 : index
    %c0_33 = arith.constant 0 : index
    %27 = vector.load %arg16[%c0_31, %c0_32, %c0_33] : memref<2x128x128xf32, #tpu.memory_space<vmem>>, vector<1x128x128xf32>
    %28 = vector.shape_cast %27 : vector<1x128x128xf32> to vector<128x128xf32>
    %cst_34 = arith.constant dense<0.000000e+00> : vector<16x128xf32>
    %29 = tpu.matmul %5, %28, %cst_34 {dimension_numbers = #tpu.dot_dimension_numbers<[1], [0], [0], [1], [0, 0, 1, 1], [], []>} : vector<16x128xf32>, vector<128x128xf32>, vector<16x128xf32> -> vector<16x128xf32>
    %cst_35 = arith.constant dense<0.000000e+00> : vector<32x128xf32>
    %30 = tpu.matmul %7, %29, %cst_35 {dimension_numbers = #tpu.dot_dimension_numbers<[1], [0], [0], [1], [0, 0, 1, 1], [], []>} : vector<32x16xf32>, vector<16x128xf32>, vector<32x128xf32> -> vector<32x128xf32>
    %c0_36 = arith.constant 0 : index
    %c0_37 = arith.constant 0 : index
    %c0_38 = arith.constant 0 : index
    %31 = vector.load %arg17[%c0_36, %c0_37, %c0_38] : memref<2x128x128xf32, #tpu.memory_space<vmem>>, vector<1x128x128xf32>
    %32 = vector.shape_cast %31 : vector<1x128x128xf32> to vector<128x128xf32>
    %cst_39 = arith.constant dense<0.000000e+00> : vector<16x128xf32>
    %33 = tpu.matmul %5, %32, %cst_39 {dimension_numbers = #tpu.dot_dimension_numbers<[1], [0], [0], [1], [0, 0, 1, 1], [], []>} : vector<16x128xf32>, vector<128x128xf32>, vector<16x128xf32> -> vector<16x128xf32>
    %cst_40 = arith.constant dense<0.000000e+00> : vector<32x128xf32>
    %34 = tpu.matmul %9, %33, %cst_40 {dimension_numbers = #tpu.dot_dimension_numbers<[1], [0], [0], [1], [0, 0, 1, 1], [], []>} : vector<32x16xf32>, vector<16x128xf32>, vector<32x128xf32> -> vector<32x128xf32>
    %35 = arith.addf %30, %34 : vector<32x128xf32>
    %c0_41 = arith.constant 0 : index
    %c0_42 = arith.constant 0 : index
    %c0_43 = arith.constant 0 : index
    %36 = vector.load %arg18[%c0_41, %c0_42, %c0_43] : memref<2x128x128xf32, #tpu.memory_space<vmem>>, vector<1x128x128xf32>
    %37 = vector.shape_cast %36 : vector<1x128x128xf32> to vector<128x128xf32>
    %cst_44 = arith.constant dense<0.000000e+00> : vector<32x128xf32>
    %38 = tpu.matmul %26, %37, %cst_44 {dimension_numbers = #tpu.dot_dimension_numbers<[1], [0], [0], [1], [0, 0, 1, 1], [], []>} : vector<32x128xf32>, vector<128x128xf32>, vector<32x128xf32> -> vector<32x128xf32>
    %39 = arith.addf %35, %38 : vector<32x128xf32>
    %c0_45 = arith.constant 0 : index
    %c0_46 = arith.constant 0 : index
    %c0_47 = arith.constant 0 : index
    %40 = vector.load %arg19[%c0_45, %c0_46, %c0_47] : memref<2x1x128xf32, #tpu.memory_space<vmem>>, vector<1x1x128xf32>
    %41 = vector.shape_cast %40 : vector<1x1x128xf32> to vector<1x128xf32>
    %42 = vector.broadcast %41 : vector<1x128xf32> to vector<32x128xf32>
    %43 = arith.addf %39, %42 : vector<32x128xf32>
    %44 = vector.broadcast %13 : vector<32x1xf32> to vector<32x128xf32>
    %45 = arith.mulf %43, %44 : vector<32x128xf32>
    %c0_48 = arith.constant 0 : index
    %c0_49 = arith.constant 0 : index
    %46 = vector.load %arg26[%c0_48, %c0_49] : memref<32x128xf32, #tpu.memory_space<vmem>>, vector<32x128xf32>
    tpu.vector_store %arg26[%c0_48, %c0_49], %45 {strides = array<i32>} : memref<32x128xf32, #tpu.memory_space<vmem>>, vector<32x128xf32>,
    %cst_50 = arith.constant dense<0.000000e+00> : vector<16x128xf32>
    %47 = tpu.matmul %11, %45, %cst_50 {dimension_numbers = #tpu.dot_dimension_numbers<[1], [0], [0], [1], [0, 0, 1, 1], [], []>} : vector<16x32xf32>, vector<32x128xf32>, vector<16x128xf32> -> vector<16x128xf32>
    %48 = arith.mulf %45, %45 : vector<32x128xf32>
    %cst_51 = arith.constant dense<0.000000e+00> : vector<16x128xf32>
    %49 = tpu.matmul %11, %48, %cst_51 {dimension_numbers = #tpu.dot_dimension_numbers<[1], [0], [0], [1], [0, 0, 1, 1], [], []>} : vector<16x32xf32>, vector<32x128xf32>, vector<16x128xf32> -> vector<16x128xf32>
    %50 = vector.broadcast %14 : vector<16x1xf32> to vector<16x128xf32>
    %51 = arith.mulf %47, %50 : vector<16x128xf32>
    %52 = vector.broadcast %14 : vector<16x1xf32> to vector<16x128xf32>
    %53 = arith.mulf %49, %52 : vector<16x128xf32>
    %54 = arith.mulf %51, %51 : vector<16x128xf32>
    %55 = arith.subf %53, %54 : vector<16x128xf32>
    %cst_52 = arith.constant 0.000000e+00 : f32
    %56 = vector.broadcast %cst_52 : f32 to vector<16x128xf32>
    %57 = arith.maximumf %55, %56 : vector<16x128xf32>
    %cst_53 = arith.constant 9.99999974E-6 : f32
    %58 = vector.broadcast %cst_53 : f32 to vector<16x128xf32>
    %59 = arith.addf %57, %58 : vector<16x128xf32>
    %60 = math.sqrt %59 : vector<16x128xf32>
    %cst_54 = arith.constant 0xFF800000 : f32
    %61 = vector.broadcast %cst_54 : f32 to vector<16x128xf32>
    %c0_55 = arith.constant 0 : index
    %c0_56 = arith.constant 0 : index
    %62 = vector.load %arg27[%c0_55, %c0_56] : memref<16x128xf32, #tpu.memory_space<vmem>>, vector<16x128xf32>
    tpu.vector_store %arg27[%c0_55, %c0_56], %61 {strides = array<i32>} : memref<16x128xf32, #tpu.memory_space<vmem>>, vector<16x128xf32>,
    %cst_57 = arith.constant 0x7F800000 : f32
    %63 = vector.broadcast %cst_57 : f32 to vector<16x128xf32>
    %c0_58 = arith.constant 0 : index
    %c0_59 = arith.constant 0 : index
    %64 = vector.load %arg28[%c0_58, %c0_59] : memref<16x128xf32, #tpu.memory_space<vmem>>, vector<16x128xf32>
    tpu.vector_store %arg28[%c0_58, %c0_59], %63 {strides = array<i32>} : memref<16x128xf32, #tpu.memory_space<vmem>>, vector<16x128xf32>,
    %c0_i32 = arith.constant 0 : i32
    %c32_i32 = arith.constant 32 : i32
    %65 = arith.addi %c0_i32, %c32_i32 : i32
    %c1_i32 = arith.constant 1 : i32
    scf.for %arg29 = %c0_i32 to %65 step %c1_i32  : i32 {
      %c1_i32_221 = arith.constant 1 : i32
      %273 = arith.muli %arg29, %c1_i32_221 : i32
      %c0_i32_222 = arith.constant 0 : i32
      %274 = arith.addi %c0_i32_222, %273 : i32
      %275 = arith.index_cast %274 : i32 to index
      %276 = memref.load %arg0[%275] : memref<32xi32, #tpu.memory_space<smem>>
      %277 = arith.index_cast %274 : i32 to index
      %c0_223 = arith.constant 0 : index
      %278 = vector.load %arg26[%277, %c0_223] : memref<32x128xf32, #tpu.memory_space<vmem>>, vector<1x128xf32>
      %279 = arith.index_cast %276 : i32 to index
      %c0_224 = arith.constant 0 : index
      %280 = vector.load %arg27[%279, %c0_224] : memref<16x128xf32, #tpu.memory_space<vmem>>, vector<1x128xf32>
      %281 = arith.maximumf %280, %278 : vector<1x128xf32>
      %282 = arith.index_cast %276 : i32 to index
      %c0_225 = arith.constant 0 : index
      %283 = vector.load %arg27[%282, %c0_225] : memref<16x128xf32, #tpu.memory_space<vmem>>, vector<1x128xf32>
      tpu.vector_store %arg27[%282, %c0_225], %281 {strides = array<i32>} : memref<16x128xf32, #tpu.memory_space<vmem>>, vector<1x128xf32>,
      %284 = arith.index_cast %276 : i32 to index
      %c0_226 = arith.constant 0 : index
      %285 = vector.load %arg28[%284, %c0_226] : memref<16x128xf32, #tpu.memory_space<vmem>>, vector<1x128xf32>
      %286 = arith.minimumf %285, %278 : vector<1x128xf32>
      %287 = arith.index_cast %276 : i32 to index
      %c0_227 = arith.constant 0 : index
      %288 = vector.load %arg28[%287, %c0_227] : memref<16x128xf32, #tpu.memory_space<vmem>>, vector<1x128xf32>
      tpu.vector_store %arg28[%287, %c0_227], %286 {strides = array<i32>} : memref<16x128xf32, #tpu.memory_space<vmem>>, vector<1x128xf32>,
    }
    %c32_i32_60 = arith.constant 32 : i32
    %c0_61 = arith.constant 0 : index
    %c0_62 = arith.constant 0 : index
    %66 = vector.load %arg27[%c0_61, %c0_62] : memref<16x128xf32, #tpu.memory_space<vmem>>, vector<16x128xf32>
    %cst_63 = arith.constant 0.000000e+00 : f32
    %67 = vector.shape_cast %19 : vector<16x1xi1> to vector<16x1xi1>
    %68 = vector.broadcast %67 : vector<16x1xi1> to vector<16x128xi1>
    %69 = vector.broadcast %cst_63 : f32 to vector<16x128xf32>
    %70 = arith.select %68, %66, %69 : vector<16x128xi1>, vector<16x128xf32>
    %c0_64 = arith.constant 0 : index
    %c0_65 = arith.constant 0 : index
    %71 = vector.load %arg28[%c0_64, %c0_65] : memref<16x128xf32, #tpu.memory_space<vmem>>, vector<16x128xf32>
    %cst_66 = arith.constant 0.000000e+00 : f32
    %72 = vector.shape_cast %19 : vector<16x1xi1> to vector<16x1xi1>
    %73 = vector.broadcast %72 : vector<16x1xi1> to vector<16x128xi1>
    %74 = vector.broadcast %cst_66 : f32 to vector<16x128xf32>
    %75 = arith.select %73, %71, %74 : vector<16x128xi1>, vector<16x128xf32>
    %c0_67 = arith.constant 0 : index
    %c0_68 = arith.constant 0 : index
    %c0_69 = arith.constant 0 : index
    %76 = vector.load %arg20[%c0_67, %c0_68, %c0_69] : memref<26x128x128xf32, #tpu.memory_space<vmem>>, vector<1x128x128xf32>
    %77 = vector.shape_cast %76 : vector<1x128x128xf32> to vector<128x128xf32>
    %cst_70 = arith.constant dense<0.000000e+00> : vector<16x128xf32>
    %78 = tpu.matmul %5, %77, %cst_70 {dimension_numbers = #tpu.dot_dimension_numbers<[1], [0], [0], [1], [0, 0, 1, 1], [], []>} : vector<16x128xf32>, vector<128x128xf32>, vector<16x128xf32> -> vector<16x128xf32>
    %c1 = arith.constant 1 : index
    %c0_71 = arith.constant 0 : index
    %c0_72 = arith.constant 0 : index
    %79 = vector.load %arg20[%c1, %c0_71, %c0_72] : memref<26x128x128xf32, #tpu.memory_space<vmem>>, vector<1x128x128xf32>
    %80 = vector.shape_cast %79 : vector<1x128x128xf32> to vector<128x128xf32>
    %cst_73 = arith.constant dense<0.000000e+00> : vector<16x128xf32>
    %81 = tpu.matmul %51, %80, %cst_73 {dimension_numbers = #tpu.dot_dimension_numbers<[1], [0], [0], [1], [0, 0, 1, 1], [], []>} : vector<16x128xf32>, vector<128x128xf32>, vector<16x128xf32> -> vector<16x128xf32>
    %c2 = arith.constant 2 : index
    %c0_74 = arith.constant 0 : index
    %c0_75 = arith.constant 0 : index
    %82 = vector.load %arg20[%c2, %c0_74, %c0_75] : memref<26x128x128xf32, #tpu.memory_space<vmem>>, vector<1x128x128xf32>
    %83 = vector.shape_cast %82 : vector<1x128x128xf32> to vector<128x128xf32>
    %cst_76 = arith.constant dense<0.000000e+00> : vector<16x128xf32>
    %84 = tpu.matmul %75, %83, %cst_76 {dimension_numbers = #tpu.dot_dimension_numbers<[1], [0], [0], [1], [0, 0, 1, 1], [], []>} : vector<16x128xf32>, vector<128x128xf32>, vector<16x128xf32> -> vector<16x128xf32>
    %85 = arith.addf %81, %84 : vector<16x128xf32>
    %c3 = arith.constant 3 : index
    %c0_77 = arith.constant 0 : index
    %c0_78 = arith.constant 0 : index
    %86 = vector.load %arg20[%c3, %c0_77, %c0_78] : memref<26x128x128xf32, #tpu.memory_space<vmem>>, vector<1x128x128xf32>
    %87 = vector.shape_cast %86 : vector<1x128x128xf32> to vector<128x128xf32>
    %cst_79 = arith.constant dense<0.000000e+00> : vector<16x128xf32>
    %88 = tpu.matmul %70, %87, %cst_79 {dimension_numbers = #tpu.dot_dimension_numbers<[1], [0], [0], [1], [0, 0, 1, 1], [], []>} : vector<16x128xf32>, vector<128x128xf32>, vector<16x128xf32> -> vector<16x128xf32>
    %89 = arith.addf %85, %88 : vector<16x128xf32>
    %c4 = arith.constant 4 : index
    %c0_80 = arith.constant 0 : index
    %c0_81 = arith.constant 0 : index
    %90 = vector.load %arg20[%c4, %c0_80, %c0_81] : memref<26x128x128xf32, #tpu.memory_space<vmem>>, vector<1x128x128xf32>
    %91 = vector.shape_cast %90 : vector<1x128x128xf32> to vector<128x128xf32>
    %cst_82 = arith.constant dense<0.000000e+00> : vector<16x128xf32>
    %92 = tpu.matmul %60, %91, %cst_82 {dimension_numbers = #tpu.dot_dimension_numbers<[1], [0], [0], [1], [0, 0, 1, 1], [], []>} : vector<16x128xf32>, vector<128x128xf32>, vector<16x128xf32> -> vector<16x128xf32>
    %93 = arith.addf %89, %92 : vector<16x128xf32>
    %94 = arith.addf %78, %93 : vector<16x128xf32>
    %c5 = arith.constant 5 : index
    %c0_83 = arith.constant 0 : index
    %c0_84 = arith.constant 0 : index
    %95 = vector.load %arg20[%c5, %c0_83, %c0_84] : memref<26x128x128xf32, #tpu.memory_space<vmem>>, vector<1x128x128xf32>
    %96 = vector.shape_cast %95 : vector<1x128x128xf32> to vector<128x128xf32>
    %cst_85 = arith.constant dense<0.000000e+00> : vector<16x128xf32>
    %97 = tpu.matmul %51, %96, %cst_85 {dimension_numbers = #tpu.dot_dimension_numbers<[1], [0], [0], [1], [0, 0, 1, 1], [], []>} : vector<16x128xf32>, vector<128x128xf32>, vector<16x128xf32> -> vector<16x128xf32>
    %c6 = arith.constant 6 : index
    %c0_86 = arith.constant 0 : index
    %c0_87 = arith.constant 0 : index
    %98 = vector.load %arg20[%c6, %c0_86, %c0_87] : memref<26x128x128xf32, #tpu.memory_space<vmem>>, vector<1x128x128xf32>
    %99 = vector.shape_cast %98 : vector<1x128x128xf32> to vector<128x128xf32>
    %cst_88 = arith.constant dense<0.000000e+00> : vector<16x128xf32>
    %100 = tpu.matmul %75, %99, %cst_88 {dimension_numbers = #tpu.dot_dimension_numbers<[1], [0], [0], [1], [0, 0, 1, 1], [], []>} : vector<16x128xf32>, vector<128x128xf32>, vector<16x128xf32> -> vector<16x128xf32>
    %101 = arith.addf %97, %100 : vector<16x128xf32>
    %c7 = arith.constant 7 : index
    %c0_89 = arith.constant 0 : index
    %c0_90 = arith.constant 0 : index
    %102 = vector.load %arg20[%c7, %c0_89, %c0_90] : memref<26x128x128xf32, #tpu.memory_space<vmem>>, vector<1x128x128xf32>
    %103 = vector.shape_cast %102 : vector<1x128x128xf32> to vector<128x128xf32>
    %cst_91 = arith.constant dense<0.000000e+00> : vector<16x128xf32>
    %104 = tpu.matmul %70, %103, %cst_91 {dimension_numbers = #tpu.dot_dimension_numbers<[1], [0], [0], [1], [0, 0, 1, 1], [], []>} : vector<16x128xf32>, vector<128x128xf32>, vector<16x128xf32> -> vector<16x128xf32>
    %105 = arith.addf %101, %104 : vector<16x128xf32>
    %c8 = arith.constant 8 : index
    %c0_92 = arith.constant 0 : index
    %c0_93 = arith.constant 0 : index
    %106 = vector.load %arg20[%c8, %c0_92, %c0_93] : memref<26x128x128xf32, #tpu.memory_space<vmem>>, vector<1x128x128xf32>
    %107 = vector.shape_cast %106 : vector<1x128x128xf32> to vector<128x128xf32>
    %cst_94 = arith.constant dense<0.000000e+00> : vector<16x128xf32>
    %108 = tpu.matmul %60, %107, %cst_94 {dimension_numbers = #tpu.dot_dimension_numbers<[1], [0], [0], [1], [0, 0, 1, 1], [], []>} : vector<16x128xf32>, vector<128x128xf32>, vector<16x128xf32> -> vector<16x128xf32>
    %109 = arith.addf %105, %108 : vector<16x128xf32>
    %110 = vector.broadcast %15 : vector<16x1xf32> to vector<16x128xf32>
    %111 = arith.mulf %110, %109 : vector<16x128xf32>
    %112 = arith.addf %94, %111 : vector<16x128xf32>
    %c9 = arith.constant 9 : index
    %c0_95 = arith.constant 0 : index
    %c0_96 = arith.constant 0 : index
    %113 = vector.load %arg20[%c9, %c0_95, %c0_96] : memref<26x128x128xf32, #tpu.memory_space<vmem>>, vector<1x128x128xf32>
    %114 = vector.shape_cast %113 : vector<1x128x128xf32> to vector<128x128xf32>
    %cst_97 = arith.constant dense<0.000000e+00> : vector<16x128xf32>
    %115 = tpu.matmul %51, %114, %cst_97 {dimension_numbers = #tpu.dot_dimension_numbers<[1], [0], [0], [1], [0, 0, 1, 1], [], []>} : vector<16x128xf32>, vector<128x128xf32>, vector<16x128xf32> -> vector<16x128xf32>
    %c10 = arith.constant 10 : index
    %c0_98 = arith.constant 0 : index
    %c0_99 = arith.constant 0 : index
    %116 = vector.load %arg20[%c10, %c0_98, %c0_99] : memref<26x128x128xf32, #tpu.memory_space<vmem>>, vector<1x128x128xf32>
    %117 = vector.shape_cast %116 : vector<1x128x128xf32> to vector<128x128xf32>
    %cst_100 = arith.constant dense<0.000000e+00> : vector<16x128xf32>
    %118 = tpu.matmul %75, %117, %cst_100 {dimension_numbers = #tpu.dot_dimension_numbers<[1], [0], [0], [1], [0, 0, 1, 1], [], []>} : vector<16x128xf32>, vector<128x128xf32>, vector<16x128xf32> -> vector<16x128xf32>
    %119 = arith.addf %115, %118 : vector<16x128xf32>
    %c11 = arith.constant 11 : index
    %c0_101 = arith.constant 0 : index
    %c0_102 = arith.constant 0 : index
    %120 = vector.load %arg20[%c11, %c0_101, %c0_102] : memref<26x128x128xf32, #tpu.memory_space<vmem>>, vector<1x128x128xf32>
    %121 = vector.shape_cast %120 : vector<1x128x128xf32> to vector<128x128xf32>
    %cst_103 = arith.constant dense<0.000000e+00> : vector<16x128xf32>
    %122 = tpu.matmul %70, %121, %cst_103 {dimension_numbers = #tpu.dot_dimension_numbers<[1], [0], [0], [1], [0, 0, 1, 1], [], []>} : vector<16x128xf32>, vector<128x128xf32>, vector<16x128xf32> -> vector<16x128xf32>
    %123 = arith.addf %119, %122 : vector<16x128xf32>
    %c12 = arith.constant 12 : index
    %c0_104 = arith.constant 0 : index
    %c0_105 = arith.constant 0 : index
    %124 = vector.load %arg20[%c12, %c0_104, %c0_105] : memref<26x128x128xf32, #tpu.memory_space<vmem>>, vector<1x128x128xf32>
    %125 = vector.shape_cast %124 : vector<1x128x128xf32> to vector<128x128xf32>
    %cst_106 = arith.constant dense<0.000000e+00> : vector<16x128xf32>
    %126 = tpu.matmul %60, %125, %cst_106 {dimension_numbers = #tpu.dot_dimension_numbers<[1], [0], [0], [1], [0, 0, 1, 1], [], []>} : vector<16x128xf32>, vector<128x128xf32>, vector<16x128xf32> -> vector<16x128xf32>
    %127 = arith.addf %123, %126 : vector<16x128xf32>
    %128 = vector.broadcast %16 : vector<16x1xf32> to vector<16x128xf32>
    %129 = arith.mulf %128, %127 : vector<16x128xf32>
    %130 = arith.addf %112, %129 : vector<16x128xf32>
    %c0_107 = arith.constant 0 : index
    %c0_108 = arith.constant 0 : index
    %c0_109 = arith.constant 0 : index
    %131 = vector.load %arg21[%c0_107, %c0_108, %c0_109] : memref<2x1x128xf32, #tpu.memory_space<vmem>>, vector<1x1x128xf32>
    %132 = vector.shape_cast %131 : vector<1x1x128xf32> to vector<1x128xf32>
    %133 = vector.broadcast %132 : vector<1x128xf32> to vector<16x128xf32>
    %134 = arith.addf %130, %133 : vector<16x128xf32>
    %c0_110 = arith.constant 0 : index
    %c0_111 = arith.constant 0 : index
    %c0_112 = arith.constant 0 : index
    %135 = vector.load %arg22[%c0_110, %c0_111, %c0_112] : memref<2x128x128xf32, #tpu.memory_space<vmem>>, vector<1x128x128xf32>
    %136 = vector.shape_cast %135 : vector<1x128x128xf32> to vector<128x128xf32>
    %cst_113 = arith.constant dense<0.000000e+00> : vector<16x128xf32>
    %137 = tpu.matmul %134, %136, %cst_113 {dimension_numbers = #tpu.dot_dimension_numbers<[1], [0], [0], [1], [0, 0, 1, 1], [], []>} : vector<16x128xf32>, vector<128x128xf32>, vector<16x128xf32> -> vector<16x128xf32>
    %c0_114 = arith.constant 0 : index
    %c0_115 = arith.constant 0 : index
    %c0_116 = arith.constant 0 : index
    %138 = vector.load %arg23[%c0_114, %c0_115, %c0_116] : memref<2x1x128xf32, #tpu.memory_space<vmem>>, vector<1x1x128xf32>
    %139 = vector.shape_cast %138 : vector<1x1x128xf32> to vector<1x128xf32>
    %140 = vector.broadcast %139 : vector<1x128xf32> to vector<16x128xf32>
    %141 = arith.addf %137, %140 : vector<16x128xf32>
    %cst_117 = arith.constant 0.000000e+00 : f32
    %142 = vector.broadcast %cst_117 : f32 to vector<16x128xf32>
    %143 = arith.maximumf %141, %142 : vector<16x128xf32>
    %c1_118 = arith.constant 1 : index
    %c0_119 = arith.constant 0 : index
    %c0_120 = arith.constant 0 : index
    %144 = vector.load %arg14[%c1_118, %c0_119, %c0_120] : memref<2x128x128xf32, #tpu.memory_space<vmem>>, vector<1x128x128xf32>
    %145 = vector.shape_cast %144 : vector<1x128x128xf32> to vector<128x128xf32>
    %cst_121 = arith.constant dense<0.000000e+00> : vector<32x128xf32>
    %146 = tpu.matmul %12, %145, %cst_121 {dimension_numbers = #tpu.dot_dimension_numbers<[1], [0], [0], [1], [0, 0, 1, 1], [], []>} : vector<32x128xf32>, vector<128x128xf32>, vector<32x128xf32> -> vector<32x128xf32>
    %c1_122 = arith.constant 1 : index
    %c0_123 = arith.constant 0 : index
    %c0_124 = arith.constant 0 : index
    %147 = vector.load %arg15[%c1_122, %c0_123, %c0_124] : memref<2x1x128xf32, #tpu.memory_space<vmem>>, vector<1x1x128xf32>
    %148 = vector.shape_cast %147 : vector<1x1x128xf32> to vector<1x128xf32>
    %149 = vector.broadcast %148 : vector<1x128xf32> to vector<32x128xf32>
    %150 = arith.addf %146, %149 : vector<32x128xf32>
    %c1_125 = arith.constant 1 : index
    %c0_126 = arith.constant 0 : index
    %c0_127 = arith.constant 0 : index
    %151 = vector.load %arg16[%c1_125, %c0_126, %c0_127] : memref<2x128x128xf32, #tpu.memory_space<vmem>>, vector<1x128x128xf32>
    %152 = vector.shape_cast %151 : vector<1x128x128xf32> to vector<128x128xf32>
    %cst_128 = arith.constant dense<0.000000e+00> : vector<16x128xf32>
    %153 = tpu.matmul %143, %152, %cst_128 {dimension_numbers = #tpu.dot_dimension_numbers<[1], [0], [0], [1], [0, 0, 1, 1], [], []>} : vector<16x128xf32>, vector<128x128xf32>, vector<16x128xf32> -> vector<16x128xf32>
    %cst_129 = arith.constant dense<0.000000e+00> : vector<32x128xf32>
    %154 = tpu.matmul %7, %153, %cst_129 {dimension_numbers = #tpu.dot_dimension_numbers<[1], [0], [0], [1], [0, 0, 1, 1], [], []>} : vector<32x16xf32>, vector<16x128xf32>, vector<32x128xf32> -> vector<32x128xf32>
    %c1_130 = arith.constant 1 : index
    %c0_131 = arith.constant 0 : index
    %c0_132 = arith.constant 0 : index
    %155 = vector.load %arg17[%c1_130, %c0_131, %c0_132] : memref<2x128x128xf32, #tpu.memory_space<vmem>>, vector<1x128x128xf32>
    %156 = vector.shape_cast %155 : vector<1x128x128xf32> to vector<128x128xf32>
    %cst_133 = arith.constant dense<0.000000e+00> : vector<16x128xf32>
    %157 = tpu.matmul %143, %156, %cst_133 {dimension_numbers = #tpu.dot_dimension_numbers<[1], [0], [0], [1], [0, 0, 1, 1], [], []>} : vector<16x128xf32>, vector<128x128xf32>, vector<16x128xf32> -> vector<16x128xf32>
    %cst_134 = arith.constant dense<0.000000e+00> : vector<32x128xf32>
    %158 = tpu.matmul %9, %157, %cst_134 {dimension_numbers = #tpu.dot_dimension_numbers<[1], [0], [0], [1], [0, 0, 1, 1], [], []>} : vector<32x16xf32>, vector<16x128xf32>, vector<32x128xf32> -> vector<32x128xf32>
    %159 = arith.addf %154, %158 : vector<32x128xf32>
    %c1_135 = arith.constant 1 : index
    %c0_136 = arith.constant 0 : index
    %c0_137 = arith.constant 0 : index
    %160 = vector.load %arg18[%c1_135, %c0_136, %c0_137] : memref<2x128x128xf32, #tpu.memory_space<vmem>>, vector<1x128x128xf32>
    %161 = vector.shape_cast %160 : vector<1x128x128xf32> to vector<128x128xf32>
    %cst_138 = arith.constant dense<0.000000e+00> : vector<32x128xf32>
    %162 = tpu.matmul %150, %161, %cst_138 {dimension_numbers = #tpu.dot_dimension_numbers<[1], [0], [0], [1], [0, 0, 1, 1], [], []>} : vector<32x128xf32>, vector<128x128xf32>, vector<32x128xf32> -> vector<32x128xf32>
    %163 = arith.addf %159, %162 : vector<32x128xf32>
    %c1_139 = arith.constant 1 : index
    %c0_140 = arith.constant 0 : index
    %c0_141 = arith.constant 0 : index
    %164 = vector.load %arg19[%c1_139, %c0_140, %c0_141] : memref<2x1x128xf32, #tpu.memory_space<vmem>>, vector<1x1x128xf32>
    %165 = vector.shape_cast %164 : vector<1x1x128xf32> to vector<1x128xf32>
    %166 = vector.broadcast %165 : vector<1x128xf32> to vector<32x128xf32>
    %167 = arith.addf %163, %166 : vector<32x128xf32>
    %168 = vector.broadcast %13 : vector<32x1xf32> to vector<32x128xf32>
    %169 = arith.mulf %167, %168 : vector<32x128xf32>
    %c0_142 = arith.constant 0 : index
    %c0_143 = arith.constant 0 : index
    %170 = vector.load %arg26[%c0_142, %c0_143] : memref<32x128xf32, #tpu.memory_space<vmem>>, vector<32x128xf32>
    tpu.vector_store %arg26[%c0_142, %c0_143], %169 {strides = array<i32>} : memref<32x128xf32, #tpu.memory_space<vmem>>, vector<32x128xf32>,
    %cst_144 = arith.constant dense<0.000000e+00> : vector<16x128xf32>
    %171 = tpu.matmul %11, %169, %cst_144 {dimension_numbers = #tpu.dot_dimension_numbers<[1], [0], [0], [1], [0, 0, 1, 1], [], []>} : vector<16x32xf32>, vector<32x128xf32>, vector<16x128xf32> -> vector<16x128xf32>
    %172 = arith.mulf %169, %169 : vector<32x128xf32>
    %cst_145 = arith.constant dense<0.000000e+00> : vector<16x128xf32>
    %173 = tpu.matmul %11, %172, %cst_145 {dimension_numbers = #tpu.dot_dimension_numbers<[1], [0], [0], [1], [0, 0, 1, 1], [], []>} : vector<16x32xf32>, vector<32x128xf32>, vector<16x128xf32> -> vector<16x128xf32>
    %174 = vector.broadcast %14 : vector<16x1xf32> to vector<16x128xf32>
    %175 = arith.mulf %171, %174 : vector<16x128xf32>
    %176 = vector.broadcast %14 : vector<16x1xf32> to vector<16x128xf32>
    %177 = arith.mulf %173, %176 : vector<16x128xf32>
    %178 = arith.mulf %175, %175 : vector<16x128xf32>
    %179 = arith.subf %177, %178 : vector<16x128xf32>
    %cst_146 = arith.constant 0.000000e+00 : f32
    %180 = vector.broadcast %cst_146 : f32 to vector<16x128xf32>
    %181 = arith.maximumf %179, %180 : vector<16x128xf32>
    %cst_147 = arith.constant 9.99999974E-6 : f32
    %182 = vector.broadcast %cst_147 : f32 to vector<16x128xf32>
    %183 = arith.addf %181, %182 : vector<16x128xf32>
    %184 = math.sqrt %183 : vector<16x128xf32>
    %cst_148 = arith.constant 0xFF800000 : f32
    %185 = vector.broadcast %cst_148 : f32 to vector<16x128xf32>
    %c0_149 = arith.constant 0 : index
    %c0_150 = arith.constant 0 : index
    %186 = vector.load %arg27[%c0_149, %c0_150] : memref<16x128xf32, #tpu.memory_space<vmem>>, vector<16x128xf32>
    tpu.vector_store %arg27[%c0_149, %c0_150], %185 {strides = array<i32>} : memref<16x128xf32, #tpu.memory_space<vmem>>, vector<16x128xf32>,
    %cst_151 = arith.constant 0x7F800000 : f32
    %187 = vector.broadcast %cst_151 : f32 to vector<16x128xf32>
    %c0_152 = arith.constant 0 : index
    %c0_153 = arith.constant 0 : index
    %188 = vector.load %arg28[%c0_152, %c0_153] : memref<16x128xf32, #tpu.memory_space<vmem>>, vector<16x128xf32>
    tpu.vector_store %arg28[%c0_152, %c0_153], %187 {strides = array<i32>} : memref<16x128xf32, #tpu.memory_space<vmem>>, vector<16x128xf32>,
    %c0_i32_154 = arith.constant 0 : i32
    %c32_i32_155 = arith.constant 32 : i32
    %189 = arith.addi %c0_i32_154, %c32_i32_155 : i32
    %c1_i32_156 = arith.constant 1 : i32
    scf.for %arg29 = %c0_i32_154 to %189 step %c1_i32_156  : i32 {
      %c1_i32_221 = arith.constant 1 : i32
      %273 = arith.muli %arg29, %c1_i32_221 : i32
      %c0_i32_222 = arith.constant 0 : i32
      %274 = arith.addi %c0_i32_222, %273 : i32
      %275 = arith.index_cast %274 : i32 to index
      %276 = memref.load %arg0[%275] : memref<32xi32, #tpu.memory_space<smem>>
      %277 = arith.index_cast %274 : i32 to index
      %c0_223 = arith.constant 0 : index
      %278 = vector.load %arg26[%277, %c0_223] : memref<32x128xf32, #tpu.memory_space<vmem>>, vector<1x128xf32>
      %279 = arith.index_cast %276 : i32 to index
      %c0_224 = arith.constant 0 : index
      %280 = vector.load %arg27[%279, %c0_224] : memref<16x128xf32, #tpu.memory_space<vmem>>, vector<1x128xf32>
      %281 = arith.maximumf %280, %278 : vector<1x128xf32>
      %282 = arith.index_cast %276 : i32 to index
      %c0_225 = arith.constant 0 : index
      %283 = vector.load %arg27[%282, %c0_225] : memref<16x128xf32, #tpu.memory_space<vmem>>, vector<1x128xf32>
      tpu.vector_store %arg27[%282, %c0_225], %281 {strides = array<i32>} : memref<16x128xf32, #tpu.memory_space<vmem>>, vector<1x128xf32>,
      %284 = arith.index_cast %276 : i32 to index
      %c0_226 = arith.constant 0 : index
      %285 = vector.load %arg28[%284, %c0_226] : memref<16x128xf32, #tpu.memory_space<vmem>>, vector<1x128xf32>
      %286 = arith.minimumf %285, %278 : vector<1x128xf32>
      %287 = arith.index_cast %276 : i32 to index
      %c0_227 = arith.constant 0 : index
      %288 = vector.load %arg28[%287, %c0_227] : memref<16x128xf32, #tpu.memory_space<vmem>>, vector<1x128xf32>
      tpu.vector_store %arg28[%287, %c0_227], %286 {strides = array<i32>} : memref<16x128xf32, #tpu.memory_space<vmem>>, vector<1x128xf32>,
    }
    %c32_i32_157 = arith.constant 32 : i32
    %c0_158 = arith.constant 0 : index
    %c0_159 = arith.constant 0 : index
    %190 = vector.load %arg27[%c0_158, %c0_159] : memref<16x128xf32, #tpu.memory_space<vmem>>, vector<16x128xf32>
    %cst_160 = arith.constant 0.000000e+00 : f32
    %191 = vector.shape_cast %19 : vector<16x1xi1> to vector<16x1xi1>
    %192 = vector.broadcast %191 : vector<16x1xi1> to vector<16x128xi1>
    %193 = vector.broadcast %cst_160 : f32 to vector<16x128xf32>
    %194 = arith.select %192, %190, %193 : vector<16x128xi1>, vector<16x128xf32>
    %c0_161 = arith.constant 0 : index
    %c0_162 = arith.constant 0 : index
    %195 = vector.load %arg28[%c0_161, %c0_162] : memref<16x128xf32, #tpu.memory_space<vmem>>, vector<16x128xf32>
    %cst_163 = arith.constant 0.000000e+00 : f32
    %196 = vector.shape_cast %19 : vector<16x1xi1> to vector<16x1xi1>
    %197 = vector.broadcast %196 : vector<16x1xi1> to vector<16x128xi1>
    %198 = vector.broadcast %cst_163 : f32 to vector<16x128xf32>
    %199 = arith.select %197, %195, %198 : vector<16x128xi1>, vector<16x128xf32>
    %c13 = arith.constant 13 : index
    %c0_164 = arith.constant 0 : index
    %c0_165 = arith.constant 0 : index
    %200 = vector.load %arg20[%c13, %c0_164, %c0_165] : memref<26x128x128xf32, #tpu.memory_space<vmem>>, vector<1x128x128xf32>
    %201 = vector.shape_cast %200 : vector<1x128x128xf32> to vector<128x128xf32>
    %cst_166 = arith.constant dense<0.000000e+00> : vector<16x128xf32>
    %202 = tpu.matmul %143, %201, %cst_166 {dimension_numbers = #tpu.dot_dimension_numbers<[1], [0], [0], [1], [0, 0, 1, 1], [], []>} : vector<16x128xf32>, vector<128x128xf32>, vector<16x128xf32> -> vector<16x128xf32>
    %c14 = arith.constant 14 : index
    %c0_167 = arith.constant 0 : index
    %c0_168 = arith.constant 0 : index
    %203 = vector.load %arg20[%c14, %c0_167, %c0_168] : memref<26x128x128xf32, #tpu.memory_space<vmem>>, vector<1x128x128xf32>
    %204 = vector.shape_cast %203 : vector<1x128x128xf32> to vector<128x128xf32>
    %cst_169 = arith.constant dense<0.000000e+00> : vector<16x128xf32>
    %205 = tpu.matmul %175, %204, %cst_169 {dimension_numbers = #tpu.dot_dimension_numbers<[1], [0], [0], [1], [0, 0, 1, 1], [], []>} : vector<16x128xf32>, vector<128x128xf32>, vector<16x128xf32> -> vector<16x128xf32>
    %c15 = arith.constant 15 : index
    %c0_170 = arith.constant 0 : index
    %c0_171 = arith.constant 0 : index
    %206 = vector.load %arg20[%c15, %c0_170, %c0_171] : memref<26x128x128xf32, #tpu.memory_space<vmem>>, vector<1x128x128xf32>
    %207 = vector.shape_cast %206 : vector<1x128x128xf32> to vector<128x128xf32>
    %cst_172 = arith.constant dense<0.000000e+00> : vector<16x128xf32>
    %208 = tpu.matmul %199, %207, %cst_172 {dimension_numbers = #tpu.dot_dimension_numbers<[1], [0], [0], [1], [0, 0, 1, 1], [], []>} : vector<16x128xf32>, vector<128x128xf32>, vector<16x128xf32> -> vector<16x128xf32>
    %209 = arith.addf %205, %208 : vector<16x128xf32>
    %c16 = arith.constant 16 : index
    %c0_173 = arith.constant 0 : index
    %c0_174 = arith.constant 0 : index
    %210 = vector.load %arg20[%c16, %c0_173, %c0_174] : memref<26x128x128xf32, #tpu.memory_space<vmem>>, vector<1x128x128xf32>
    %211 = vector.shape_cast %210 : vector<1x128x128xf32> to vector<128x128xf32>
    %cst_175 = arith.constant dense<0.000000e+00> : vector<16x128xf32>
    %212 = tpu.matmul %194, %211, %cst_175 {dimension_numbers = #tpu.dot_dimension_numbers<[1], [0], [0], [1], [0, 0, 1, 1], [], []>} : vector<16x128xf32>, vector<128x128xf32>, vector<16x128xf32> -> vector<16x128xf32>
    %213 = arith.addf %209, %212 : vector<16x128xf32>
    %c17 = arith.constant 17 : index
    %c0_176 = arith.constant 0 : index
    %c0_177 = arith.constant 0 : index
    %214 = vector.load %arg20[%c17, %c0_176, %c0_177] : memref<26x128x128xf32, #tpu.memory_space<vmem>>, vector<1x128x128xf32>
    %215 = vector.shape_cast %214 : vector<1x128x128xf32> to vector<128x128xf32>
    %cst_178 = arith.constant dense<0.000000e+00> : vector<16x128xf32>
    %216 = tpu.matmul %184, %215, %cst_178 {dimension_numbers = #tpu.dot_dimension_numbers<[1], [0], [0], [1], [0, 0, 1, 1], [], []>} : vector<16x128xf32>, vector<128x128xf32>, vector<16x128xf32> -> vector<16x128xf32>
    %217 = arith.addf %213, %216 : vector<16x128xf32>
    %218 = arith.addf %202, %217 : vector<16x128xf32>
    %c18 = arith.constant 18 : index
    %c0_179 = arith.constant 0 : index
    %c0_180 = arith.constant 0 : index
    %219 = vector.load %arg20[%c18, %c0_179, %c0_180] : memref<26x128x128xf32, #tpu.memory_space<vmem>>, vector<1x128x128xf32>
    %220 = vector.shape_cast %219 : vector<1x128x128xf32> to vector<128x128xf32>
    %cst_181 = arith.constant dense<0.000000e+00> : vector<16x128xf32>
    %221 = tpu.matmul %175, %220, %cst_181 {dimension_numbers = #tpu.dot_dimension_numbers<[1], [0], [0], [1], [0, 0, 1, 1], [], []>} : vector<16x128xf32>, vector<128x128xf32>, vector<16x128xf32> -> vector<16x128xf32>
    %c19 = arith.constant 19 : index
    %c0_182 = arith.constant 0 : index
    %c0_183 = arith.constant 0 : index
    %222 = vector.load %arg20[%c19, %c0_182, %c0_183] : memref<26x128x128xf32, #tpu.memory_space<vmem>>, vector<1x128x128xf32>
    %223 = vector.shape_cast %222 : vector<1x128x128xf32> to vector<128x128xf32>
    %cst_184 = arith.constant dense<0.000000e+00> : vector<16x128xf32>
    %224 = tpu.matmul %199, %223, %cst_184 {dimension_numbers = #tpu.dot_dimension_numbers<[1], [0], [0], [1], [0, 0, 1, 1], [], []>} : vector<16x128xf32>, vector<128x128xf32>, vector<16x128xf32> -> vector<16x128xf32>
    %225 = arith.addf %221, %224 : vector<16x128xf32>
    %c20 = arith.constant 20 : index
    %c0_185 = arith.constant 0 : index
    %c0_186 = arith.constant 0 : index
    %226 = vector.load %arg20[%c20, %c0_185, %c0_186] : memref<26x128x128xf32, #tpu.memory_space<vmem>>, vector<1x128x128xf32>
    %227 = vector.shape_cast %226 : vector<1x128x128xf32> to vector<128x128xf32>
    %cst_187 = arith.constant dense<0.000000e+00> : vector<16x128xf32>
    %228 = tpu.matmul %194, %227, %cst_187 {dimension_numbers = #tpu.dot_dimension_numbers<[1], [0], [0], [1], [0, 0, 1, 1], [], []>} : vector<16x128xf32>, vector<128x128xf32>, vector<16x128xf32> -> vector<16x128xf32>
    %229 = arith.addf %225, %228 : vector<16x128xf32>
    %c21 = arith.constant 21 : index
    %c0_188 = arith.constant 0 : index
    %c0_189 = arith.constant 0 : index
    %230 = vector.load %arg20[%c21, %c0_188, %c0_189] : memref<26x128x128xf32, #tpu.memory_space<vmem>>, vector<1x128x128xf32>
    %231 = vector.shape_cast %230 : vector<1x128x128xf32> to vector<128x128xf32>
    %cst_190 = arith.constant dense<0.000000e+00> : vector<16x128xf32>
    %232 = tpu.matmul %184, %231, %cst_190 {dimension_numbers = #tpu.dot_dimension_numbers<[1], [0], [0], [1], [0, 0, 1, 1], [], []>} : vector<16x128xf32>, vector<128x128xf32>, vector<16x128xf32> -> vector<16x128xf32>
    %233 = arith.addf %229, %232 : vector<16x128xf32>
    %234 = vector.broadcast %15 : vector<16x1xf32> to vector<16x128xf32>
    %235 = arith.mulf %234, %233 : vector<16x128xf32>
    %236 = arith.addf %218, %235 : vector<16x128xf32>
    %c22 = arith.constant 22 : index
    %c0_191 = arith.constant 0 : index
    %c0_192 = arith.constant 0 : index
    %237 = vector.load %arg20[%c22, %c0_191, %c0_192] : memref<26x128x128xf32, #tpu.memory_space<vmem>>, vector<1x128x128xf32>
    %238 = vector.shape_cast %237 : vector<1x128x128xf32> to vector<128x128xf32>
    %cst_193 = arith.constant dense<0.000000e+00> : vector<16x128xf32>
    %239 = tpu.matmul %175, %238, %cst_193 {dimension_numbers = #tpu.dot_dimension_numbers<[1], [0], [0], [1], [0, 0, 1, 1], [], []>} : vector<16x128xf32>, vector<128x128xf32>, vector<16x128xf32> -> vector<16x128xf32>
    %c23 = arith.constant 23 : index
    %c0_194 = arith.constant 0 : index
    %c0_195 = arith.constant 0 : index
    %240 = vector.load %arg20[%c23, %c0_194, %c0_195] : memref<26x128x128xf32, #tpu.memory_space<vmem>>, vector<1x128x128xf32>
    %241 = vector.shape_cast %240 : vector<1x128x128xf32> to vector<128x128xf32>
    %cst_196 = arith.constant dense<0.000000e+00> : vector<16x128xf32>
    %242 = tpu.matmul %199, %241, %cst_196 {dimension_numbers = #tpu.dot_dimension_numbers<[1], [0], [0], [1], [0, 0, 1, 1], [], []>} : vector<16x128xf32>, vector<128x128xf32>, vector<16x128xf32> -> vector<16x128xf32>
    %243 = arith.addf %239, %242 : vector<16x128xf32>
    %c24 = arith.constant 24 : index
    %c0_197 = arith.constant 0 : index
    %c0_198 = arith.constant 0 : index
    %244 = vector.load %arg20[%c24, %c0_197, %c0_198] : memref<26x128x128xf32, #tpu.memory_space<vmem>>, vector<1x128x128xf32>
    %245 = vector.shape_cast %244 : vector<1x128x128xf32> to vector<128x128xf32>
    %cst_199 = arith.constant dense<0.000000e+00> : vector<16x128xf32>
    %246 = tpu.matmul %194, %245, %cst_199 {dimension_numbers = #tpu.dot_dimension_numbers<[1], [0], [0], [1], [0, 0, 1, 1], [], []>} : vector<16x128xf32>, vector<128x128xf32>, vector<16x128xf32> -> vector<16x128xf32>
    %247 = arith.addf %243, %246 : vector<16x128xf32>
    %c25 = arith.constant 25 : index
    %c0_200 = arith.constant 0 : index
    %c0_201 = arith.constant 0 : index
    %248 = vector.load %arg20[%c25, %c0_200, %c0_201] : memref<26x128x128xf32, #tpu.memory_space<vmem>>, vector<1x128x128xf32>
    %249 = vector.shape_cast %248 : vector<1x128x128xf32> to vector<128x128xf32>
    %cst_202 = arith.constant dense<0.000000e+00> : vector<16x128xf32>
    %250 = tpu.matmul %184, %249, %cst_202 {dimension_numbers = #tpu.dot_dimension_numbers<[1], [0], [0], [1], [0, 0, 1, 1], [], []>} : vector<16x128xf32>, vector<128x128xf32>, vector<16x128xf32> -> vector<16x128xf32>
    %251 = arith.addf %247, %250 : vector<16x128xf32>
    %252 = vector.broadcast %16 : vector<16x1xf32> to vector<16x128xf32>
    %253 = arith.mulf %252, %251 : vector<16x128xf32>
    %254 = arith.addf %236, %253 : vector<16x128xf32>
    %c1_203 = arith.constant 1 : index
    %c0_204 = arith.constant 0 : index
    %c0_205 = arith.constant 0 : index
    %255 = vector.load %arg21[%c1_203, %c0_204, %c0_205] : memref<2x1x128xf32, #tpu.memory_space<vmem>>, vector<1x1x128xf32>
    %256 = vector.shape_cast %255 : vector<1x1x128xf32> to vector<1x128xf32>
    %257 = vector.broadcast %256 : vector<1x128xf32> to vector<16x128xf32>
    %258 = arith.addf %254, %257 : vector<16x128xf32>
    %c1_206 = arith.constant 1 : index
    %c0_207 = arith.constant 0 : index
    %c0_208 = arith.constant 0 : index
    %259 = vector.load %arg22[%c1_206, %c0_207, %c0_208] : memref<2x128x128xf32, #tpu.memory_space<vmem>>, vector<1x128x128xf32>
    %260 = vector.shape_cast %259 : vector<1x128x128xf32> to vector<128x128xf32>
    %cst_209 = arith.constant dense<0.000000e+00> : vector<16x128xf32>
    %261 = tpu.matmul %258, %260, %cst_209 {dimension_numbers = #tpu.dot_dimension_numbers<[1], [0], [0], [1], [0, 0, 1, 1], [], []>} : vector<16x128xf32>, vector<128x128xf32>, vector<16x128xf32> -> vector<16x128xf32>
    %c1_210 = arith.constant 1 : index
    %c0_211 = arith.constant 0 : index
    %c0_212 = arith.constant 0 : index
    %262 = vector.load %arg23[%c1_210, %c0_211, %c0_212] : memref<2x1x128xf32, #tpu.memory_space<vmem>>, vector<1x1x128xf32>
    %263 = vector.shape_cast %262 : vector<1x1x128xf32> to vector<1x128xf32>
    %264 = vector.broadcast %263 : vector<1x128xf32> to vector<16x128xf32>
    %265 = arith.addf %261, %264 : vector<16x128xf32>
    %cst_213 = arith.constant 0.000000e+00 : f32
    %266 = vector.broadcast %cst_213 : f32 to vector<16x128xf32>
    %267 = arith.maximumf %265, %266 : vector<16x128xf32>
    %c0_214 = arith.constant 0 : index
    %c0_215 = arith.constant 0 : index
    %268 = vector.load %arg24[%c0_214, %c0_215] : memref<16x128xf32, #tpu.memory_space<vmem>>, vector<16x128xf32>
    tpu.vector_store %arg24[%c0_214, %c0_215], %267 {strides = array<i32>} : memref<16x128xf32, #tpu.memory_space<vmem>>, vector<16x128xf32>,
    %c0_216 = arith.constant 0 : index
    %c0_217 = arith.constant 0 : index
    %269 = vector.load %arg6[%c0_216, %c0_217] : memref<2x16xbf16, #tpu.memory_space<vmem>>, vector<2x16xbf16>
    %270 = arith.extf %269 : vector<2x16xbf16> to vector<2x16xf32>
    %cst_218 = arith.constant dense<0.000000e+00> : vector<2x128xf32>
    %271 = tpu.matmul %270, %267, %cst_218 {dimension_numbers = #tpu.dot_dimension_numbers<[1], [0], [0], [1], [0, 0, 1, 1], [], []>} : vector<2x16xf32>, vector<16x128xf32>, vector<2x128xf32> -> vector<2x128xf32>
    %c0_219 = arith.constant 0 : index
    %c0_220 = arith.constant 0 : index
    %272 = vector.load %arg25[%c0_219, %c0_220] : memref<2x128xf32, #tpu.memory_space<vmem>>, vector<2x128xf32>
    tpu.vector_store %arg25[%c0_219, %c0_220], %271 {strides = array<i32>} : memref<2x128xf32, #tpu.memory_space<vmem>>, vector<2x128xf32>,
    return
  }
}

</mosaic_0001>

<bundles_post_ra>
// kernel: tpu_custom_call.1
= control target key start
LH: loop header
LB: loop body
LE: loop exit
PB: predicated region body
PF: predicated region fallthrough
CT: control target
= control target key end

     0   :  { %s9792_s0 = inlined_call_operand.hbm [shape: s32[32], index: 0, kind: input, shape index: {}]   ;;  %s9793_s1 = inlined_call_operand.hbm [shape: f32[16,128], index: 1, kind: input, shape index: {}]   ;;  %s9794_s2 = inlined_call_operand.hbm [shape: f32[32,128], index: 2, kind: input, shape index: {}]   ;;  %s9795_s3 = inlined_call_operand.vmem [shape: bf16[32,16], index: 3, kind: input, shape index: {}]   ;;  %s9796_s4 = inlined_call_operand.vmem [shape: bf16[32,16], index: 4, kind: input, shape index: {}]   ;;  %s9797_s5 = inlined_call_operand.hbm [shape: bf16[16,32], index: 5, kind: input, shape index: {}]   ;;  %s9798_s6 = inlined_call_operand.hbm [shape: bf16[2,16], index: 6, kind: input, shape index: {}]   ;;  %s9799_s7 = inlined_call_operand.vmem [shape: f32[32,1], index: 7, kind: input, shape index: {}]   ;;  %s9800_s8 = inlined_call_operand.vmem [shape: f32[16,1], index: 8, kind: input, shape index: {}]   ;;  %s9801_s9 = inlined_call_operand.vmem [shape: f32[16,1], index: 9, kind: input, shape index: {}]   ;;  %s9802_s10 = inlined_call_operand.vmem [shape: f32[16,1], index: 10, kind: input, shape index: {}]   ;;  %s9803_s11 = inlined_call_operand.vmem [shape: f32[16,1], index: 11, kind: input, shape index: {}]   ;;  %s9804_s12 = inlined_call_operand.hbm [shape: f32[128,128], index: 12, kind: input, shape index: {}]   ;;  %s9805_s13 = inlined_call_operand.hbm [shape: f32[1,128], index: 13, kind: input, shape index: {}]   ;;  %s9806_s14 = inlined_call_operand.hbm [shape: f32[2,128,128], index: 14, kind: input, shape index: {}]   ;;  %s9807_s15 = inlined_call_operand.hbm [shape: f32[2,1,128], index: 15, kind: input, shape index: {}]   ;;  %s9808_s16 = inlined_call_operand.hbm [shape: f32[2,128,128], index: 16, kind: input, shape index: {}]   ;;  %s9809_s17 = inlined_call_operand.hbm [shape: f32[2,128,128], index: 17, kind: input, shape index: {}]   ;;  %s9810_s18 = inlined_call_operand.hbm [shape: f32[2,128,128], index: 18, kind: input, shape index: {}]   ;;  %s9811_s19 = inlined_call_operand.hbm [shape: f32[2,1,128], index: 19, kind: input, shape index: {}]   ;;  %s9812_s20 = inlined_call_operand.hbm [shape: f32[26,128,128], index: 20, kind: input, shape index: {}]   ;;  %s9813_s21 = inlined_call_operand.hbm [shape: f32[2,1,128], index: 21, kind: input, shape index: {}]   ;;  %s9814_s22 = inlined_call_operand.hbm [shape: f32[2,128,128], index: 22, kind: input, shape index: {}]   ;;  %s9815_s23 = inlined_call_operand.hbm [shape: f32[2,1,128], index: 23, kind: input, shape index: {}]   ;;  %s9816_s24 = inlined_call_operand.hbm [shape: f32[16,128], index: 24, kind: output, shape index: {0}]   ;;  %s9817_s25 = inlined_call_operand.hbm [shape: f32[2,128], index: 25, kind: output, shape index: {1}]  }
   0x1   :  { %9833 = sst [smem:[#allocation48_spill]] %s9792_s0 }
   0x2   :  { %9834 = sst [smem:[#allocation49_spill]] %s9793_s1 }
   0x3   :  { %9835 = sst [smem:[#allocation50_spill]] %s9794_s2 }
   0x4   :  { %9836 = sst [smem:[#allocation51_spill]] %s9795_s3 }
   0x5   :  { %9837 = sst [smem:[#allocation52_spill]] %s9796_s4 }
   0x6   :  { %9838 = sst [smem:[#allocation53_spill]] %s9797_s5 }
   0x7   :  { %9839 = sst [smem:[#allocation54_spill]] %s9798_s6 }
   0x8   :  { %9840 = sst [smem:[#allocation55_spill]] %s9799_s7 }
   0x9   :  { %9841 = sst [smem:[#allocation56_spill]] %s9800_s8 }
   0xa   :  { %9842 = sst [smem:[#allocation57_spill]] %s9801_s9 }
   0xb   :  { %31 = vsyncpa [#allocation8], 0 }
   0xc   :  { %32 = vsyncpa [#allocation6], 0 }
   0xd   :  { %33 = vsyncpa [#allocation11], 0 }
   0xe   :  { %34 = vsyncpa [#allocation14], 0 }
   0xf   :  { %35 = vsyncpa [#allocation17], 0 }
  0x10   :  { %36 = vsyncpa [#allocation20], 0 }
  0x11   :  { %37 = vsyncpa [#allocation23], 0 }
  0x12   :  { %38 = vsyncpa [#allocation26], 0 }
  0x13   :  { %39 = vsyncpa [#allocation29], 0 }
  0x14   :  { %40 = vsyncpa [#allocation32], 0 }
  0x15   :  { %41 = vsyncpa [#allocation7], 0 }
  0x16   :  { %42 = vsyncpa [#allocation35], 0  ;;  %s8912_s29 = smov [#allocation10]   ;;  %s8913_s6 = smov [#allocation13]  }
  0x17   :  { %s68_s2 = sshll.u32 %s8912_s29, 4  ;;  %s97_s30 = sshll.u32 %s8913_s6, 4  ;;  %s69_s2 = int_to_ptr.vmem [resolvable:$true] %s68_s2  ;;  %s9073_s30 = int_to_ptr.vmem [resolvable:$true] %s97_s30 }
  0x18   :  { %s9843_s26 = sld [smem:[#allocation50_spill]] }
  0x1e   :  { %s8466_s1 = scalar_lea.hbm %s9843_s26, 512 }
  0x1f   :  { %p8467_p0 = scmp.ne.s32.totalorder %s9843_s26, %s8466_s1  ;;  %p8470_p1 = scmp.lt.u32.totalorder %s8466_s1, %s9843_s26 }
  0x21   :  { %p8472_p2 = pnand %p8470_p1, %p8467_p0 }
  0x23   :  { %8475 = shalt.err (!%p8472_p2)
}
  0x24   :  { %s8476_s9 = scalar_lea.vmem %s69_s2, 512  ;;  %p8481_p4 = scmp.lt.s32.totalorder %s69_s2, %s69_s2 }
  0x25   :  { %p8477_p3 = scmp.ne.s32.totalorder %s69_s2, %s8476_s9  ;;  %p8482_p5 = scmp.lt.s32.totalorder %s8476_s9, %s8476_s9 }
  0x27   :  { %p8483_p6 = por %p8482_p5, %p8481_p4 }
  0x29   :  { %p8484_p7 = pnand %p8483_p6, %p8477_p3 }
  0x2b   :  { %8487 = shalt.err (!%p8484_p7)
}
  0x2c   :  { %s9828_s5 = smov 128   ;;  %s9830_s0 = smov 8  }
  0x2d   :  { %74 = dma.hbm_to_vmem [thread:$0]  %s9843_s26, 512, %s69_s2, [#allocation11], %s9828_s5, %s9828_s5, %s9830_s0  }
  0x2e   :  { %s9844_s1 = sld [smem:[#allocation54_spill]] }
  0x34   :  { %s8488_s8 = scalar_lea.hbm %s9844_s1, 16 }
  0x35   :  { %p8489_p8 = scmp.ne.s32.totalorder %s9844_s1, %s8488_s8  ;;  %p8492_p9 = scmp.lt.u32.totalorder %s8488_s8, %s9844_s1 }
  0x37   :  { %p8494_p10 = pnand %p8492_p9, %p8489_p8 }
  0x39   :  { %8497 = shalt.err (!%p8494_p10)
}
  0x3a   :  { %s8498_s29 = scalar_lea.vmem %s9073_s30, 16  ;;  %s8502_s2 = scalar_lea.vmem %s9073_s30, 32 }
  0x3b   :  { %p8499_p11 = scmp.ne.s32.totalorder %s9073_s30, %s8498_s29  ;;  %p8503_p12 = scmp.lt.s32.totalorder %s9073_s30, %s9073_s30 }
  0x3c   :  { %p8504_p13 = scmp.lt.s32.totalorder %s8502_s2, %s8498_s29 }
  0x3e   :  { %p8505_p0 = por %p8504_p13, %p8503_p12 }
  0x40   :  { %p8506_p1 = pnand %p8505_p0, %p8499_p11 }
  0x42   :  { %8509 = shalt.err (!%p8506_p1)
}
  0x43   :  { %100 = dma.hbm_to_vmem [thread:$0]  %s9844_s1, 16, %s9073_s30, [#allocation14]  }
  0x44   :  { %s8916_s7 = smov [#allocation16]   ;;  %s8917_s8 = smov [#allocation19]  }
  0x45   :  { %s129_s3 = sshll.u32 %s8916_s7, 4  ;;  %s150_s27 = sshll.u32 %s8917_s8, 4  ;;  %s130_s3 = int_to_ptr.vmem [resolvable:$true] %s129_s3  ;;  %s9108_s27 = int_to_ptr.vmem [resolvable:$true] %s150_s27 }
  0x46   :  { %s8510_s9 = scalar_lea.hbm %s9805_s13, 16 }
  0x47   :  { %p8511_p2 = scmp.ne.s32.totalorder %s9805_s13, %s8510_s9  ;;  %p8514_p3 = scmp.lt.u32.totalorder %s8510_s9, %s9805_s13 }
  0x49   :  { %p8516_p4 = pnand %p8514_p3, %p8511_p2 }
  0x4b   :  { %8519 = shalt.err (!%p8516_p4)
}
  0x4c   :  { %s8520_s30 = scalar_lea.vmem %s130_s3, 16  ;;  %s8524_s1 = scalar_lea.vmem %s130_s3, 32 }
  0x4d   :  { %p8521_p5 = scmp.ne.s32.totalorder %s130_s3, %s8520_s30  ;;  %p8525_p6 = scmp.lt.s32.totalorder %s130_s3, %s130_s3 }
  0x4e   :  { %p8526_p7 = scmp.lt.s32.totalorder %s8524_s1, %s8520_s30 }
  0x50   :  { %p8527_p8 = por %p8526_p7, %p8525_p6 }
  0x52   :  { %p8528_p9 = pnand %p8527_p8, %p8521_p5 }
  0x54   :  { %8531 = shalt.err (!%p8528_p9)
}
  0x55   :  { %132 = dma.hbm_to_vmem [thread:$0]  %s9805_s13, 16, %s130_s3, [#allocation17]  }
  0x56   :  { %s8532_s4 = scalar_lea.hbm %s9807_s15, 32 }
  0x57   :  { %p8533_p10 = scmp.ne.s32.totalorder %s9807_s15, %s8532_s4  ;;  %p8536_p11 = scmp.lt.u32.totalorder %s8532_s4, %s9807_s15 }
  0x59   :  { %p8538_p12 = pnand %p8536_p11, %p8533_p10 }
  0x5b   :  { %8541 = shalt.err (!%p8538_p12)
}
  0x5c   :  { %s8542_s29 = scalar_lea.vmem %s9108_s27, 32  ;;  %p8547_p0 = scmp.lt.s32.totalorder %s9108_s27, %s9108_s27 }
  0x5d   :  { %p8543_p13 = scmp.ne.s32.totalorder %s9108_s27, %s8542_s29  ;;  %p8548_p1 = scmp.lt.s32.totalorder %s8542_s29, %s8542_s29 }
  0x5f   :  { %p8549_p2 = por %p8548_p1, %p8547_p0 }
  0x61   :  { %p8550_p3 = pnand %p8549_p2, %p8543_p13 }
  0x63   :  { %8553 = shalt.err (!%p8550_p3)
}
  0x64   :  { %s9832_s13 = smov 16   ;;  %s8919_s3 = smov 1  }
  0x65   :  { %156 = dma.hbm_to_vmem [thread:$0]  %s9807_s15, 32, %s9108_s27, [#allocation20], %s9832_s13, %s9832_s13, %s8919_s3  }
  0x66   :  { %s8920_s1 = smov [#allocation22]   ;;  %s8921_s6 = smov [#allocation25]  }
  0x67   :  { %s174_s26 = sshll.u32 %s8920_s1, 4  ;;  %s198_s7 = sshll.u32 %s8921_s6, 4  ;;  %s175_s26 = int_to_ptr.vmem [resolvable:$true] %s174_s26  ;;  %s9142_s7 = int_to_ptr.vmem [resolvable:$true] %s198_s7 }
  0x68   :  { %s8554_s5 = scalar_lea.hbm %s9809_s17, 4096 }
  0x69   :  { %p8555_p4 = scmp.ne.s32.totalorder %s9809_s17, %s8554_s5  ;;  %p8558_p5 = scmp.lt.u32.totalorder %s8554_s5, %s9809_s17 }
  0x6b   :  { %p8560_p6 = pnand %p8558_p5, %p8555_p4 }
  0x6d   :  { %8563 = shalt.err (!%p8560_p6)
}
  0x6e   :  { %s8564_s15 = scalar_lea.vmem %s175_s26, 4096  ;;  %p8569_p8 = scmp.lt.s32.totalorder %s175_s26, %s175_s26 }
  0x6f   :  { %p8565_p7 = scmp.ne.s32.totalorder %s175_s26, %s8564_s15  ;;  %p8570_p9 = scmp.lt.s32.totalorder %s8564_s15, %s8564_s15 }
  0x71   :  { %p8571_p10 = por %p8570_p9, %p8569_p8 }
  0x73   :  { %p8572_p11 = pnand %p8571_p10, %p8565_p7 }
  0x75   :  { %8575 = shalt.err (!%p8572_p11)
}
  0x76   :  { %s9845_s27 = smov 8   ;;  %s9846_s2 = smov 128  }
  0x77   :  { %180 = dma.hbm_to_vmem [thread:$0]  %s9809_s17, 4096, %s175_s26, [#allocation23], %s9846_s2, %s9846_s2, %s9845_s27  }
  0x78   :  { %s8576_s4 = scalar_lea.hbm %s9811_s19, 32 }
  0x79   :  { %p8577_p12 = scmp.ne.s32.totalorder %s9811_s19, %s8576_s4  ;;  %p8580_p13 = scmp.lt.u32.totalorder %s8576_s4, %s9811_s19 }
  0x7b   :  { %p8582_p0 = pnand %p8580_p13, %p8577_p12 }
  0x7d   :  { %8585 = shalt.err (!%p8582_p0)
}
  0x7e   :  { %s8586_s29 = scalar_lea.vmem %s9142_s7, 32  ;;  %p8591_p2 = scmp.lt.s32.totalorder %s9142_s7, %s9142_s7 }
  0x7f   :  { %p8587_p1 = scmp.ne.s32.totalorder %s9142_s7, %s8586_s29  ;;  %p8592_p3 = scmp.lt.s32.totalorder %s8586_s29, %s8586_s29 }
  0x81   :  { %p8593_p4 = por %p8592_p3, %p8591_p2 }
  0x83   :  { %p8594_p5 = pnand %p8593_p4, %p8587_p1 }
  0x85   :  { %8597 = shalt.err (!%p8594_p5)
}
  0x86   :  { %204 = dma.hbm_to_vmem [thread:$0]  %s9811_s19, 32, %s9142_s7, [#allocation26], %s9832_s13, %s9832_s13, %s8919_s3  }
  0x87   :  { %s8922_s15 = smov [#allocation28]   ;;  %s8923_s1 = smov [#allocation9]  }
  0x88   :  { %s222_s30 = sshll.u32 %s8922_s15, 4  ;;  %s56_s6 = sshll.u32 %s8923_s1, 4  ;;  %s223_s30 = int_to_ptr.vmem [resolvable:$true] %s222_s30  ;;  %s57_s6 = int_to_ptr.vmem [resolvable:$true] %s56_s6 }
  0x89   :  { %s8598_s5 = scalar_lea.hbm %s9813_s21, 32 }
  0x8a   :  { %p8599_p6 = scmp.ne.s32.totalorder %s9813_s21, %s8598_s5  ;;  %p8602_p7 = scmp.lt.u32.totalorder %s8598_s5, %s9813_s21 }
  0x8c   :  { %p8604_p8 = pnand %p8602_p7, %p8599_p6 }
  0x8e   :  { %8607 = shalt.err (!%p8604_p8)
}
  0x8f   :  { %s8608_s19 = scalar_lea.vmem %s223_s30, 32  ;;  %p8613_p10 = scmp.lt.s32.totalorder %s223_s30, %s223_s30 }
  0x90   :  { %p8609_p9 = scmp.ne.s32.totalorder %s223_s30, %s8608_s19  ;;  %p8614_p11 = scmp.lt.s32.totalorder %s8608_s19, %s8608_s19 }
  0x92   :  { %p8615_p12 = por %p8614_p11, %p8613_p10 }
  0x94   :  { %p8616_p13 = pnand %p8615_p12, %p8609_p9 }
  0x96   :  { %8619 = shalt.err (!%p8616_p13)
}
  0x97   :  { %228 = dma.hbm_to_vmem [thread:$0]  %s9813_s21, 32, %s223_s30, [#allocation29], %s9832_s13, %s9832_s13, %s8919_s3  }
  0x98   :  { %s9847_s1 = sld [smem:[#allocation48_spill]] }
  0x9e   :  { %s8620_s8 = scalar_lea.hbm %s9847_s1, 16 }
  0x9f   :  { %p8621_p0 = scmp.ne.s32.totalorder %s9847_s1, %s8620_s8  ;;  %p8624_p1 = scmp.lt.u32.totalorder %s8620_s8, %s9847_s1 }
  0xa1   :  { %p8626_p2 = pnand %p8624_p1, %p8621_p0 }
  0xa3   :  { %8629 = shalt.err (!%p8626_p2)
}
  0xa4   :  { %s8924_s9 = smov [#allocation5]   ;;  %s9848_s7 = sld [smem:[#allocation49_spill]] }
  0xa5   :  { %50 = dma.hbm_to_smem %s9847_s1, 16, %s8924_s9, [#allocation8]  }
  0xaa   :  { %s8630_s17 = scalar_lea.hbm %s9848_s7, 256 }
  0xab   :  { %p8631_p3 = scmp.ne.s32.totalorder %s9848_s7, %s8630_s17  ;;  %p8634_p4 = scmp.lt.u32.totalorder %s8630_s17, %s9848_s7 }
  0xad   :  { %p8636_p5 = pnand %p8634_p4, %p8631_p3 }
  0xaf   :  { %8639 = shalt.err (!%p8636_p5)
}
  0xb0   :  { %s8640_s8 = scalar_lea.vmem %s57_s6, 256  ;;  %p8645_p7 = scmp.lt.s32.totalorder %s57_s6, %s57_s6 }
  0xb1   :  { %p8641_p6 = scmp.ne.s32.totalorder %s57_s6, %s8640_s8  ;;  %p8646_p8 = scmp.lt.s32.totalorder %s8640_s8, %s8640_s8 }
  0xb3   :  { %p8647_p9 = por %p8646_p8, %p8645_p7 }
  0xb5   :  { %p8648_p10 = pnand %p8647_p9, %p8641_p6 }
  0xb7   :  { %8651 = shalt.err (!%p8648_p10)
}
  0xb8   :  { %62 = dma.hbm_to_vmem [thread:$0]  %s9848_s7, 256, %s57_s6, [#allocation6], %s9846_s2, %s9846_s2, %s9845_s27  }
  0xb9   :  { %s8925_s28 = smov [#allocation12]   ;;  %s9849_s21 = sld [smem:[#allocation53_spill]] }
  0xba   :  { %s84_s9 = sshll.u32 %s8925_s28, 4  ;;  %s85_s9 = int_to_ptr.vmem [resolvable:$true] %s84_s9 }
  0xbf   :  { %s8652_s30 = scalar_lea.hbm %s9849_s21, 128 }
  0xc0   :  { %p8653_p11 = scmp.ne.s32.totalorder %s9849_s21, %s8652_s30  ;;  %p8656_p12 = scmp.lt.u32.totalorder %s8652_s30, %s9849_s21 }
  0xc2   :  { %p8658_p13 = pnand %p8656_p12, %p8653_p11 }
  0xc4   :  { %8661 = shalt.err (!%p8658_p13)
}
  0xc5   :  { %s8662_s5 = scalar_lea.vmem %s85_s9, 128  ;;  %p8667_p1 = scmp.lt.s32.totalorder %s85_s9, %s85_s9 }
  0xc6   :  { %p8663_p0 = scmp.ne.s32.totalorder %s85_s9, %s8662_s5  ;;  %p8668_p2 = scmp.lt.s32.totalorder %s8662_s5, %s8662_s5 }
  0xc8   :  { %p8669_p3 = por %p8668_p2, %p8667_p1 }
  0xca   :  { %p8670_p4 = pnand %p8669_p3, %p8663_p0 }
  0xcc   :  { %8673 = shalt.err (!%p8670_p4)
}
  0xcd   :  { %s8926_s6 = smov 64   ;;  %s8927_s7 = smov 4  }
  0xce   :  { %90 = dma.hbm_to_vmem [thread:$0]  %s9849_s21, 128, %s85_s9, [#allocation11], %s8926_s6, %s8926_s6, %s8927_s7  }
  0xcf   :  { %s8928_s0 = smov [#allocation15]   ;;  %s8929_s29 = smov [#allocation18]  }
  0xd0   :  { %s116_s28 = sshll.u32 %s8928_s0, 4  ;;  %s138_s19 = sshll.u32 %s8929_s29, 4  ;;  %s117_s28 = int_to_ptr.vmem [resolvable:$true] %s116_s28  ;;  %s9233_s19 = int_to_ptr.vmem [resolvable:$true] %s138_s19 }
  0xd1   :  { %s8674_s26 = scalar_lea.hbm %s9804_s12, 2048 }
  0xd2   :  { %p8675_p5 = scmp.ne.s32.totalorder %s9804_s12, %s8674_s26  ;;  %p8678_p6 = scmp.lt.u32.totalorder %s8674_s26, %s9804_s12 }
  0xd4   :  { %p8680_p7 = pnand %p8678_p6, %p8675_p5 }
  0xd6   :  { %8683 = shalt.err (!%p8680_p7)
}
  0xd7   :  { %s8684_s9 = scalar_lea.vmem %s117_s28, 2048  ;;  %p8689_p9 = scmp.lt.s32.totalorder %s117_s28, %s117_s28 }
  0xd8   :  { %p8685_p8 = scmp.ne.s32.totalorder %s117_s28, %s8684_s9  ;;  %p8690_p10 = scmp.lt.s32.totalorder %s8684_s9, %s8684_s9 }
  0xda   :  { %p8691_p11 = por %p8690_p10, %p8689_p9 }
  0xdc   :  { %p8692_p12 = pnand %p8691_p11, %p8685_p8 }
  0xde   :  { %8695 = shalt.err (!%p8692_p12)
}
  0xdf   :  { %122 = dma.hbm_to_vmem [thread:$0]  %s9804_s12, 2048, %s117_s28, [#allocation14], %s9846_s2, %s9846_s2, %s9845_s27  }
  0xe0   :  { %s8696_s13 = scalar_lea.hbm %s9806_s14, 4096 }
  0xe1   :  { %p8697_p13 = scmp.ne.s32.totalorder %s9806_s14, %s8696_s13  ;;  %p8700_p0 = scmp.lt.u32.totalorder %s8696_s13, %s9806_s14 }
  0xe3   :  { %p8702_p1 = pnand %p8700_p0, %p8697_p13 }
  0xe5   :  { %8705 = shalt.err (!%p8702_p1)
}
  0xe6   :  { %s8706_s17 = scalar_lea.vmem %s9233_s19, 4096  ;;  %p8711_p3 = scmp.lt.s32.totalorder %s9233_s19, %s9233_s19 }
  0xe7   :  { %p8707_p2 = scmp.ne.s32.totalorder %s9233_s19, %s8706_s17  ;;  %p8712_p4 = scmp.lt.s32.totalorder %s8706_s17, %s8706_s17 }
  0xe9   :  { %p8713_p5 = por %p8712_p4, %p8711_p3 }
  0xeb   :  { %p8714_p6 = pnand %p8713_p5, %p8707_p2 }
  0xed   :  { %8717 = shalt.err (!%p8714_p6)
}
  0xee   :  { %144 = dma.hbm_to_vmem [thread:$0]  %s9806_s14, 4096, %s9233_s19, [#allocation17], %s9846_s2, %s9846_s2, %s9845_s27  }
  0xef   :  { %s8930_s26 = smov [#allocation21]   ;;  %s8931_s4 = smov [#allocation24]  }
  0xf0   :  { %s162_s15 = sshll.u32 %s8930_s26, 4  ;;  %s186_s5 = sshll.u32 %s8931_s4, 4  ;;  %s163_s15 = int_to_ptr.vmem [resolvable:$true] %s162_s15  ;;  %s9270_s5 = int_to_ptr.vmem [resolvable:$true] %s186_s5 }
  0xf1   :  { %s8718_s6 = scalar_lea.hbm %s9808_s16, 4096 }
  0xf2   :  { %p8719_p7 = scmp.ne.s32.totalorder %s9808_s16, %s8718_s6  ;;  %p8722_p8 = scmp.lt.u32.totalorder %s8718_s6, %s9808_s16 }
  0xf4   :  { %p8724_p9 = pnand %p8722_p8, %p8719_p7 }
  0xf6   :  { %8727 = shalt.err (!%p8724_p9)
}
  0xf7   :  { %s8728_s14 = scalar_lea.vmem %s163_s15, 4096  ;;  %p8733_p11 = scmp.lt.s32.totalorder %s163_s15, %s163_s15 }
  0xf8   :  { %p8729_p10 = scmp.ne.s32.totalorder %s163_s15, %s8728_s14  ;;  %p8734_p12 = scmp.lt.s32.totalorder %s8728_s14, %s8728_s14 }
  0xfa   :  { %p8735_p13 = por %p8734_p12, %p8733_p11 }
  0xfc   :  { %p8736_p0 = pnand %p8735_p13, %p8729_p10 }
  0xfe   :  { %8739 = shalt.err (!%p8736_p0)
}
  0xff   :  { %168 = dma.hbm_to_vmem [thread:$0]  %s9808_s16, 4096, %s163_s15, [#allocation20], %s9846_s2, %s9846_s2, %s9845_s27  }
 0x100   :  { %s8740_s17 = scalar_lea.hbm %s9810_s18, 4096 }
 0x101   :  { %p8741_p1 = scmp.ne.s32.totalorder %s9810_s18, %s8740_s17  ;;  %p8744_p2 = scmp.lt.u32.totalorder %s8740_s17, %s9810_s18 }
 0x103   :  { %p8746_p3 = pnand %p8744_p2, %p8741_p1 }
 0x105   :  { %8749 = shalt.err (!%p8746_p3)
}
 0x106   :  { %s8750_s9 = scalar_lea.vmem %s9270_s5, 4096  ;;  %p8755_p5 = scmp.lt.s32.totalorder %s9270_s5, %s9270_s5 }
 0x107   :  { %p8751_p4 = scmp.ne.s32.totalorder %s9270_s5, %s8750_s9  ;;  %p8756_p6 = scmp.lt.s32.totalorder %s8750_s9, %s8750_s9 }
 0x109   :  { %p8757_p7 = por %p8756_p6, %p8755_p5 }
 0x10b   :  { %p8758_p8 = pnand %p8757_p7, %p8751_p4 }
 0x10d   :  { %8761 = shalt.err (!%p8758_p8)
}
 0x10e   :  { %192 = dma.hbm_to_vmem [thread:$0]  %s9810_s18, 4096, %s9270_s5, [#allocation23], %s9846_s2, %s9846_s2, %s9845_s27  }
 0x10f   :  { %s8932_s21 = smov [#allocation27]   ;;  %s8933_s7 = smov [#allocation30]  }
 0x110   :  { %s210_s6 = sshll.u32 %s8932_s21, 4  ;;  %s234_s8 = sshll.u32 %s8933_s7, 4  ;;  %s211_s6 = int_to_ptr.vmem [resolvable:$true] %s210_s6  ;;  %s9307_s8 = int_to_ptr.vmem [resolvable:$true] %s234_s8 }
 0x111   :  { %s8762_s14 = scalar_lea.hbm %s9812_s20, 53248 }
 0x112   :  { %p8763_p9 = scmp.ne.s32.totalorder %s9812_s20, %s8762_s14  ;;  %p8766_p10 = scmp.lt.u32.totalorder %s8762_s14, %s9812_s20 }
 0x114   :  { %p8768_p11 = pnand %p8766_p10, %p8763_p9 }
 0x116   :  { %8771 = shalt.err (!%p8768_p11)
}
 0x117   :  { %s8772_s18 = scalar_lea.vmem %s211_s6, 53248  ;;  %p8777_p13 = scmp.lt.s32.totalorder %s211_s6, %s211_s6 }
 0x118   :  { %p8773_p12 = scmp.ne.s32.totalorder %s211_s6, %s8772_s18  ;;  %p8778_p0 = scmp.lt.s32.totalorder %s8772_s18, %s8772_s18 }
 0x11a   :  { %p8779_p1 = por %p8778_p0, %p8777_p13 }
 0x11c   :  { %p8780_p2 = pnand %p8779_p1, %p8773_p12 }
 0x11e   :  { %8783 = shalt.err (!%p8780_p2)
}
 0x11f   :  { %216 = dma.hbm_to_vmem [thread:$0]  %s9812_s20, 53248, %s211_s6, [#allocation26], %s9846_s2, %s9846_s2, %s9845_s27  }
 0x120   :  { %s8784_s26 = scalar_lea.hbm %s9814_s22, 4096 }
 0x121   :  { %p8785_p3 = scmp.ne.s32.totalorder %s9814_s22, %s8784_s26  ;;  %p8788_p4 = scmp.lt.u32.totalorder %s8784_s26, %s9814_s22 }
 0x123   :  { %p8790_p5 = pnand %p8788_p4, %p8785_p3 }
 0x125   :  { %8793 = shalt.err (!%p8790_p5)
}
 0x126   :  { %s8794_s21 = scalar_lea.vmem %s9307_s8, 4096  ;;  %p8799_p7 = scmp.lt.s32.totalorder %s9307_s8, %s9307_s8 }
 0x127   :  { %p8795_p6 = scmp.ne.s32.totalorder %s9307_s8, %s8794_s21  ;;  %p8800_p8 = scmp.lt.s32.totalorder %s8794_s21, %s8794_s21 }
 0x129   :  { %p8801_p9 = por %p8800_p8, %p8799_p7 }
 0x12b   :  { %p8802_p10 = pnand %p8801_p9, %p8795_p6 }
 0x12d   :  { %8805 = shalt.err (!%p8802_p10)
}
 0x12e   :  { %240 = dma.hbm_to_vmem [thread:$0]  %s9814_s22, 4096, %s9307_s8, [#allocation29], %s9846_s2, %s9846_s2, %s9845_s27  }
 0x12f   :  { %s8934_s7 = smov [#allocation31]   ;;  %s8806_s19 = scalar_lea.hbm %s9815_s23, 32 }
 0x130   :  { %s246_s13 = sshll.u32 %s8934_s7, 4  ;;  %p8807_p11 = scmp.ne.s32.totalorder %s9815_s23, %s8806_s19  ;;  %s247_s13 = int_to_ptr.vmem [resolvable:$true] %s246_s13 }
 0x131   :  { %p8810_p12 = scmp.lt.u32.totalorder %s8806_s19, %s9815_s23 }
 0x133   :  { %p8812_p13 = pnand %p8810_p12, %p8807_p11 }
 0x135   :  { %8815 = shalt.err (!%p8812_p13)
}
 0x136   :  { %s8816_s5 = scalar_lea.vmem %s247_s13, 32  ;;  %p8821_p1 = scmp.lt.s32.totalorder %s247_s13, %s247_s13 }
 0x137   :  { %p8817_p0 = scmp.ne.s32.totalorder %s247_s13, %s8816_s5  ;;  %p8822_p2 = scmp.lt.s32.totalorder %s8816_s5, %s8816_s5 }
 0x139   :  { %p8823_p3 = por %p8822_p2, %p8821_p1 }
 0x13b   :  { %p8824_p4 = pnand %p8823_p3, %p8817_p0 }
 0x13d   :  { %8827 = shalt.err (!%p8824_p4)
}
 0x13e   :  { %s9850_s22 = smov 16  }
 0x13f   :  { %252 = dma.hbm_to_vmem [thread:$0]  %s9815_s23, 32, %s247_s13, [#allocation32], %s9850_s22, %s9850_s22, %s8919_s3  }
 0x140   :  { %8880 = dma.done.wait [#allocation8], 16  }
 0x141   :  { %8881 = vsyncadd [#allocation8], 4294967280 }
 0x142   :  { %8882 = dma.done.wait [#allocation6], 256  }
 0x143   :  { %8883 = vsyncadd [#allocation6], 4294967040 }
 0x144   :  { %8884 = dma.done.wait [#allocation11], 640  }
 0x145   :  { %8885 = vsyncadd [#allocation11], 4294966656 }
 0x146   :  { %8886 = dma.done.wait [#allocation14], 2064  }
 0x147   :  { %8887 = vsyncadd [#allocation14], 4294965232 }
 0x148   :  { %8888 = dma.done.wait [#allocation17], 4112  }
 0x149   :  { %8889 = vsyncadd [#allocation17], 4294963184 }
 0x14a   :  { %8890 = dma.done.wait [#allocation20], 4128  }
 0x14b   :  { %8891 = vsyncadd [#allocation20], 4294963168 }
 0x14c   :  { %8892 = dma.done.wait [#allocation23], 8192  }
 0x14d   :  { %8893 = vsyncadd [#allocation23], 4294959104 }
 0x14e   :  { %8894 = dma.done.wait [#allocation26], 53280  }
 0x14f   :  { %8895 = vsyncadd [#allocation26], 4294914016 }
 0x150   :  { %8896 = dma.done.wait [#allocation29], 4128  }
 0x151   :  { %8897 = vsyncadd [#allocation29], 4294963168 }
 0x152   :  { %8898 = dma.done.wait [#allocation32], 32  }
 0x153   :  { %8899 = vsyncadd [#allocation32], 4294967264 }
 0x154   :  { %304 = sfence }
 0x155   :  { %v307_v0 = vld [vmem:[#allocation15] sm:$0xff]  ;;  %v308_v1 = vld [vmem:[#allocation15 + $0x8] sm:$0xff]  ;;  %v309_v2 = vld [vmem:[#allocation15 + $0x10] sm:$0xff]  ;;  %s9851_s8 = sld [smem:[#allocation57_spill]]  ;;  %s9852_s6 = sld [smem:[#allocation51_spill]]  ;;  %vm733_vm2 = vcmask 130048  }
 0x156   :  { %v7116_v3 = vpack.c.bf16 %v308_v1, %v307_v0  ;;  %v310_v4 = vld [vmem:[#allocation15 + $0x18] sm:$0xff]  ;;  %v311_v6 = vld [vmem:[#allocation15 + $0x20] sm:$0xff]  ;;  %v312_v7 = vld [vmem:[#allocation15 + $0x28] sm:$0xff]  ;;  %s9853_s1 = sld [smem:[#allocation52_spill]]  ;;  %s9854_s0 = sld [smem:[#allocation55_spill]]  ;;  %vm1072_vm3 = vcmask 261120  }
 0x157   :  { %v7120_v5 = vpack.c.bf16 %v310_v4, %v309_v2  ;;  %v7124_v8 = vpack.c.bf16 %v312_v7, %v311_v6  ;;  %v313_v9 = vld [vmem:[#allocation15 + $0x30] sm:$0xff]  ;;  %v314_v10 = vld [vmem:[#allocation15 + $0x38] sm:$0xff]  ;;  %v305_v11 = vld [vmem:[#allocation9] sm:$0xff]  ;;  %s9855_s3 = sld [smem:[#allocation56_spill]]  ;;  %s8904_s9 = smov 0  }
 0x158   :  { %7117 = vmatprep.subr.bf16.mxu1 %v7116_v3  ;;  %5750 = vmatprep.mubr.f32.mxu1 %v305_v11  ;;  %v9372_v14 = vld [vmem:[%s9802_s10] sm:$0xff]  ;;  %v9377_v15 = vld [vmem:[%s9802_s10 + $0x8] sm:$0xff]  ;;  %v7128_v18 = vpack.c.bf16 %v314_v10, %v313_v9  ;;  %v318_v24 = vld [vmem:[#allocation15 + $0x58] sm:$0xff] }
 0x159   :  { %7119 = vmatpush3.bf16.msra.mxu1 %v7116_v3  ;;  %v9382_v16 = vld [vmem:[%s9803_s11] sm:$0xff]  ;;  %v9387_v17 = vld [vmem:[%s9803_s11 + $0x8] sm:$0xff]  ;;  %v554_v28 = vld [vmem:[#allocation21 + $0x18] sm:$0xff] }
 0x15a   :  { %7121 = vmatprep.subr.bf16.mxu1 %v7120_v5  ;;  %vm441_vm0 = vcmp.gt.f32.partialorder %v9382_v16, 0.0  ;;  %vm442_vm1 = vcmp.gt.f32.partialorder %v9387_v17, 0.0  ;;  %v315_v19 = vld [vmem:[#allocation15 + $0x40] sm:$0xff]  ;;  %v316_v20 = vld [vmem:[#allocation15 + $0x48] sm:$0xff]  ;;  %v317_v23 = vld [vmem:[#allocation15 + $0x50] sm:$0xff] }
 0x15b   :  { %v9362_v12 = vld [vmem:[%s9851_s8] sm:$0xff]  ;;  %v9367_v13 = vld [vmem:[%s9851_s8 + $0x8] sm:$0xff]  ;;  %v7132_v21 = vpack.c.bf16 %v316_v20, %v315_v19  ;;  %v7136_v31 = vpack.c.bf16 %v318_v24, %v317_v23  ;;  %v558_v37 = vld [vmem:[#allocation21 + $0x38] sm:$0xff] }
 0x15c   :  { %v551_v22 = vld [vmem:[#allocation21] sm:$0xff]  ;;  %v552_v25 = vld [vmem:[#allocation21 + $0x8] sm:$0xff]  ;;  %v553_v27 = vld [vmem:[#allocation21 + $0x10] sm:$0xff] }
 0x15d   :  { %7123 = vmatpush3.bf16.msra.mxu1 %v7120_v5  ;;  %v7180_v26 = vpack.c.bf16 %v552_v25, %v551_v22  ;;  %v7184_v29 = vpack.c.bf16 %v554_v28, %v553_v27  ;;  %v555_v30 = vld [vmem:[#allocation21 + $0x20] sm:$0xff]  ;;  %v556_v32 = vld [vmem:[#allocation21 + $0x28] sm:$0xff]  ;;  %v557_v36 = vld [vmem:[#allocation21 + $0x30] sm:$0xff] }
 0x15e   :  { %7125 = vmatprep.subr.bf16.mxu1 %v7124_v8  ;;  %v319_v33 = vld [vmem:[#allocation15 + $0x60] sm:$0xff]  ;;  %v320_v34 = vld [vmem:[#allocation15 + $0x68] sm:$0xff]  ;;  %v7188_v35 = vpack.c.bf16 %v556_v32, %v555_v30  ;;  %v321_v39 = vld [vmem:[#allocation15 + $0x70] sm:$0xff]  ;;  %v7192_v41 = vpack.c.bf16 %v558_v37, %v557_v36 }
 0x15f   :  { %7181 = vmatprep.subr.bf16.mxu0 %v7180_v26  ;;  %v7140_v38 = vpack.c.bf16 %v320_v34, %v319_v33  ;;  %v322_v40 = vld [vmem:[#allocation15 + $0x78] sm:$0xff]  ;;  %v559_v42 = vld [vmem:[#allocation21 + $0x40] sm:$0xff]  ;;  %v560_v43 = vld [vmem:[#allocation21 + $0x48] sm:$0xff] }
 0x160   :  { %7183 = vmatpush3.bf16.msra.mxu0 %v7180_v26  ;;  %v7144_v44 = vpack.c.bf16 %v322_v40, %v321_v39  ;;  %v443_v45 = vld [vmem:[#allocation18] sm:$0xff]  ;;  %v444_v46 = vld [vmem:[#allocation18 + $0x8] sm:$0xff]  ;;  %v7196_v47 = vpack.c.bf16 %v560_v43, %v559_v42  ;;  %v561_v48 = vld [vmem:[#allocation21 + $0x50] sm:$0xff] }
 0x161   :  { %7127 = vmatpush3.bf16.msra.mxu1 %v7124_v8  ;;  %7185 = vmatprep.subr.bf16.mxu0 %v7184_v29  ;;  %v562_v49 = vld [vmem:[#allocation21 + $0x58] sm:$0xff]  ;;  %v7148_v50 = vpack.c.bf16 %v444_v46, %v443_v45  ;;  %v445_v51 = vld [vmem:[#allocation18 + $0x10] sm:$0xff]  ;;  %v563_v55 = vld [vmem:[#allocation21 + $0x60] sm:$0xff] }
 0x162   :  { %7129 = vmatprep.subr.bf16.mxu1 %v7128_v18  ;;  %v446_v52 = vld [vmem:[#allocation18 + $0x18] sm:$0xff]  ;;  %v7200_v53 = vpack.c.bf16 %v562_v49, %v561_v48  ;;  %v306_v54 = vld [vmem:[#allocation9 + $0x8] sm:$0xff]  ;;  %v447_v59 = vld [vmem:[#allocation18 + $0x20] sm:$0xff] }
 0x163   :  { %v564_v56 = vld [vmem:[#allocation21 + $0x68] sm:$0xff]  ;;  %v7152_v57 = vpack.c.bf16 %v446_v52, %v445_v51  ;;  %v9391_v58 = vld [vmem:[#allocation10] sm:$0xff]  ;;  %v451_v2 = vld [vmem:[#allocation18 + $0x40] sm:$0xff] }
 0x164   :  { %7187 = vmatpush3.bf16.msra.mxu0 %v7184_v29  ;;  %v448_v60 = vld [vmem:[#allocation18 + $0x28] sm:$0xff]  ;;  %v7204_v61 = vpack.c.bf16 %v564_v56, %v563_v55  ;;  %v449_v63 = vld [vmem:[#allocation18 + $0x30] sm:$0xff]  ;;  %v450_v0 = vld [vmem:[#allocation18 + $0x38] sm:$0xff] }
 0x165   :  { %7131 = vmatpush3.bf16.msra.mxu1 %v7128_v18  ;;  %7189 = vmatprep.subr.bf16.mxu0 %v7188_v35  ;;  %v7156_v62 = vpack.c.bf16 %v448_v60, %v447_v59  ;;  %v7160_v1 = vpack.c.bf16 %v450_v0, %v449_v63  ;;  %v452_v3 = vld [vmem:[#allocation18 + $0x48] sm:$0xff]  ;;  %v453_v5 = vld [vmem:[#allocation18 + $0x50] sm:$0xff]  ;;  %v454_v6 = vld [vmem:[#allocation18 + $0x58] sm:$0xff] }
 0x166   :  { %7133 = vmatprep.subr.bf16.mxu1 %v7132_v21  ;;  %v7164_v4 = vpack.c.bf16 %v452_v3, %v451_v2  ;;  %v7168_v7 = vpack.c.bf16 %v454_v6, %v453_v5  ;;  %v455_v8 = vld [vmem:[#allocation18 + $0x60] sm:$0xff]  ;;  %v456_v9 = vld [vmem:[#allocation18 + $0x68] sm:$0xff]  ;;  %v457_v11 = vld [vmem:[#allocation18 + $0x70] sm:$0xff]  ;;  %v8935_v2 = vmov 0  }
 0x167   :  { %v7172_v10 = vpack.c.bf16 %v456_v9, %v455_v8  ;;  %v458_v18 = vld [vmem:[#allocation18 + $0x78] sm:$0xff]  ;;  %v642_v20 = vld [vmem:[#allocation22] sm:$0xff]  ;;  %v647_v28 = vld [vmem:[#allocation22 + $0x28] sm:$0xff]  ;;  %8454 = vset.pattern.permute.xlu0 %v8935_v2  ;;  %8455 = vset.pattern.permute.xlu1 %v8935_v2 }
 0x168   :  { %7191 = vmatpush3.bf16.msra.mxu0 %v7188_v35  ;;  %v7176_v19 = vpack.c.bf16 %v458_v18, %v457_v11  ;;  %v644_v23 = vld [vmem:[#allocation22 + $0x10] sm:$0xff]  ;;  %v645_v24 = vld [vmem:[#allocation22 + $0x18] sm:$0xff]  ;;  %v646_v27 = vld [vmem:[#allocation22 + $0x20] sm:$0xff] }
 0x169   :  { %7135 = vmatpush3.bf16.msra.mxu1 %v7132_v21  ;;  %7193 = vmatprep.subr.bf16.mxu0 %v7192_v41  ;;  %v643_v21 = vld [vmem:[#allocation22 + $0x8] sm:$0xff]  ;;  %v9394_v25 = vld [vmem:[#allocation10 + $0x8] sm:$0xff]  ;;  %v7216_v26 = vpack.c.bf16 %v645_v24, %v644_v23  ;;  %v7220_v29 = vpack.c.bf16 %v647_v28, %v646_v27  ;;  %v648_v30 = vld [vmem:[#allocation22 + $0x30] sm:$0xff] }
 0x16a   :  { %7137 = vmatprep.subr.bf16.mxu1 %v7136_v31  ;;  %v7212_v22 = vpack.c.bf16 %v643_v21, %v642_v20  ;;  %v650_v33 = vld [vmem:[#allocation22 + $0x40] sm:$0xff]  ;;  %v651_v34 = vld [vmem:[#allocation22 + $0x48] sm:$0xff]  ;;  %v652_v36 = vld [vmem:[#allocation22 + $0x50] sm:$0xff] }
 0x16b   :  { %v7228_v35 = vpack.c.bf16 %v651_v34, %v650_v33  ;;  %v653_v37 = vld [vmem:[#allocation22 + $0x58] sm:$0xff]  ;;  %v654_v39 = vld [vmem:[#allocation22 + $0x60] sm:$0xff]  ;;  %v655_v40 = vld [vmem:[#allocation22 + $0x68] sm:$0xff] }
 0x16c   :  { %7195 = vmatpush3.bf16.msra.mxu0 %v7192_v41  ;;  %v7236_v41 = vpack.c.bf16 %v655_v40, %v654_v39  ;;  %v565_v42 = vld [vmem:[#allocation21 + $0x70] sm:$0xff]  ;;  %v566_v43 = vld [vmem:[#allocation21 + $0x78] sm:$0xff]  ;;  %v9397_v45 = vld [vmem:[#allocation10 + $0x10] sm:$0xff] }
 0x16d   :  { %7139 = vmatpush3.bf16.msra.mxu1 %v7136_v31  ;;  %7197 = vmatprep.subr.bf16.mxu0 %v7196_v47  ;;  %v649_v31 = vld [vmem:[#allocation22 + $0x38] sm:$0xff]  ;;  %v7208_v46 = vpack.c.bf16 %v566_v43, %v565_v42  ;;  %v9400_v48 = vld [vmem:[#allocation10 + $0x18] sm:$0xff]  ;;  %v9420_v60 = vld [vmem:[%s9852_s6] sm:$0xff]  }
 0x16e   :  { %7141 = vmatprep.subr.bf16.mxu1 %v7140_v38  ;;  %v7224_v32 = vpack.c.bf16 %v649_v31, %v648_v30  ;;  %v429_v0 = vld [vmem:[%s9854_s0] sm:$0xff]  ;;  %v430_v3 = vld [vmem:[%s9854_s0 + $0x8] sm:$0xff]  ;;  %v931_v24 = vld [vmem:[#allocation24 + $0x18] sm:$0xff]  ;;  %v4974_v27 = vunpack.c.h.bf16 %v9420_v60 }
 0x16f   :  { %1046 = vperm.xlu0 %8454, %v429_v0   ;;  %v433_v5 = vld [vmem:[%s9855_s3] sm:$0xff]  ;;  %v434_v6 = vld [vmem:[%s9855_s3 + $0x8] sm:$0xff]  ;;  %v4914_v34 = vld [vmem:[#allocation19] ss:$0 sm:$0xff] }
 0x170   :  { %7199 = vmatpush3.bf16.msra.mxu0 %v7196_v47  ;;  %v657_v47 = vld [vmem:[#allocation22 + $0x78] sm:$0xff]  ;;  %v929_v8 = vld [vmem:[#allocation24 + $0x8] sm:$0xff]  ;;  %v930_v23 = vld [vmem:[#allocation24 + $0x10] sm:$0xff] }
 0x171   :  { %7143 = vmatpush3.bf16.msra.mxu1 %v7140_v38  ;;  %7201 = vmatprep.subr.bf16.mxu0 %v7200_v53  ;;  %v7232_v38 = vpack.c.bf16 %v653_v37, %v652_v36  ;;  %v7256_v30 = vpack.c.bf16 %v931_v24, %v930_v23  ;;  %v933_v33 = vld [vmem:[#allocation24 + $0x28] sm:$0xff]  ;;  %v934_v39 = vld [vmem:[#allocation24 + $0x30] sm:$0xff]  ;;  %v935_v40 = vld [vmem:[#allocation24 + $0x38] sm:$0xff] }
 0x172   :  { %7145 = vmatprep.subr.bf16.mxu1 %v7144_v44  ;;  %v936_v42 = vld [vmem:[#allocation24 + $0x40] sm:$0xff]  ;;  %v937_v43 = vld [vmem:[#allocation24 + $0x48] sm:$0xff]  ;;  %v943_v0 = vld [vmem:[#allocation24 + $0x78] sm:$0xff] }
 0x173   :  { %1051 = vperm.xlu0 %8454, %v430_v3  }
 0x174   :  { %7203 = vmatpush3.bf16.msra.mxu0 %v7200_v53 }
 0x175   :  { %7147 = vmatpush3.bf16.msra.mxu1 %v7144_v44  ;;  %7205 = vmatprep.subr.bf16.mxu0 %v7204_v61  ;;  %v656_v44 = vld [vmem:[#allocation22 + $0x70] sm:$0xff] }
 0x176   :  { %7149 = vmatprep.subr.bf16.mxu1 %v7148_v50  ;;  %v7240_v49 = vpack.c.bf16 %v657_v47, %v656_v44  ;;  %v7268_v44 = vpack.c.bf16 %v937_v43, %v936_v42  ;;  %v939_v47 = vld [vmem:[#allocation24 + $0x58] sm:$0xff] }
 0x177   :  { %1235 = vperm.xlu0 %8454, %v433_v5  }
 0x178   :  { %5751 = vmatmul.mubr.f32.vlgmr.msra.gmra.mrb[0].mxu1 %v306_v54  ;;  %7207 = vmatpush3.bf16.msra.mxu0 %v7204_v61  ;;  %v4973_v61 = vunpack.c.l.bf16 %v9420_v60 }
 0x179   :  { %7151 = vmatpush3.bf16.msra.mxu1 %v7148_v50  ;;  %5785 = vmatprep.mubr.f32.mxu1 %v9391_v58  ;;  %v4913_v50 = vld [vmem:[#allocation16] ss:$0 sm:$0xff] }
 0x17a   :  { %7153 = vmatprep.subr.bf16.mxu1 %v7152_v57  ;;  %7209 = vmatprep.subr.bf16.mxu0 %v7208_v46 }
 0x17c   :  { %7211 = vmatpush3.bf16.msra.mxu0 %v7208_v46  ;;  %v938_v46 = vld [vmem:[#allocation24 + $0x50] sm:$0xff] }
 0x17d   :  { %7155 = vmatpush3.bf16.msra.mxu1 %v7152_v57 }
 0x17e   :  { %7157 = vmatprep.subr.bf16.mxu1 %v7156_v62 }
 0x181   :  { %7159 = vmatpush3.bf16.msra.mxu1 %v7156_v62  ;;  %v9429_v62 = vld [vmem:[%s9853_s1] sm:$0xff]  }
 0x182   :  { %7161 = vmatprep.subr.bf16.mxu1 %v7160_v1  ;;  %v4981_v63 = vunpack.c.l.bf16 %v9429_v62  ;;  %v4982_v28 = vunpack.c.h.bf16 %v9429_v62 }
 0x185   :  { %7163 = vmatpush3.bf16.msra.mxu1 %v7160_v1  ;;  %v431_v1 = vld [vmem:[%s9854_s0 + $0x10] sm:$0xff] }
 0x186   :  { %7165 = vmatprep.subr.bf16.mxu1 %v7164_v4  ;;  %1056 = vperm.xlu1 %8455, %v431_v1  }
 0x189   :  { %7167 = vmatpush3.bf16.msra.mxu1 %v7164_v4  ;;  %v432_v4 = vld [vmem:[%s9854_s0 + $0x18] sm:$0xff] }
 0x18a   :  { %7169 = vmatprep.subr.bf16.mxu1 %v7168_v7  ;;  %1061 = vperm.xlu1 %8455, %v432_v4  }
 0x18d   :  { %7171 = vmatpush3.bf16.msra.mxu1 %v7168_v7  ;;  %v928_v7 = vld [vmem:[#allocation24] sm:$0xff] }
 0x18e   :  { %7173 = vmatprep.subr.bf16.mxu1 %v7172_v10  ;;  %1240 = vperm.xlu1 %8455, %v434_v6   ;;  %v7252_v21 = vpack.c.bf16 %v929_v8, %v928_v7  ;;  %v4988_v6 = vld [vmem:[#allocation12] sm:$0xff]  }
 0x18f   :  { %v9492_v7 = vunpack.c.l.bf16 %v4988_v6 }
 0x191   :  { %7175 = vmatpush3.bf16.msra.mxu1 %v7172_v10 }
 0x192   :  { %7177 = vmatprep.subr.bf16.mxu1 %v7176_v19 }
 0x195   :  { %7179 = vmatpush3.bf16.msra.mxu1 %v7176_v19 }
 0x196   :  { %7213 = vmatprep.subr.bf16.mxu1 %v7212_v22 }
 0x198   :  { %5786 = vmatmul.mubr.f32.vlgmr.msra.gmra.mrb[2].mxu1 %v9394_v25 }
 0x199   :  { %7215 = vmatpush3.bf16.msra.mxu1 %v7212_v22  ;;  %5788 = vmatprep.mubr.f32.mxu1 %v9397_v45  ;;  %v9458_v22 = vld [vmem:[%s9852_s6 + $0x8] sm:$0xff]  }
 0x19a   :  { %7217 = vmatprep.subr.bf16.mxu1 %v7216_v26 }
 0x19c   :  { %5789 = vmatmul.mubr.f32.gmra.mrb[4].mxu1 %v9400_v48 }
 0x19d   :  { %7219 = vmatpush3.bf16.msra.mxu1 %v7216_v26  ;;  %v9463_v26 = vld [vmem:[%s9853_s1 + $0x8] sm:$0xff]  }
 0x19e   :  { %7221 = vmatprep.subr.bf16.mxu1 %v7220_v29  ;;  %v4985_v31 = vunpack.c.l.bf16 %v9463_v26  ;;  %v4986_v36 = vunpack.c.h.bf16 %v9463_v26 }
 0x1a1   :  { %7223 = vmatpush3.bf16.msra.mxu1 %v7220_v29  ;;  %v4977_v29 = vunpack.c.l.bf16 %v9458_v22 }
 0x1a2   :  { %7225 = vmatprep.subr.bf16.mxu1 %v7224_v32 }
 0x1a5   :  { %7227 = vmatpush3.bf16.msra.mxu1 %v7224_v32  ;;  %v932_v32 = vld [vmem:[#allocation24 + $0x20] sm:$0xff] }
 0x1a6   :  { %7229 = vmatprep.subr.bf16.mxu1 %v7228_v35  ;;  %v7260_v37 = vpack.c.bf16 %v933_v33, %v932_v32 }
 0x1a9   :  { %7231 = vmatpush3.bf16.msra.mxu1 %v7228_v35  ;;  %v4978_v35 = vunpack.c.h.bf16 %v9458_v22 }
 0x1aa   :  { %7233 = vmatprep.subr.bf16.mxu1 %v7232_v38 }
 0x1ad   :  { %7235 = vmatpush3.bf16.msra.mxu1 %v7232_v38 }
 0x1ae   :  { %7237 = vmatprep.subr.bf16.mxu1 %v7236_v41 }
 0x1b1   :  { %7239 = vmatpush3.bf16.msra.mxu1 %v7236_v41  ;;  %v7264_v41 = vpack.c.bf16 %v935_v40, %v934_v39 }
 0x1b2   :  { %7241 = vmatprep.subr.bf16.mxu1 %v7240_v49 }
 0x1b5   :  { %7243 = vmatpush3.bf16.msra.mxu1 %v7240_v49  ;;  %v7272_v49 = vpack.c.bf16 %v939_v47, %v938_v46 }
 0x24b   :  { %v5752_v51 = vpop.f32.mrb[0].mxu1 }
 0x24c   :  { %v396_v52 = vpop.f32.mrb[1].mxu1  ;;  %v9405_v54 = vadd.f32 %v5752_v51, %v4913_v50  ;;  %v941_v51 = vld [vmem:[#allocation24 + $0x68] sm:$0xff] }
 0x24d   :  { %v9403_v53 = vadd.f32 %v4913_v50, %v396_v52  ;;  %v940_v50 = vld [vmem:[#allocation24 + $0x60] sm:$0xff] }
 0x24e   :  { %v7276_v52 = vpack.c.bf16 %v941_v51, %v940_v50 }
 0x24f   :  { %5823 = vmatprep.mubr.f32.mxu0 %v9403_v53  ;;  %5858 = vmatprep.mubr.f32.mxu1 %v9403_v53 }
 0x250   :  { %5824 = vmatmul.mubr.f32.vlgmr.msra.gmra.mrb[0].mxu0 %v9405_v54  ;;  %5859 = vmatmul.mubr.f32.vlgmr.msra.gmra.mrb[6].mxu1 %v9405_v54 }
 0x251   :  { %5875 = vmatprep.mubr.msk.f32.mxu0 %vm733_vm2, %v4973_v61  ;;  %5865 = vmatprep.mubr.msk.f32.mxu1 %vm733_vm2, %v4981_v63 }
 0x26b   :  { %v9411_v55 = vpop.f32.mrb[2].mxu1 }
 0x26c   :  { %v532_v56 = vpop.f32.mrb[3].mxu1  ;;  %v538_v3 = vadd.f32 %v9411_v55, %v4914_v34 }
 0x26d   :  { %v533_v38 = vadd.f32 %v4914_v34, %v532_v56  ;;  %v942_v56 = vld [vmem:[#allocation24 + $0x70] sm:$0xff] }
 0x26e   :  { %v7280_v1 = vpack.c.bf16 %v943_v0, %v942_v56  ;;  %v9508_v0 = vunpack.c.h.bf16 %v4988_v6 }
 0x26f   :  { %v9413_v57 = vpop.f32.mrb[4].mxu1 }
 0x270   :  { %v9415_v59 = vpop.f32.mrb[5].mxu1  ;;  %v548_v5 = vadd.f32 %v9413_v57, %v4914_v34 }
 0x271   :  { %v543_v4 = vadd.f32 %v4914_v34, %v9415_v59  ;;  %v4923_v59 = vld [vmem:[#allocation25] ss:$0 sm:$0xff] }
 0x323   :  { %v5825_v9 = vpop.f32.mrb[0].mxu0  ;;  %v5860_v10 = vpop.f32.mrb[6].mxu1 }
 0x324   :  { %v633_v11 = vpop.f32.mrb[1].mxu0  ;;  %v724_v18 = vpop.f32.mrb[7].mxu1 }
 0x325   :  { %v7248_v19 = vpack.c.bf16 %v5825_v9, %v633_v11  ;;  %v7244_v20 = vpack.c.bf16 %v5860_v10, %v724_v18  ;;  %v9496_v18 = vpop.permute.xlu0 %1046 }
 0x327   :  { %7245 = vmatprep.subr.bf16.mxu1 %v7244_v20  ;;  %7249 = vmatprep.subr.bf16.mxu0 %v7248_v19 }
 0x328   :  { %7247 = vmatpush3.bf16.msra.mxu1 %v7244_v20  ;;  %7251 = vmatpush3.bf16.msra.mxu0 %v7248_v19 }
 0x329   :  { %7253 = vmatprep.subr.bf16.mxu0 %v7252_v21  ;;  %v9500_v24 = vpop.permute.xlu0 %1051 }
 0x32b   :  { %5876 = vmatmul.mubr.msk.f32.vlgmr.msra.gmra.mrb[2].mxu0 %vm733_vm2, %v4974_v27  ;;  %5866 = vmatmul.mubr.msk.f32.vlgmr.msra.gmra.mrb[8].mxu1 %vm733_vm2, %v4982_v28 }
 0x32c   :  { %7255 = vmatpush3.bf16.msra.mxu0 %v7252_v21  ;;  %5878 = vmatprep.mubr.msk.f32.mxu0 %vm733_vm2, %v4977_v29  ;;  %v9498_v21 = vpop.permute.xlu1 %1056 }
 0x32d   :  { %7257 = vmatprep.subr.bf16.mxu0 %v7256_v30  ;;  %5868 = vmatprep.mubr.msk.f32.mxu1 %vm733_vm2, %v4985_v31 }
 0x32f   :  { %5879 = vmatmul.mubr.msk.f32.gmra.mrb[4].mxu0 %vm733_vm2, %v4978_v35  ;;  %5869 = vmatmul.mubr.msk.f32.gmra.mrb[10].mxu1 %vm733_vm2, %v4986_v36 }
 0x330   :  { %7259 = vmatpush3.bf16.msra.mxu0 %v7256_v30  ;;  %5913 = vmatprep.mubr.f32.mxu0 %v533_v38  ;;  %v9504_v42 = vpop.permute.xlu1 %1061 }
 0x331   :  { %7261 = vmatprep.subr.bf16.mxu0 %v7260_v37  ;;  %5927 = vmatprep.mubr.msk.f32.mxu1 %vm1072_vm3, %v9492_v7 }
 0x334   :  { %7263 = vmatpush3.bf16.msra.mxu0 %v7260_v37 }
 0x335   :  { %7265 = vmatprep.subr.bf16.mxu0 %v7264_v41 }
 0x338   :  { %7267 = vmatpush3.bf16.msra.mxu0 %v7264_v41 }
 0x339   :  { %7269 = vmatprep.subr.bf16.mxu0 %v7268_v44 }
 0x33c   :  { %7271 = vmatpush3.bf16.msra.mxu0 %v7268_v44 }
 0x33d   :  { %7273 = vmatprep.subr.bf16.mxu0 %v7272_v49 }
 0x340   :  { %7275 = vmatpush3.bf16.msra.mxu0 %v7272_v49 }
 0x341   :  { %7277 = vmatprep.subr.bf16.mxu0 %v7276_v52 }
 0x344   :  { %7279 = vmatpush3.bf16.msra.mxu0 %v7276_v52 }
 0x345   :  { %7281 = vmatprep.subr.bf16.mxu0 %v7280_v1 }
 0x348   :  { %7283 = vmatpush3.bf16.msra.mxu0 %v7280_v1 }
 0x34b   :  { %5914 = vmatmul.mubr.f32.vlgmr.msra.gmra.mrb[2].mxu0 %v538_v3  ;;  %v8936_v3 = vmov -inf  }
 0x34c   :  { %5916 = vmatprep.mubr.f32.mxu0 %v543_v4  ;;  %1269 = vst [vmem:[#allocation3] sm:$0xff] %v8936_v3  ;;  %1270 = vst [vmem:[#allocation3 + $0x8] sm:$0xff] %v8936_v3  ;;  %v8937_v4 = vmov inf  }
 0x34d   :  { %1271 = vst [vmem:[#allocation4] sm:$0xff] %v8937_v4  ;;  %1272 = vst [vmem:[#allocation4 + $0x8] sm:$0xff] %v8937_v4 }
 0x34f   :  { %5917 = vmatmul.mubr.f32.gmra.mrb[4].mxu0 %v548_v5 }
 0x3fe   :  { %v5867_v8 = vpop.f32.mrb[8].mxu1 }
 0x3ff   :  { %v812_v9 = vpop.f32.mrb[9].mxu1 }
 0x402   :  { %v5870_v10 = vpop.f32.mrb[10].mxu1 }
 0x403   :  { %v822_v11 = vpop.f32.mrb[11].mxu1 }
 0x41e   :  { %v5915_v55 = vpop.f32.mrb[2].mxu0 }
 0x41f   :  { %v8351_v19 = vadd.f32 %v5915_v55, %v5867_v8  ;;  %v1010_v20 = vpop.f32.mrb[3].mxu0  ;;  %v9520_v8 = vpop.permute.xlu1 %1240 }
 0x420   :  { %v8352_v57 = vadd.f32 %v1010_v20, %v812_v9  ;;  %v9522_v9 = vpop.permute.xlu0 %1235 }
 0x421   :  { %v1041_v23 = vadd.f32 %v8351_v19, %v4923_v59 }
 0x422   :  { %v1040_v30 = vadd.f32 %v8352_v57, %v4923_v59  ;;  %v5918_v32 = vpop.f32.mrb[4].mxu0 }
 0x423   :  { %v1065_v33 = vmul.f32 %v9500_v24, %v1041_v23  ;;  %v8353_v34 = vadd.f32 %v5918_v32, %v5870_v10  ;;  %v1020_v37 = vpop.f32.mrb[5].mxu0 }
 0x424   :  { %v1064_v38 = vmul.f32 %v9496_v18, %v1040_v30  ;;  %v8354_v39 = vadd.f32 %v1020_v37, %v822_v11 }
 0x425   :  { %1069 = vst [vmem:[#allocation2 + $0x8] sm:$0xff] %v1065_v33  ;;  %v1043_v40 = vadd.f32 %v8353_v34, %v4923_v59  ;;  %v1155_v41 = vmul.f32 %v1065_v33, %v1065_v33 }
 0x426   :  { %1068 = vst [vmem:[#allocation2] sm:$0xff] %v1064_v38  ;;  %v1042_v43 = vadd.f32 %v8354_v39, %v4923_v59  ;;  %v7284_v44 = vpack.c.bf16 %v1065_v33, %v1064_v38  ;;  %v1154_v46 = vmul.f32 %v1064_v38, %v1064_v38 }
 0x427   :  { %v1067_v47 = vmul.f32 %v9504_v42, %v1043_v40 }
 0x428   :  { %v1066_v49 = vmul.f32 %v9498_v21, %v1042_v43  ;;  %7285 = vmatprep.subr.bf16.mxu1 %v7284_v44  ;;  %v7292_v50 = vpack.c.bf16 %v1155_v41, %v1154_v46 }
 0x429   :  { %1071 = vst [vmem:[#allocation2 + $0x18] sm:$0xff] %v1067_v47  ;;  %7287 = vmatpush3.bf16.msra.mxu1 %v7284_v44  ;;  %v1157_v51 = vmul.f32 %v1067_v47, %v1067_v47 }
 0x42a   :  { %1070 = vst [vmem:[#allocation2 + $0x10] sm:$0xff] %v1066_v49  ;;  %v7288_v52 = vpack.c.bf16 %v1067_v47, %v1066_v49  ;;  %v1156_v56 = vmul.f32 %v1066_v49, %v1066_v49 }
 0x42c   :  { %7289 = vmatprep.subr.bf16.mxu1 %v7288_v52  ;;  %v7296_v1 = vpack.c.bf16 %v1157_v51, %v1156_v56 }
 0x42d   :  { %7291 = vmatpush3.bf16.msra.mxu1 %v7288_v52 }
 0x42e   :  { %7293 = vmatprep.subr.bf16.mxu1 %v7292_v50 }
 0x430   :  { %5928 = vmatmul.mubr.msk.f32.vlgmr.msra.gmra.mrb[12].mxu1 %vm1072_vm3, %v9508_v0 }
 0x431   :  { %7295 = vmatpush3.bf16.msra.mxu1 %v7292_v50  ;;  %5938 = vmatprep.mubr.msk.f32.mxu1 %vm1072_vm3, %v9492_v7 }
 0x432   :  { %7297 = vmatprep.subr.bf16.mxu1 %v7296_v1 }
 0x435   :  { %7299 = vmatpush3.bf16.msra.mxu1 %v7296_v1 }
 0x438   :  { %5939 = vmatmul.mubr.msk.f32.vlgmr.msra.gmra.mrb[14].mxu1 %vm1072_vm3, %v9508_v0 }
 0x503   :  { %v5929_v5 = vpop.f32.mrb[12].mxu1 }
 0x504   :  { %v1145_v6 = vpop.f32.mrb[13].mxu1  ;;  %v9525_v10 = vmul.f32 %v5929_v5, %v9520_v8 }
 0x505   :  { %v9528_v11 = vmul.f32 %v9522_v9, %v1145_v6 }
 0x506   :  { %v1248_v59 = vmul.f32 %v9525_v10, %v9525_v10 }
 0x507   :  { %v1247_v57 = vmul.f32 %v9528_v11, %v9528_v11 }
 0x50b   :  { %v5940_v55 = vpop.f32.mrb[14].mxu1 }
 0x50c   :  { %v1246_v19 = vmul.f32 %v5940_v55, %v9520_v8  ;;  %v1224_v20 = vpop.f32.mrb[15].mxu1 }
 0x50d   :  { %v1245_v23 = vmul.f32 %v9522_v9, %v1224_v20 }
 0x50e   :  { %v1250_v30 = vsub.f32 %v1246_v19, %v1248_v59 }
 0x50f   :  { %v1249_v32 = vsub.f32 %v1245_v23, %v1247_v57 }
 0x510   :  { %v1252_v33 = vmax.f32 %v1250_v30, 0.0 }
 0x511   :  { %v1251_v34 = vmax.f32 %v1249_v32, 0.0 }
 0x512   :  { %v1254_v37 = vadd.f32 1e-05, %v1252_v33 }
 0x513   :  { %v1253_v38 = vadd.f32 1e-05, %v1251_v34 }
 0x514   :  { %8456 = vrsqrt.f32 %v1254_v37  ;;  %vm1264_vm4 = vcmp.eq.f32.partialorder %v1254_v37, inf  ;;  %v1267_v43 = vand.u32 2147483648, %v1254_v37  ;;  %vm1266_vm5 = vcmp.eq.f32.partialorder %v1254_v37, 0.0 }
 0x515   :  { %8458 = vrsqrt.f32 %v1253_v38  ;;  %vm1257_vm6 = vcmp.eq.f32.partialorder %v1253_v38, inf  ;;  %v1260_v47 = vand.u32 2147483648, %v1253_v38  ;;  %vm1259_vm7 = vcmp.eq.f32.partialorder %v1253_v38, 0.0 }
 0x51e   :  { %v8457_v39 = vpop.eup %8456 }
 0x51f   :  { %v8459_v40 = vpop.eup %8458  ;;  %v1263_v41 = vmul.f32 %v8457_v39, %v1254_v37 }
 0x520   :  { %v1256_v44 = vmul.f32 %v8459_v40, %v1253_v38 }
 0x521   :  { %v1265_v46 = vsel %vm1264_vm4, %v1254_v37, %v1263_v41 }
 0x522   :  { %v9536_v49 = vsel %vm1266_vm5, %v1267_v43, %v1265_v46  ;;  %v1258_v50 = vsel %vm1257_vm6, %v1253_v38, %v1256_v44 }
 0x523   :  { %v9538_v51 = vsel %vm1259_vm7, %v1260_v47, %v1258_v50 }
 0x524 LB: > { %s1279_s16 = sld [smem:[#allocation5 + %s8906_s9]]  ;;  %s1280_s15 = scalar_lea.vmem [#allocation2], %s8906_s9  ;;  %s8906_s9 = sphi %s8904_s9, %s1278_s9  }
 0x525   : > { %v1281_v52 = vld [vmem:[%s1280_s15] sm:$0x1]  ;;  %s1278_s9 = sadd.s32 1, %s8906_s9  }
 0x526   : > { %p1275_p5 = scmp.ge.s32.totalorder %s1278_s9, 32  }
 0x527   :  { %8460 = vset.pattern.permute.xlu0 (%p1275_p5), %v8935_v2  ;;  %v1292_v55 = vsel (%p1275_p5), %vm441_vm0, 1, %v8935_v2  ;;  %v1342_v59 = vld [vmem:[#allocation27 + $0x100] sm:$0xff] (%p1275_p5)  ;;  %v1343_v19 = vld [vmem:[#allocation27 + $0x108] sm:$0xff] (%p1275_p5)  ;;  %8461 = vset.pattern.permute.xlu1 (%p1275_p5), %v8935_v2  ;;  %v1344_v30 = vld [vmem:[#allocation27 + $0x110] sm:$0xff] (%p1275_p5)  ;;  %v1293_v33 = vsel (%p1275_p5), %vm442_vm1, 1, %v8935_v2  ;;  %s8908_s10 = smov (%p1275_p5), 0  }
 0x528   :  { %v1789_v20 = vld [vmem:[#allocation27 + $0x300] sm:$0xff] (%p1275_p5)  ;;  %1295 = vperm.xlu0 (%p1275_p5), %8460, %v1292_v55   ;;  %v7300_v57 = vpack.c.bf16 (%p1275_p5), %v1343_v19, %v1342_v59  ;;  %v1790_v23 = vld [vmem:[#allocation27 + $0x308] sm:$0xff] (%p1275_p5)  ;;  %v1345_v32 = vld [vmem:[#allocation27 + $0x118] sm:$0xff] (%p1275_p5)  ;;  %2145 = vperm.xlu1 (%p1275_p5), %8461, %v9362_v12  }
 0x529   :  { %1277 = sbr.rel (!%p1275_p5) target bundleno = 1316 (0x524), region = 246  ;;  %v7460_v34 = vpack.c.bf16 (%p1275_p5), %v1790_v23, %v1789_v20  ;;  %v7304_v37 = vpack.c.bf16 (%p1275_p5), %v1345_v32, %v1344_v30  ;;  %v1791_v16 = vld [vmem:[#allocation27 + $0x310] sm:$0xff] (%p1275_p5)  ;;  %v1792_v38 = vld [vmem:[#allocation27 + $0x318] sm:$0xff] (%p1275_p5)  ;;  %v1346_v39 = vld [vmem:[#allocation27 + $0x120] sm:$0xff] (%p1275_p5) }
 0x52a   : > { %s1282_s21 = scalar_lea.vmem [#allocation3], %s1279_s16  ;;  %s1286_s20 = scalar_lea.vmem [#allocation4], %s1279_s16  ;;  %7301 = vmatprep.subr.bf16.mxu1 (%p1275_p5), %v7300_v57  ;;  %v7464_v40 = vpack.c.bf16 (%p1275_p5), %v1792_v38, %v1791_v16  ;;  %v1347_v41 = vld [vmem:[#allocation27 + $0x128] sm:$0xff] (%p1275_p5)  ;;  %v1793_v43 = vld [vmem:[#allocation27 + $0x320] sm:$0xff] (%p1275_p5)  ;;  %v1348_v17 = vld [vmem:[#allocation27 + $0x130] sm:$0xff] (%p1275_p5) }
 0x52b   : > { %v1283_v56 = vld [vmem:[%s1282_s21] sm:$0x1]  ;;  %v1794_v44 = vld [vmem:[#allocation27 + $0x328] sm:$0xff] (%p1275_p5)  ;;  %7461 = vmatprep.subr.bf16.mxu0 (%p1275_p5), %v7460_v34  ;;  %7303 = vmatpush3.bf16.msra.mxu1 (%p1275_p5), %v7300_v57  ;;  %v7308_v12 = vpack.c.bf16 (%p1275_p5), %v1347_v41, %v1346_v39  ;;  %v1349_v2 = vld [vmem:[#allocation27 + $0x138] sm:$0xff] (%p1275_p5) }
 0x52c   : > { %v1287_v1 = vld [vmem:[%s1286_s20] sm:$0x1]  ;;  %v1284_v5 = vmax.f32 %v1283_v56, %v1281_v52  ;;  %1298 = vperm.xlu0 (%p1275_p5), %8460, %v1293_v33   ;;  %7463 = vmatpush3.bf16.msra.mxu0 (%p1275_p5), %v7460_v34  ;;  %v7468_v46 = vpack.c.bf16 (%p1275_p5), %v1794_v44, %v1793_v43  ;;  %v1795_v47 = vld [vmem:[#allocation27 + $0x330] sm:$0xff] (%p1275_p5)  ;;  %v1796_v50 = vld [vmem:[#allocation27 + $0x338] sm:$0xff] (%p1275_p5) }
 0x52d   : > { %v1288_v6 = vmin.f32 %v1287_v1, %v1281_v52  ;;  %7305 = vmatprep.subr.bf16.mxu1 (%p1275_p5), %v7304_v37  ;;  %7465 = vmatprep.subr.bf16.mxu0 (%p1275_p5), %v7464_v40  ;;  %v7312_v52 = vpack.c.bf16 (%p1275_p5), %v1349_v2, %v1348_v17  ;;  %v7472_v56 = vpack.c.bf16 (%p1275_p5), %v1796_v50, %v1795_v47  ;;  %v1350_v1 = vld [vmem:[#allocation27 + $0x140] sm:$0xff] (%p1275_p5)  ;;  %v1798_v59 = vld [vmem:[#allocation27 + $0x348] sm:$0xff] (%p1275_p5)  ;;  %v1352_v20 = vld [vmem:[#allocation27 + $0x150] sm:$0xff] (%p1275_p5) }
 0x52e   : > { %1285 = vst [vmem:[%s1282_s21] sm:$0x1] %v1284_v5  ;;  %2150 = vperm.xlu1 (%p1275_p5), %8461, %v9367_v13   ;;  %v1351_v5 = vld [vmem:[#allocation27 + $0x148] sm:$0xff] (%p1275_p5)  ;;  %v1797_v55 = vld [vmem:[#allocation27 + $0x340] sm:$0xff] (%p1275_p5)  ;;  %v1353_v57 = vld [vmem:[#allocation27 + $0x158] sm:$0xff] (%p1275_p5) }
 0x52f   : > { %1289 = vst [vmem:[%s1286_s20] sm:$0x1] %v1288_v6  ;;  %7307 = vmatpush3.bf16.msra.mxu1 (%p1275_p5), %v7304_v37  ;;  %v7476_v19 = vpack.c.bf16 (%p1275_p5), %v1798_v59, %v1797_v55  ;;  %v1799_v23 = vld [vmem:[#allocation27 + $0x350] sm:$0xff] (%p1275_p5)  ;;  %v1800_v30 = vld [vmem:[#allocation27 + $0x358] sm:$0xff] (%p1275_p5)  ;;  %v7320_v32 = vpack.c.bf16 (%p1275_p5), %v1353_v57, %v1352_v20  ;;  %v1354_v33 = vld [vmem:[#allocation27 + $0x160] sm:$0xff] (%p1275_p5) }
 0x530   :  { %2531 = vperm.xlu0 %8460, %v9372_v14   ;;  %7467 = vmatpush3.bf16.msra.mxu0 %v7464_v40  ;;  %v7316_v14 = vpack.c.bf16 %v1351_v5, %v1350_v1  ;;  %v1355_v34 = vld [vmem:[#allocation27 + $0x168] sm:$0xff]  ;;  %v1801_v37 = vld [vmem:[#allocation27 + $0x360] sm:$0xff]  ;;  %v1356_v39 = vld [vmem:[#allocation27 + $0x170] sm:$0xff] }
 0x531   :  { %7309 = vmatprep.subr.bf16.mxu1 %v7308_v12  ;;  %7469 = vmatprep.subr.bf16.mxu0 %v7468_v46  ;;  %v1802_v16 = vld [vmem:[#allocation27 + $0x368] sm:$0xff]  ;;  %v1357_v40 = vld [vmem:[#allocation27 + $0x178] sm:$0xff]  ;;  %v1803_v41 = vld [vmem:[#allocation27 + $0x370] sm:$0xff] }
 0x532   :  { %2536 = vperm.xlu1 %8461, %v9377_v15   ;;  %v7480_v15 = vpack.c.bf16 %v1800_v30, %v1799_v23  ;;  %v7484_v38 = vpack.c.bf16 %v1802_v16, %v1801_v37  ;;  %v1804_v43 = vld [vmem:[#allocation27 + $0x378] sm:$0xff]  ;;  %v7328_v44 = vpack.c.bf16 %v1357_v40, %v1356_v39  ;;  %v1326_v17 = vld [vmem:[#allocation27 + $0x88] sm:$0xff]  ;;  %v1772_v2 = vld [vmem:[#allocation27 + $0x280] sm:$0xff] }
 0x533   :  { %7311 = vmatpush3.bf16.msra.mxu1 %v7308_v12  ;;  %v7488_v12 = vpack.c.bf16 %v1804_v43, %v1803_v41  ;;  %v1773_v47 = vld [vmem:[#allocation27 + $0x288] sm:$0xff]  ;;  %v1327_v55 = vld [vmem:[#allocation27 + $0x90] sm:$0xff]  ;;  %v1328_v59 = vld [vmem:[#allocation27 + $0x98] sm:$0xff] }
 0x534   :  { %7471 = vmatpush3.bf16.msra.mxu0 %v7468_v46  ;;  %7313 = vmatprep.subr.bf16.mxu1 %v7312_v52  ;;  %v1325_v46 = vld [vmem:[#allocation27 + $0x80] sm:$0xff]  ;;  %v7336_v57 = vpack.c.bf16 %v1328_v59, %v1327_v55  ;;  %v1330_v30 = vld [vmem:[#allocation27 + $0xa8] sm:$0xff]  ;;  %v1331_v37 = vld [vmem:[#allocation27 + $0xb0] sm:$0xff] }
 0x535   :  { %7473 = vmatprep.subr.bf16.mxu0 %v7472_v56  ;;  %v7332_v50 = vpack.c.bf16 %v1326_v17, %v1325_v46  ;;  %v9561_v1 = vld [vmem:[#allocation3 + $0x8] sm:$0xff]  ;;  %v1329_v23 = vld [vmem:[#allocation27 + $0xa0] sm:$0xff]  ;;  %v1332_v16 = vld [vmem:[#allocation27 + $0xb8] sm:$0xff] }
 0x536   :  { %v9551_v6 = vld [vmem:[#allocation4] sm:$0xff]  ;;  %v9555_v13 = vld [vmem:[#allocation4 + $0x8] sm:$0xff]  ;;  %3423 = vst [vmem:[#allocation3 + $0x8] sm:$0xff] %v8936_v3  ;;  %v7344_v39 = vpack.c.bf16 %v1332_v16, %v1331_v37  ;;  %v1333_v41 = vld [vmem:[#allocation27 + $0xc0] sm:$0xff] }
 0x537   :  { %3424 = vst [vmem:[#allocation4] sm:$0xff] %v8937_v4  ;;  %3425 = vst [vmem:[#allocation4 + $0x8] sm:$0xff] %v8937_v4  ;;  %7315 = vmatpush3.bf16.msra.mxu1 %v7312_v52  ;;  %v7324_v4 = vpack.c.bf16 %v1355_v34, %v1354_v33  ;;  %v7492_v52 = vpack.c.bf16 %v1773_v47, %v1772_v2  ;;  %v7340_v33 = vpack.c.bf16 %v1330_v30, %v1329_v23  ;;  %v1334_v43 = vld [vmem:[#allocation27 + $0xc8] sm:$0xff]  ;;  %v1335_v2 = vld [vmem:[#allocation27 + $0xd0] sm:$0xff] }
 0x538   :  { %7475 = vmatpush3.bf16.msra.mxu0 %v7472_v56  ;;  %7317 = vmatprep.subr.bf16.mxu1 %v7316_v14  ;;  %v9558_v56 = vld [vmem:[#allocation3] sm:$0xff]  ;;  %v7348_v46 = vpack.c.bf16 %v1334_v43, %v1333_v41  ;;  %v1336_v47 = vld [vmem:[#allocation27 + $0xd8] sm:$0xff] }
 0x539   :  { %7477 = vmatprep.subr.bf16.mxu0 %v7476_v19  ;;  %3422 = vst [vmem:[#allocation3] sm:$0xff] %v8936_v3  ;;  %v7352_v55 = vpack.c.bf16 %v1336_v47, %v1335_v2 }
 0x53b   :  { %7319 = vmatpush3.bf16.msra.mxu1 %v7316_v14  ;;  %v1774_v14 = vld [vmem:[#allocation27 + $0x290] sm:$0xff] }
 0x53c   :  { %7479 = vmatpush3.bf16.msra.mxu0 %v7476_v19  ;;  %7321 = vmatprep.subr.bf16.mxu1 %v7320_v32  ;;  %v1775_v19 = vld [vmem:[#allocation27 + $0x298] sm:$0xff] }
 0x53d   :  { %7481 = vmatprep.subr.bf16.mxu0 %v7480_v15  ;;  %v7496_v3 = vpack.c.bf16 %v1775_v19, %v1774_v14  ;;  %v1337_v14 = vld [vmem:[#allocation27 + $0xe0] sm:$0xff]  ;;  %v1338_v19 = vld [vmem:[#allocation27 + $0xe8] sm:$0xff] }
 0x53e   :  { %v7356_v23 = vpack.c.bf16 %v1338_v19, %v1337_v14 }
 0x53f   :  { %7323 = vmatpush3.bf16.msra.mxu1 %v7320_v32  ;;  %v1776_v32 = vld [vmem:[#allocation27 + $0x2a0] sm:$0xff] }
 0x540   :  { %7483 = vmatpush3.bf16.msra.mxu0 %v7480_v15  ;;  %7325 = vmatprep.subr.bf16.mxu1 %v7324_v4  ;;  %v1777_v15 = vld [vmem:[#allocation27 + $0x2a8] sm:$0xff] }
 0x541   :  { %7485 = vmatprep.subr.bf16.mxu0 %v7484_v38  ;;  %v7500_v34 = vpack.c.bf16 %v1777_v15, %v1776_v32  ;;  %v1339_v32 = vld [vmem:[#allocation27 + $0xf0] sm:$0xff]  ;;  %v1340_v15 = vld [vmem:[#allocation27 + $0xf8] sm:$0xff] }
 0x542   :  { %v7360_v37 = vpack.c.bf16 %v1340_v15, %v1339_v32 }
 0x543   :  { %7327 = vmatpush3.bf16.msra.mxu1 %v7324_v4  ;;  %v1778_v4 = vld [vmem:[#allocation27 + $0x2b0] sm:$0xff] }
 0x544   :  { %7487 = vmatpush3.bf16.msra.mxu0 %v7484_v38  ;;  %7329 = vmatprep.subr.bf16.mxu1 %v7328_v44  ;;  %v1779_v38 = vld [vmem:[#allocation27 + $0x2b8] sm:$0xff] }
 0x545   :  { %7489 = vmatprep.subr.bf16.mxu0 %v7488_v12  ;;  %v7504_v40 = vpack.c.bf16 %v1779_v38, %v1778_v4  ;;  %v1509_v4 = vld [vmem:[#allocation27 + $0x180] sm:$0xff]  ;;  %v1510_v38 = vld [vmem:[#allocation27 + $0x188] sm:$0xff] }
 0x546   :  { %v7364_v41 = vpack.c.bf16 %v1510_v38, %v1509_v4 }
 0x547   :  { %7331 = vmatpush3.bf16.msra.mxu1 %v7328_v44  ;;  %v1780_v44 = vld [vmem:[#allocation27 + $0x2c0] sm:$0xff] }
 0x548   :  { %7491 = vmatpush3.bf16.msra.mxu0 %v7488_v12  ;;  %7333 = vmatprep.subr.bf16.mxu1 %v7332_v50  ;;  %v1781_v12 = vld [vmem:[#allocation27 + $0x2c8] sm:$0xff] }
 0x549   :  { %7493 = vmatprep.subr.bf16.mxu0 %v7492_v52  ;;  %v7508_v17 = vpack.c.bf16 %v1781_v12, %v1780_v44  ;;  %v1511_v44 = vld [vmem:[#allocation27 + $0x190] sm:$0xff]  ;;  %v1512_v12 = vld [vmem:[#allocation27 + $0x198] sm:$0xff] }
 0x54a   :  { %v7368_v2 = vpack.c.bf16 %v1512_v12, %v1511_v44 }
 0x5a7   :  { %v9564_v5 = vpop.permute.xlu0 %1295 }
 0x5a8   :  { %vm1300_vm8 = vcmp.eq.s32.totalorder %v9564_v5, 1 }
 0x5a9   :  { %5973 = vmatprep.mubr.msk.f32.mxu1 %vm1300_vm8, %v9551_v6  ;;  %6148 = vmatprep.mubr.msk.f32.mxu0 %vm1300_vm8, %v9551_v6 }
 0x5ab   :  { %v9573_v20 = vpop.permute.xlu0 %1298 }
 0x5ac   :  { %vm1301_vm9 = vcmp.eq.s32.totalorder %v9573_v20, 1 }
 0x5ad   :  { %5974 = vmatmul.mubr.msk.f32.vlgmr.msra.gmra.mrb[16].mxu1 %vm1301_vm9, %v9555_v13  ;;  %6149 = vmatmul.mubr.msk.f32.vlgmr.msra.gmra.mrb[6].mxu0 %vm1301_vm9, %v9555_v13 }
 0x5ae   :  { %7335 = vmatpush3.bf16.msra.mxu1 %v7332_v50  ;;  %7495 = vmatpush3.bf16.msra.mxu0 %v7492_v52  ;;  %v1782_v50 = vld [vmem:[#allocation27 + $0x2d0] sm:$0xff]  ;;  %v1783_v52 = vld [vmem:[#allocation27 + $0x2d8] sm:$0xff] }
 0x5af   :  { %7337 = vmatprep.subr.bf16.mxu1 %v7336_v57  ;;  %7497 = vmatprep.subr.bf16.mxu0 %v7496_v3  ;;  %v7512_v59 = vpack.c.bf16 %v1783_v52, %v1782_v50  ;;  %v1513_v50 = vld [vmem:[#allocation27 + $0x1a0] sm:$0xff]  ;;  %v1514_v52 = vld [vmem:[#allocation27 + $0x1a8] sm:$0xff] }
 0x5b0   :  { %6008 = vmatprep.mubr.f32.mxu1 %v9528_v11  ;;  %6183 = vmatprep.mubr.f32.mxu0 %v9528_v11  ;;  %v7372_v14 = vpack.c.bf16 %v1514_v52, %v1513_v50 }
 0x5b2   :  { %7339 = vmatpush3.bf16.msra.mxu1 %v7336_v57  ;;  %7499 = vmatpush3.bf16.msra.mxu0 %v7496_v3  ;;  %v1784_v57 = vld [vmem:[#allocation27 + $0x2e0] sm:$0xff]  ;;  %v1785_v3 = vld [vmem:[#allocation27 + $0x2e8] sm:$0xff] }
 0x5b3   :  { %7341 = vmatprep.subr.bf16.mxu1 %v7340_v33  ;;  %7501 = vmatprep.subr.bf16.mxu0 %v7500_v34  ;;  %v7516_v30 = vpack.c.bf16 %v1785_v3, %v1784_v57  ;;  %v1515_v57 = vld [vmem:[#allocation27 + $0x1b0] sm:$0xff]  ;;  %v1516_v3 = vld [vmem:[#allocation27 + $0x1b8] sm:$0xff] }
 0x5b4   :  { %v7376_v32 = vpack.c.bf16 %v1516_v3, %v1515_v57 }
 0x5b6   :  { %7343 = vmatpush3.bf16.msra.mxu1 %v7340_v33  ;;  %7503 = vmatpush3.bf16.msra.mxu0 %v7500_v34  ;;  %v1786_v33 = vld [vmem:[#allocation27 + $0x2f0] sm:$0xff]  ;;  %v1787_v34 = vld [vmem:[#allocation27 + $0x2f8] sm:$0xff] }
 0x5b7   :  { %7345 = vmatprep.subr.bf16.mxu1 %v7344_v39  ;;  %7505 = vmatprep.subr.bf16.mxu0 %v7504_v40  ;;  %v7520_v16 = vpack.c.bf16 %v1787_v34, %v1786_v33  ;;  %v1517_v33 = vld [vmem:[#allocation27 + $0x1c0] sm:$0xff]  ;;  %v1518_v34 = vld [vmem:[#allocation27 + $0x1c8] sm:$0xff] }
 0x5b8   :  { %v7380_v4 = vpack.c.bf16 %v1518_v34, %v1517_v33 }
 0x5ba   :  { %7347 = vmatpush3.bf16.msra.mxu1 %v7344_v39  ;;  %7507 = vmatpush3.bf16.msra.mxu0 %v7504_v40  ;;  %v1956_v39 = vld [vmem:[#allocation27 + $0x380] sm:$0xff]  ;;  %v1957_v40 = vld [vmem:[#allocation27 + $0x388] sm:$0xff] }
 0x5bb   :  { %7349 = vmatprep.subr.bf16.mxu1 %v7348_v46  ;;  %7509 = vmatprep.subr.bf16.mxu0 %v7508_v17  ;;  %v7524_v43 = vpack.c.bf16 %v1957_v40, %v1956_v39  ;;  %v1519_v39 = vld [vmem:[#allocation27 + $0x1d0] sm:$0xff]  ;;  %v1520_v40 = vld [vmem:[#allocation27 + $0x1d8] sm:$0xff] }
 0x5bc   :  { %v7384_v44 = vpack.c.bf16 %v1520_v40, %v1519_v39 }
 0x5be   :  { %7351 = vmatpush3.bf16.msra.mxu1 %v7348_v46  ;;  %7511 = vmatpush3.bf16.msra.mxu0 %v7508_v17  ;;  %v1958_v46 = vld [vmem:[#allocation27 + $0x390] sm:$0xff]  ;;  %v1959_v17 = vld [vmem:[#allocation27 + $0x398] sm:$0xff] }
 0x5bf   :  { %7353 = vmatprep.subr.bf16.mxu1 %v7352_v55  ;;  %7513 = vmatprep.subr.bf16.mxu0 %v7512_v59  ;;  %v7528_v47 = vpack.c.bf16 %v1959_v17, %v1958_v46  ;;  %v1521_v46 = vld [vmem:[#allocation27 + $0x1e0] sm:$0xff]  ;;  %v1522_v17 = vld [vmem:[#allocation27 + $0x1e8] sm:$0xff] }
 0x5c0   :  { %v7388_v50 = vpack.c.bf16 %v1522_v17, %v1521_v46 }
 0x5c2   :  { %7355 = vmatpush3.bf16.msra.mxu1 %v7352_v55  ;;  %7515 = vmatpush3.bf16.msra.mxu0 %v7512_v59  ;;  %v1960_v55 = vld [vmem:[#allocation27 + $0x3a0] sm:$0xff]  ;;  %v1961_v59 = vld [vmem:[#allocation27 + $0x3a8] sm:$0xff] }
 0x5c3   :  { %7357 = vmatprep.subr.bf16.mxu1 %v7356_v23  ;;  %7517 = vmatprep.subr.bf16.mxu0 %v7516_v30  ;;  %v7532_v19 = vpack.c.bf16 %v1961_v59, %v1960_v55  ;;  %v1523_v55 = vld [vmem:[#allocation27 + $0x1f0] sm:$0xff]  ;;  %v1524_v59 = vld [vmem:[#allocation27 + $0x1f8] sm:$0xff] }
 0x5c4   :  { %v7392_v57 = vpack.c.bf16 %v1524_v59, %v1523_v55 }
 0x5c6   :  { %7359 = vmatpush3.bf16.msra.mxu1 %v7356_v23  ;;  %7519 = vmatpush3.bf16.msra.mxu0 %v7516_v30  ;;  %v1962_v23 = vld [vmem:[#allocation27 + $0x3b0] sm:$0xff]  ;;  %v1963_v30 = vld [vmem:[#allocation27 + $0x3b8] sm:$0xff] }
 0x5c7   :  { %7361 = vmatprep.subr.bf16.mxu1 %v7360_v37  ;;  %7521 = vmatprep.subr.bf16.mxu0 %v7520_v16  ;;  %v7536_v15 = vpack.c.bf16 %v1963_v30, %v1962_v23  ;;  %v1603_v23 = vld [vmem:[#allocation27 + $0x200] sm:$0xff]  ;;  %v1604_v30 = vld [vmem:[#allocation27 + $0x208] sm:$0xff] }
 0x5c8   :  { %v7396_v33 = vpack.c.bf16 %v1604_v30, %v1603_v23 }
 0x5ca   :  { %7363 = vmatpush3.bf16.msra.mxu1 %v7360_v37  ;;  %7523 = vmatpush3.bf16.msra.mxu0 %v7520_v16  ;;  %v1964_v37 = vld [vmem:[#allocation27 + $0x3c0] sm:$0xff]  ;;  %v1965_v16 = vld [vmem:[#allocation27 + $0x3c8] sm:$0xff] }
 0x5cb   :  { %7365 = vmatprep.subr.bf16.mxu1 %v7364_v41  ;;  %7525 = vmatprep.subr.bf16.mxu0 %v7524_v43  ;;  %v7540_v38 = vpack.c.bf16 %v1965_v16, %v1964_v37  ;;  %v1605_v37 = vld [vmem:[#allocation27 + $0x210] sm:$0xff]  ;;  %v1606_v16 = vld [vmem:[#allocation27 + $0x218] sm:$0xff] }
 0x5cc   :  { %v7400_v39 = vpack.c.bf16 %v1606_v16, %v1605_v37 }
 0x5cd   :  { %6009 = vmatmul.mubr.f32.vlgmr.msra.gmra.mrb[16].mxu1 %v9525_v10  ;;  %6184 = vmatmul.mubr.f32.vlgmr.msra.gmra.mrb[6].mxu0 %v9525_v10 }
 0x5ce   :  { %7367 = vmatpush3.bf16.msra.mxu1 %v7364_v41  ;;  %6043 = vmatprep.mubr.msk.f32.mxu1 %vm1300_vm8, %v9558_v56  ;;  %v1966_v41 = vld [vmem:[#allocation27 + $0x3d0] sm:$0xff] }
 0x5cf   :  { %7527 = vmatpush3.bf16.msra.mxu0 %v7524_v43  ;;  %6218 = vmatprep.mubr.msk.f32.mxu0 %vm1300_vm8, %v9558_v56  ;;  %v1967_v43 = vld [vmem:[#allocation27 + $0x3d8] sm:$0xff] }
 0x5d0   :  { %7369 = vmatprep.subr.bf16.mxu1 %v7368_v2  ;;  %7529 = vmatprep.subr.bf16.mxu0 %v7528_v47  ;;  %v7544_v12 = vpack.c.bf16 %v1967_v43, %v1966_v41  ;;  %v1607_v41 = vld [vmem:[#allocation27 + $0x220] sm:$0xff]  ;;  %v1608_v43 = vld [vmem:[#allocation27 + $0x228] sm:$0xff] }
 0x5d1   :  { %v7404_v46 = vpack.c.bf16 %v1608_v43, %v1607_v41 }
 0x5d2   :  { %7371 = vmatpush3.bf16.msra.mxu1 %v7368_v2  ;;  %v1968_v2 = vld [vmem:[#allocation27 + $0x3e0] sm:$0xff] }
 0x5d3   :  { %7531 = vmatpush3.bf16.msra.mxu0 %v7528_v47  ;;  %7373 = vmatprep.subr.bf16.mxu1 %v7372_v14  ;;  %v1969_v47 = vld [vmem:[#allocation27 + $0x3e8] sm:$0xff] }
 0x5d4   :  { %7533 = vmatprep.subr.bf16.mxu0 %v7532_v19  ;;  %v7548_v52 = vpack.c.bf16 %v1969_v47, %v1968_v2  ;;  %v1609_v2 = vld [vmem:[#allocation27 + $0x230] sm:$0xff]  ;;  %v1610_v47 = vld [vmem:[#allocation27 + $0x238] sm:$0xff] }
 0x5d5   :  { %v7408_v55 = vpack.c.bf16 %v1610_v47, %v1609_v2 }
 0x5d6   :  { %7375 = vmatpush3.bf16.msra.mxu1 %v7372_v14  ;;  %v1970_v14 = vld [vmem:[#allocation27 + $0x3f0] sm:$0xff] }
 0x5d7   :  { %7535 = vmatpush3.bf16.msra.mxu0 %v7532_v19  ;;  %7377 = vmatprep.subr.bf16.mxu1 %v7376_v32  ;;  %v1971_v19 = vld [vmem:[#allocation27 + $0x3f8] sm:$0xff] }
 0x5d8   :  { %7537 = vmatprep.subr.bf16.mxu0 %v7536_v15  ;;  %v7552_v3 = vpack.c.bf16 %v1971_v19, %v1970_v14  ;;  %v1611_v14 = vld [vmem:[#allocation27 + $0x240] sm:$0xff]  ;;  %v1612_v19 = vld [vmem:[#allocation27 + $0x248] sm:$0xff] }
 0x5d9   :  { %v7412_v23 = vpack.c.bf16 %v1612_v19, %v1611_v14 }
 0x5da   :  { %7379 = vmatpush3.bf16.msra.mxu1 %v7376_v32  ;;  %v2050_v32 = vld [vmem:[#allocation27 + $0x400] sm:$0xff] }
 0x5db   :  { %7539 = vmatpush3.bf16.msra.mxu0 %v7536_v15  ;;  %7381 = vmatprep.subr.bf16.mxu1 %v7380_v4  ;;  %v2051_v15 = vld [vmem:[#allocation27 + $0x408] sm:$0xff] }
 0x5dc   :  { %7541 = vmatprep.subr.bf16.mxu0 %v7540_v38  ;;  %v7556_v34 = vpack.c.bf16 %v2051_v15, %v2050_v32  ;;  %v1613_v32 = vld [vmem:[#allocation27 + $0x250] sm:$0xff]  ;;  %v1614_v15 = vld [vmem:[#allocation27 + $0x258] sm:$0xff] }
 0x5dd   :  { %v7416_v37 = vpack.c.bf16 %v1614_v15, %v1613_v32 }
 0x5de   :  { %7383 = vmatpush3.bf16.msra.mxu1 %v7380_v4  ;;  %v2052_v4 = vld [vmem:[#allocation27 + $0x410] sm:$0xff] }
 0x5df   :  { %7543 = vmatpush3.bf16.msra.mxu0 %v7540_v38  ;;  %7385 = vmatprep.subr.bf16.mxu1 %v7384_v44  ;;  %v2053_v38 = vld [vmem:[#allocation27 + $0x418] sm:$0xff] }
 0x5e0   :  { %7545 = vmatprep.subr.bf16.mxu0 %v7544_v12  ;;  %v7560_v40 = vpack.c.bf16 %v2053_v38, %v2052_v4  ;;  %v1615_v4 = vld [vmem:[#allocation27 + $0x260] sm:$0xff]  ;;  %v1616_v38 = vld [vmem:[#allocation27 + $0x268] sm:$0xff] }
 0x5e1   :  { %v7420_v41 = vpack.c.bf16 %v1616_v38, %v1615_v4 }
 0x5e2   :  { %7387 = vmatpush3.bf16.msra.mxu1 %v7384_v44  ;;  %v2054_v44 = vld [vmem:[#allocation27 + $0x420] sm:$0xff] }
 0x5e3   :  { %7547 = vmatpush3.bf16.msra.mxu0 %v7544_v12  ;;  %7389 = vmatprep.subr.bf16.mxu1 %v7388_v50  ;;  %v2055_v12 = vld [vmem:[#allocation27 + $0x428] sm:$0xff] }
 0x5e4   :  { %7549 = vmatprep.subr.bf16.mxu0 %v7548_v52  ;;  %v7564_v17 = vpack.c.bf16 %v2055_v12, %v2054_v44  ;;  %v1617_v44 = vld [vmem:[#allocation27 + $0x270] sm:$0xff]  ;;  %v1618_v12 = vld [vmem:[#allocation27 + $0x278] sm:$0xff] }
 0x5e5   :  { %v7424_v2 = vpack.c.bf16 %v1618_v12, %v1617_v44 }
 0x5e6   :  { %7391 = vmatpush3.bf16.msra.mxu1 %v7388_v50  ;;  %v2056_v50 = vld [vmem:[#allocation27 + $0x430] sm:$0xff] }
 0x5e7   :  { %7551 = vmatpush3.bf16.msra.mxu0 %v7548_v52  ;;  %7393 = vmatprep.subr.bf16.mxu1 %v7392_v57  ;;  %v2057_v52 = vld [vmem:[#allocation27 + $0x438] sm:$0xff] }
 0x5e8   :  { %7553 = vmatprep.subr.bf16.mxu0 %v7552_v3  ;;  %v7568_v59 = vpack.c.bf16 %v2057_v52, %v2056_v50  ;;  %v1308_v50 = vld [vmem:[#allocation27] sm:$0xff]  ;;  %v1309_v52 = vld [vmem:[#allocation27 + $0x8] sm:$0xff] }
 0x5e9   :  { %v7428_v14 = vpack.c.bf16 %v1309_v52, %v1308_v50  ;;  %v1318_v52 = vld [vmem:[#allocation27 + $0x50] sm:$0xff] }
 0x5ea   :  { %7395 = vmatpush3.bf16.msra.mxu1 %v7392_v57  ;;  %v2058_v57 = vld [vmem:[#allocation27 + $0x440] sm:$0xff] }
 0x5eb   :  { %7555 = vmatpush3.bf16.msra.mxu0 %v7552_v3  ;;  %7397 = vmatprep.subr.bf16.mxu1 %v7396_v33  ;;  %v2059_v3 = vld [vmem:[#allocation27 + $0x448] sm:$0xff] }
 0x5ec   :  { %7557 = vmatprep.subr.bf16.mxu0 %v7556_v34  ;;  %v7572_v30 = vpack.c.bf16 %v2059_v3, %v2058_v57  ;;  %v1310_v57 = vld [vmem:[#allocation27 + $0x10] sm:$0xff]  ;;  %v1311_v3 = vld [vmem:[#allocation27 + $0x18] sm:$0xff] }
 0x5ed   :  { %6044 = vmatmul.mubr.msk.f32.vlgmr.msra.gmra.mrb[16].mxu1 %vm1301_vm9, %v9561_v1  ;;  %v7432_v32 = vpack.c.bf16 %v1311_v3, %v1310_v57  ;;  %v1320_v57 = vld [vmem:[#allocation27 + $0x60] sm:$0xff]  ;;  %v1321_v3 = vld [vmem:[#allocation27 + $0x68] sm:$0xff] }
 0x5ee   :  { %6219 = vmatmul.mubr.msk.f32.vlgmr.msra.gmra.mrb[6].mxu0 %vm1301_vm9, %v9561_v1  ;;  %7399 = vmatpush3.bf16.msra.mxu1 %v7396_v33  ;;  %v2060_v33 = vld [vmem:[#allocation27 + $0x450] sm:$0xff] }
 0x5ef   :  { %7559 = vmatpush3.bf16.msra.mxu0 %v7556_v34  ;;  %7401 = vmatprep.subr.bf16.mxu1 %v7400_v39  ;;  %v2061_v34 = vld [vmem:[#allocation27 + $0x458] sm:$0xff] }
 0x5f0   :  { %7561 = vmatprep.subr.bf16.mxu0 %v7560_v40  ;;  %6253 = vmatprep.mubr.f32.mxu0 %v9538_v51  ;;  %v7576_v16 = vpack.c.bf16 %v2061_v34, %v2060_v33  ;;  %v1312_v33 = vld [vmem:[#allocation27 + $0x20] sm:$0xff]  ;;  %v1313_v34 = vld [vmem:[#allocation27 + $0x28] sm:$0xff] }
 0x5f1   :  { %6078 = vmatprep.mubr.f32.mxu1 %v9538_v51  ;;  %v7436_v4 = vpack.c.bf16 %v1313_v34, %v1312_v33  ;;  %v1322_v33 = vld [vmem:[#allocation27 + $0x70] sm:$0xff]  ;;  %v1323_v34 = vld [vmem:[#allocation27 + $0x78] sm:$0xff] }
 0x5f2   :  { %7403 = vmatpush3.bf16.msra.mxu1 %v7400_v39  ;;  %v2062_v39 = vld [vmem:[#allocation27 + $0x460] sm:$0xff] }
 0x5f3   :  { %7563 = vmatpush3.bf16.msra.mxu0 %v7560_v40  ;;  %7405 = vmatprep.subr.bf16.mxu1 %v7404_v46  ;;  %v2063_v40 = vld [vmem:[#allocation27 + $0x468] sm:$0xff] }
 0x5f4   :  { %7565 = vmatprep.subr.bf16.mxu0 %v7564_v17  ;;  %v7580_v43 = vpack.c.bf16 %v2063_v40, %v2062_v39  ;;  %v1314_v39 = vld [vmem:[#allocation27 + $0x30] sm:$0xff]  ;;  %v1315_v40 = vld [vmem:[#allocation27 + $0x38] sm:$0xff] }
 0x5f5   :  { %v7440_v44 = vpack.c.bf16 %v1315_v40, %v1314_v39  ;;  %v2158_v39 = vld [vmem:[#allocation27 + $0x480] sm:$0xff]  ;;  %v2159_v40 = vld [vmem:[#allocation27 + $0x488] sm:$0xff] }
 0x5f6   :  { %7407 = vmatpush3.bf16.msra.mxu1 %v7404_v46  ;;  %v2064_v46 = vld [vmem:[#allocation27 + $0x470] sm:$0xff] }
 0x5f7   :  { %7567 = vmatpush3.bf16.msra.mxu0 %v7564_v17  ;;  %7409 = vmatprep.subr.bf16.mxu1 %v7408_v55  ;;  %v2065_v17 = vld [vmem:[#allocation27 + $0x478] sm:$0xff] }
 0x5f8   :  { %7569 = vmatprep.subr.bf16.mxu0 %v7568_v59  ;;  %v7584_v47 = vpack.c.bf16 %v2065_v17, %v2064_v46  ;;  %v1316_v46 = vld [vmem:[#allocation27 + $0x40] sm:$0xff]  ;;  %v1317_v17 = vld [vmem:[#allocation27 + $0x48] sm:$0xff] }
 0x5fa   :  { %7411 = vmatpush3.bf16.msra.mxu1 %v7408_v55  ;;  %v2175_v55 = vld [vmem:[#allocation27 + $0x500] sm:$0xff] }
 0x5fb   :  { %7571 = vmatpush3.bf16.msra.mxu0 %v7568_v59  ;;  %7413 = vmatprep.subr.bf16.mxu1 %v7412_v23  ;;  %v2176_v59 = vld [vmem:[#allocation27 + $0x508] sm:$0xff] }
 0x5fc   :  { %7573 = vmatprep.subr.bf16.mxu0 %v7572_v30  ;;  %v7588_v19 = vpack.c.bf16 %v2176_v59, %v2175_v55  ;;  %v1319_v55 = vld [vmem:[#allocation27 + $0x58] sm:$0xff]  ;;  %v2185_v59 = vld [vmem:[#allocation27 + $0x550] sm:$0xff] }
 0x5fe   :  { %7415 = vmatpush3.bf16.msra.mxu1 %v7412_v23  ;;  %v2177_v23 = vld [vmem:[#allocation27 + $0x510] sm:$0xff] }
 0x5ff   :  { %7575 = vmatpush3.bf16.msra.mxu0 %v7572_v30  ;;  %7417 = vmatprep.subr.bf16.mxu1 %v7416_v37  ;;  %v2178_v30 = vld [vmem:[#allocation27 + $0x518] sm:$0xff] }
 0x600   :  { %7577 = vmatprep.subr.bf16.mxu0 %v7576_v16  ;;  %v7592_v15 = vpack.c.bf16 %v2178_v30, %v2177_v23  ;;  %v2187_v23 = vld [vmem:[#allocation27 + $0x560] sm:$0xff]  ;;  %v2188_v30 = vld [vmem:[#allocation27 + $0x568] sm:$0xff] }
 0x602   :  { %7419 = vmatpush3.bf16.msra.mxu1 %v7416_v37  ;;  %v2179_v37 = vld [vmem:[#allocation27 + $0x520] sm:$0xff] }
 0x603   :  { %7579 = vmatpush3.bf16.msra.mxu0 %v7576_v16  ;;  %7421 = vmatprep.subr.bf16.mxu1 %v7420_v41  ;;  %v2180_v16 = vld [vmem:[#allocation27 + $0x528] sm:$0xff] }
 0x604   :  { %7581 = vmatprep.subr.bf16.mxu0 %v7580_v43  ;;  %v7596_v38 = vpack.c.bf16 %v2180_v16, %v2179_v37  ;;  %v2189_v37 = vld [vmem:[#allocation27 + $0x570] sm:$0xff]  ;;  %v2190_v16 = vld [vmem:[#allocation27 + $0x578] sm:$0xff] }
 0x606   :  { %7423 = vmatpush3.bf16.msra.mxu1 %v7420_v41  ;;  %v2181_v41 = vld [vmem:[#allocation27 + $0x530] sm:$0xff] }
 0x607   :  { %7583 = vmatpush3.bf16.msra.mxu0 %v7580_v43  ;;  %7425 = vmatprep.subr.bf16.mxu1 %v7424_v2  ;;  %v2182_v43 = vld [vmem:[#allocation27 + $0x538] sm:$0xff] }
 0x608   :  { %7585 = vmatprep.subr.bf16.mxu0 %v7584_v47  ;;  %v7600_v12 = vpack.c.bf16 %v2182_v43, %v2181_v41  ;;  %v7620_v41 = vpack.c.bf16 %v2159_v40, %v2158_v39  ;;  %v2160_v43 = vld [vmem:[#allocation27 + $0x490] sm:$0xff]  ;;  %v2349_v40 = vld [vmem:[#allocation27 + $0x5b8] sm:$0xff] }
 0x609   :  { %v2348_v39 = vld [vmem:[#allocation27 + $0x5b0] sm:$0xff] }
 0x60a   :  { %7427 = vmatpush3.bf16.msra.mxu1 %v7424_v2  ;;  %v2183_v2 = vld [vmem:[#allocation27 + $0x540] sm:$0xff] }
 0x60b   :  { %7587 = vmatpush3.bf16.msra.mxu0 %v7584_v47  ;;  %7429 = vmatprep.subr.bf16.mxu1 %v7428_v14  ;;  %v7444_v47 = vpack.c.bf16 %v1317_v17, %v1316_v46  ;;  %v2162_v46 = vld [vmem:[#allocation27 + $0x4a0] sm:$0xff]  ;;  %v2163_v17 = vld [vmem:[#allocation27 + $0x4a8] sm:$0xff] }
 0x60c   :  { %7589 = vmatprep.subr.bf16.mxu0 %v7588_v19 }
 0x60d   :  { %6079 = vmatmul.mubr.f32.vlgmr.msra.gmra.mrb[16].mxu1 %v9536_v49 }
 0x60e   :  { %6254 = vmatmul.mubr.f32.vlgmr.msra.gmra.mrb[6].mxu0 %v9536_v49  ;;  %7431 = vmatpush3.bf16.msra.mxu1 %v7428_v14  ;;  %v7448_v14 = vpack.c.bf16 %v1319_v55, %v1318_v52  ;;  %v2166_v52 = vld [vmem:[#allocation27 + $0x4c0] sm:$0xff]  ;;  %v2167_v55 = vld [vmem:[#allocation27 + $0x4c8] sm:$0xff] }
 0x60f   :  { %7591 = vmatpush3.bf16.msra.mxu0 %v7588_v19  ;;  %6288 = vmatprep.mubr.msk.f32.mxu0 %vm1300_vm8, %v9551_v6  ;;  %v2184_v6 = vld [vmem:[#allocation27 + $0x548] sm:$0xff] }
 0x610   :  { %7433 = vmatprep.subr.bf16.mxu1 %v7432_v32  ;;  %7593 = vmatprep.subr.bf16.mxu0 %v7592_v15  ;;  %v7604_v50 = vpack.c.bf16 %v2184_v6, %v2183_v2  ;;  %v7628_v2 = vpack.c.bf16 %v2163_v17, %v2162_v46  ;;  %v2164_v6 = vld [vmem:[#allocation27 + $0x4b0] sm:$0xff]  ;;  %v2353_v17 = vld [vmem:[#allocation27 + $0x5d8] sm:$0xff] }
 0x611   :  { %6113 = vmatprep.mubr.f32.mxu1 %v9403_v53  ;;  %v2186_v53 = vld [vmem:[#allocation27 + $0x558] sm:$0xff]  ;;  %v2352_v46 = vld [vmem:[#allocation27 + $0x5d0] sm:$0xff] }
 0x612   :  { %7435 = vmatpush3.bf16.msra.mxu1 %v7432_v32  ;;  %v7608_v19 = vpack.c.bf16 %v2186_v53, %v2185_v59  ;;  %v7452_v32 = vpack.c.bf16 %v1321_v3, %v1320_v57  ;;  %v2168_v59 = vld [vmem:[#allocation27 + $0x4d0] sm:$0xff]  ;;  %v2169_v53 = vld [vmem:[#allocation27 + $0x4d8] sm:$0xff] }
 0x613   :  { %7595 = vmatpush3.bf16.msra.mxu0 %v7592_v15  ;;  %7437 = vmatprep.subr.bf16.mxu1 %v7436_v4  ;;  %v7612_v15 = vpack.c.bf16 %v2188_v30, %v2187_v23  ;;  %v2172_v57 = vld [vmem:[#allocation27 + $0x4f0] sm:$0xff]  ;;  %v2173_v3 = vld [vmem:[#allocation27 + $0x4f8] sm:$0xff]  ;;  %v2342_v30 = vld [vmem:[#allocation27 + $0x580] sm:$0xff] }
 0x614   :  { %7597 = vmatprep.subr.bf16.mxu0 %v7596_v38  ;;  %v7648_v23 = vpack.c.bf16 %v2173_v3, %v2172_v57  ;;  %v2442_v3 = vld [vmem:[#allocation27 + $0x630] sm:$0xff] }
 0x616   :  { %7439 = vmatpush3.bf16.msra.mxu1 %v7436_v4  ;;  %v7456_v4 = vpack.c.bf16 %v1323_v34, %v1322_v33  ;;  %v2344_v33 = vld [vmem:[#allocation27 + $0x590] sm:$0xff]  ;;  %v2345_v34 = vld [vmem:[#allocation27 + $0x598] sm:$0xff] }
 0x617   :  { %7599 = vmatpush3.bf16.msra.mxu0 %v7596_v38  ;;  %7441 = vmatprep.subr.bf16.mxu1 %v7440_v44  ;;  %v7616_v38 = vpack.c.bf16 %v2190_v16, %v2189_v37  ;;  %v7656_v37 = vpack.c.bf16 %v2345_v34, %v2344_v33  ;;  %v2346_v16 = vld [vmem:[#allocation27 + $0x5a0] sm:$0xff]  ;;  %v2446_v34 = vld [vmem:[#allocation27 + $0x650] sm:$0xff] }
 0x618   :  { %7601 = vmatprep.subr.bf16.mxu0 %v7600_v12 }
 0x61a   :  { %7443 = vmatpush3.bf16.msra.mxu1 %v7440_v44  ;;  %v2161_v44 = vld [vmem:[#allocation27 + $0x498] sm:$0xff] }
 0x61b   :  { %7603 = vmatpush3.bf16.msra.mxu0 %v7600_v12  ;;  %7445 = vmatprep.subr.bf16.mxu1 %v7444_v47  ;;  %v7624_v12 = vpack.c.bf16 %v2161_v44, %v2160_v43  ;;  %v2350_v43 = vld [vmem:[#allocation27 + $0x5c0] sm:$0xff]  ;;  %v2351_v44 = vld [vmem:[#allocation27 + $0x5c8] sm:$0xff] }
 0x61c   :  { %7605 = vmatprep.subr.bf16.mxu0 %v7604_v50 }
 0x61e   :  { %7447 = vmatpush3.bf16.msra.mxu1 %v7444_v47  ;;  %v2165_v47 = vld [vmem:[#allocation27 + $0x4b8] sm:$0xff] }
 0x61f   :  { %7607 = vmatpush3.bf16.msra.mxu0 %v7604_v50  ;;  %7449 = vmatprep.subr.bf16.mxu1 %v7448_v14  ;;  %v7632_v50 = vpack.c.bf16 %v2165_v47, %v2164_v6  ;;  %v2355_v6 = vld [vmem:[#allocation27 + $0x5e8] sm:$0xff]  ;;  %v2356_v47 = vld [vmem:[#allocation27 + $0x5f0] sm:$0xff] }
 0x620   :  { %7609 = vmatprep.subr.bf16.mxu0 %v7608_v19 }
 0x622   :  { %7451 = vmatpush3.bf16.msra.mxu1 %v7448_v14  ;;  %v2170_v14 = vld [vmem:[#allocation27 + $0x4e0] sm:$0xff] }
 0x623   :  { %7611 = vmatpush3.bf16.msra.mxu0 %v7608_v19  ;;  %7453 = vmatprep.subr.bf16.mxu1 %v7452_v32  ;;  %v2171_v19 = vld [vmem:[#allocation27 + $0x4e8] sm:$0xff] }
 0x624   :  { %7613 = vmatprep.subr.bf16.mxu0 %v7612_v15 }
 0x626   :  { %7455 = vmatpush3.bf16.msra.mxu1 %v7452_v32  ;;  %v2343_v32 = vld [vmem:[#allocation27 + $0x588] sm:$0xff] }
 0x627   :  { %7615 = vmatpush3.bf16.msra.mxu0 %v7612_v15  ;;  %7457 = vmatprep.subr.bf16.mxu1 %v7456_v4  ;;  %v7652_v15 = vpack.c.bf16 %v2343_v32, %v2342_v30  ;;  %v2444_v32 = vld [vmem:[#allocation27 + $0x640] sm:$0xff] }
 0x628   :  { %7617 = vmatprep.subr.bf16.mxu0 %v7616_v38 }
 0x62a   :  { %7459 = vmatpush3.bf16.msra.mxu1 %v7456_v4  ;;  %v2347_v4 = vld [vmem:[#allocation27 + $0x5a8] sm:$0xff] }
 0x62b   :  { %7619 = vmatpush3.bf16.msra.mxu0 %v7616_v38  ;;  %v7660_v38 = vpack.c.bf16 %v2347_v4, %v2346_v16  ;;  %v2448_v16 = vld [vmem:[#allocation27 + $0x660] sm:$0xff]  ;;  %v2449_v4 = vld [vmem:[#allocation27 + $0x668] sm:$0xff] }
 0x62c   :  { %7621 = vmatprep.subr.bf16.mxu0 %v7620_v41 }
 0x62d   :  { %6114 = vmatmul.mubr.f32.vlgmr.msra.gmra.mrb[16].mxu1 %v9405_v54  ;;  %v7636_v54 = vpack.c.bf16 %v2167_v55, %v2166_v52  ;;  %v2436_v55 = vld [vmem:[#allocation27 + $0x600] sm:$0xff] }
 0x62e   :  { %6289 = vmatmul.mubr.msk.f32.vlgmr.msra.gmra.mrb[8].mxu0 %vm1301_vm9, %v9555_v13  ;;  %v7640_v13 = vpack.c.bf16 %v2169_v53, %v2168_v59  ;;  %v2438_v53 = vld [vmem:[#allocation27 + $0x610] sm:$0xff] }
 0x62f   :  { %7623 = vmatpush3.bf16.msra.mxu0 %v7620_v41  ;;  %6323 = vmatprep.mubr.f32.mxu0 %v9528_v11  ;;  %v7644_v11 = vpack.c.bf16 %v2171_v19, %v2170_v14  ;;  %v7664_v41 = vpack.c.bf16 %v2349_v40, %v2348_v39  ;;  %v2440_v19 = vld [vmem:[#allocation27 + $0x620] sm:$0xff]  ;;  %v2451_v39 = vld [vmem:[#allocation27 + $0x678] sm:$0xff] }
 0x630   :  { %7625 = vmatprep.subr.bf16.mxu0 %v7624_v12  ;;  %v2552_v40 = vld [vmem:[#allocation30] sm:$0xff] }
 0x633   :  { %7627 = vmatpush3.bf16.msra.mxu0 %v7624_v12  ;;  %v7668_v12 = vpack.c.bf16 %v2351_v44, %v2350_v43  ;;  %v2554_v43 = vld [vmem:[#allocation30 + $0x10] sm:$0xff] }
 0x634   :  { %7629 = vmatprep.subr.bf16.mxu0 %v7628_v2 }
 0x637   :  { %7631 = vmatpush3.bf16.msra.mxu0 %v7628_v2  ;;  %v2354_v2 = vld [vmem:[#allocation27 + $0x5e0] sm:$0xff] }
 0x638   :  { %7633 = vmatprep.subr.bf16.mxu0 %v7632_v50 }
 0x63b   :  { %7635 = vmatpush3.bf16.msra.mxu0 %v7632_v50  ;;  %v2357_v50 = vld [vmem:[#allocation27 + $0x5f8] sm:$0xff] }
 0x63c   :  { %7637 = vmatprep.subr.bf16.mxu0 %v7636_v54  ;;  %v7680_v52 = vpack.c.bf16 %v2357_v50, %v2356_v47  ;;  %v2559_v47 = vld [vmem:[#allocation30 + $0x38] sm:$0xff] }
 0x63f   :  { %7639 = vmatpush3.bf16.msra.mxu0 %v7636_v54  ;;  %v2437_v54 = vld [vmem:[#allocation27 + $0x608] sm:$0xff] }
 0x640   :  { %7641 = vmatprep.subr.bf16.mxu0 %v7640_v13  ;;  %v7684_v59 = vpack.c.bf16 %v2437_v54, %v2436_v55  ;;  %v2561_v55 = vld [vmem:[#allocation30 + $0x48] sm:$0xff] }
 0x643   :  { %7643 = vmatpush3.bf16.msra.mxu0 %v7640_v13  ;;  %v2439_v13 = vld [vmem:[#allocation27 + $0x618] sm:$0xff] }
 0x644   :  { %7645 = vmatprep.subr.bf16.mxu0 %v7644_v11  ;;  %v7688_v14 = vpack.c.bf16 %v2439_v13, %v2438_v53  ;;  %v2563_v53 = vld [vmem:[#allocation30 + $0x58] sm:$0xff] }
 0x647   :  { %7647 = vmatpush3.bf16.msra.mxu0 %v7644_v11  ;;  %v2441_v11 = vld [vmem:[#allocation27 + $0x628] sm:$0xff] }
 0x648   :  { %7649 = vmatprep.subr.bf16.mxu0 %v7648_v23  ;;  %v7692_v57 = vpack.c.bf16 %v2441_v11, %v2440_v19  ;;  %v2565_v19 = vld [vmem:[#allocation30 + $0x68] sm:$0xff] }
 0x64b   :  { %7651 = vmatpush3.bf16.msra.mxu0 %v7648_v23  ;;  %v2443_v23 = vld [vmem:[#allocation27 + $0x638] sm:$0xff] }
 0x64c   :  { %7653 = vmatprep.subr.bf16.mxu0 %v7652_v15  ;;  %v7696_v30 = vpack.c.bf16 %v2443_v23, %v2442_v3  ;;  %v2566_v3 = vld [vmem:[#allocation30 + $0x70] sm:$0xff]  ;;  %v2567_v23 = vld [vmem:[#allocation30 + $0x78] sm:$0xff] }
 0x64e   :  { %6324 = vmatmul.mubr.f32.vlgmr.msra.gmra.mrb[8].mxu0 %v9525_v10  ;;  %v7672_v10 = vpack.c.bf16 %v2353_v17, %v2352_v46 }
 0x64f   :  { %7655 = vmatpush3.bf16.msra.mxu0 %v7652_v15  ;;  %6358 = vmatprep.mubr.msk.f32.mxu0 %vm1300_vm8, %v9558_v56  ;;  %v7676_v56 = vpack.c.bf16 %v2355_v6, %v2354_v2  ;;  %v2445_v15 = vld [vmem:[#allocation27 + $0x648] sm:$0xff] }
 0x650   :  { %7657 = vmatprep.subr.bf16.mxu0 %v7656_v37  ;;  %v7700_v33 = vpack.c.bf16 %v2445_v15, %v2444_v32  ;;  %v2557_v2 = vld [vmem:[#allocation30 + $0x28] sm:$0xff] }
 0x651   :  { %v2654_v32 = vld [vmem:[#allocation18 + $0x88] sm:$0xff] }
 0x653   :  { %7659 = vmatpush3.bf16.msra.mxu0 %v7656_v37  ;;  %v2447_v37 = vld [vmem:[#allocation27 + $0x658] sm:$0xff] }
 0x654   :  { %7661 = vmatprep.subr.bf16.mxu0 %v7660_v38 }
 0x657   :  { %7663 = vmatpush3.bf16.msra.mxu0 %v7660_v38  ;;  %v2450_v38 = vld [vmem:[#allocation27 + $0x670] sm:$0xff] }
 0x658   :  { %7665 = vmatprep.subr.bf16.mxu0 %v7664_v41  ;;  %v7712_v46 = vpack.c.bf16 %v2451_v39, %v2450_v38 }
 0x65b   :  { %7667 = vmatpush3.bf16.msra.mxu0 %v7664_v41  ;;  %v2553_v41 = vld [vmem:[#allocation30 + $0x8] sm:$0xff] }
 0x65c   :  { %7669 = vmatprep.subr.bf16.mxu0 %v7668_v12  ;;  %v7716_v44 = vpack.c.bf16 %v2553_v41, %v2552_v40  ;;  %v9631_v41 = vpop.permute.xlu0 %2531 }
 0x65e   :  { %7717 = vmatprep.subr.bf16.mxu1 %v7716_v44 }
 0x65f   :  { %7671 = vmatpush3.bf16.msra.mxu0 %v7668_v12  ;;  %v2555_v12 = vld [vmem:[#allocation30 + $0x18] sm:$0xff]  ;;  %7719 = vmatpush3.bf16.msra.mxu1 %v7716_v44 }
 0x660   :  { %7673 = vmatprep.subr.bf16.mxu0 %v7672_v10  ;;  %v7720_v17 = vpack.c.bf16 %v2555_v12, %v2554_v43 }
 0x662   :  { %7721 = vmatprep.subr.bf16.mxu1 %v7720_v17 }
 0x663   :  { %7675 = vmatpush3.bf16.msra.mxu0 %v7672_v10  ;;  %v2556_v10 = vld [vmem:[#allocation30 + $0x20] sm:$0xff]  ;;  %7723 = vmatpush3.bf16.msra.mxu1 %v7720_v17  ;;  %v4940_v17 = vld [vmem:[#allocation28] ss:$0 sm:$0xff] }
 0x664   :  { %7677 = vmatprep.subr.bf16.mxu0 %v7676_v56  ;;  %v7724_v6 = vpack.c.bf16 %v2557_v2, %v2556_v10  ;;  %v2655_v2 = vld [vmem:[#allocation18 + $0x90] sm:$0xff] }
 0x666   :  { %7725 = vmatprep.subr.bf16.mxu1 %v7724_v6 }
 0x667   :  { %7679 = vmatpush3.bf16.msra.mxu0 %v7676_v56  ;;  %v2558_v56 = vld [vmem:[#allocation30 + $0x30] sm:$0xff]  ;;  %7727 = vmatpush3.bf16.msra.mxu1 %v7724_v6 }
 0x668   :  { %7681 = vmatprep.subr.bf16.mxu0 %v7680_v52  ;;  %v7728_v50 = vpack.c.bf16 %v2559_v47, %v2558_v56  ;;  %v2656_v6 = vld [vmem:[#allocation18 + $0x98] sm:$0xff] }
 0x66a   :  { %7729 = vmatprep.subr.bf16.mxu1 %v7728_v50 }
 0x66b   :  { %7683 = vmatpush3.bf16.msra.mxu0 %v7680_v52  ;;  %v2560_v52 = vld [vmem:[#allocation30 + $0x40] sm:$0xff]  ;;  %7731 = vmatpush3.bf16.msra.mxu1 %v7728_v50  ;;  %v7752_v50 = vpack.c.bf16 %v2656_v6, %v2655_v2 }
 0x66c   :  { %7685 = vmatprep.subr.bf16.mxu0 %v7684_v59  ;;  %v7732_v54 = vpack.c.bf16 %v2561_v55, %v2560_v52  ;;  %v2657_v52 = vld [vmem:[#allocation18 + $0xa0] sm:$0xff]  ;;  %v2658_v55 = vld [vmem:[#allocation18 + $0xa8] sm:$0xff] }
 0x66d   :  { %v2772_v2 = vld [vmem:[#allocation21 + $0xc8] sm:$0xff] }
 0x66e   :  { %6359 = vmatmul.mubr.msk.f32.vlgmr.msra.gmra.mrb[8].mxu0 %vm1301_vm9, %v9561_v1  ;;  %v7704_v1 = vpack.c.bf16 %v2447_v37, %v2446_v34  ;;  %7733 = vmatprep.subr.bf16.mxu1 %v7732_v54 }
 0x66f   :  { %7687 = vmatpush3.bf16.msra.mxu0 %v7684_v59  ;;  %6393 = vmatprep.mubr.f32.mxu0 %v9538_v51  ;;  %v7708_v51 = vpack.c.bf16 %v2449_v4, %v2448_v16  ;;  %v2562_v59 = vld [vmem:[#allocation30 + $0x50] sm:$0xff] }
 0x670   :  { %7689 = vmatprep.subr.bf16.mxu0 %v7688_v14  ;;  %v7736_v13 = vpack.c.bf16 %v2563_v53, %v2562_v59  ;;  %7735 = vmatpush3.bf16.msra.mxu1 %v7732_v54  ;;  %v7756_v54 = vpack.c.bf16 %v2658_v55, %v2657_v52  ;;  %v2659_v59 = vld [vmem:[#allocation18 + $0xb0] sm:$0xff]  ;;  %v2660_v53 = vld [vmem:[#allocation18 + $0xb8] sm:$0xff] }
 0x671   :  { %v2778_v55 = vld [vmem:[#allocation21 + $0xf8] sm:$0xff] }
 0x672   :  { %7737 = vmatprep.subr.bf16.mxu1 %v7736_v13 }
 0x673   :  { %7691 = vmatpush3.bf16.msra.mxu0 %v7688_v14  ;;  %v2564_v14 = vld [vmem:[#allocation30 + $0x60] sm:$0xff] }
 0x674   :  { %7693 = vmatprep.subr.bf16.mxu0 %v7692_v57  ;;  %7739 = vmatpush3.bf16.msra.mxu1 %v7736_v13  ;;  %v7740_v11 = vpack.c.bf16 %v2565_v19, %v2564_v14  ;;  %v7760_v13 = vpack.c.bf16 %v2660_v53, %v2659_v59  ;;  %v2661_v14 = vld [vmem:[#allocation18 + $0xc0] sm:$0xff]  ;;  %v2662_v19 = vld [vmem:[#allocation18 + $0xc8] sm:$0xff] }
 0x675   :  { %v2855_v59 = vld [vmem:[#allocation22 + $0x80] sm:$0xff]  ;;  %v2856_v53 = vld [vmem:[#allocation22 + $0x88] sm:$0xff] }
 0x676   :  { %7741 = vmatprep.subr.bf16.mxu1 %v7740_v11 }
 0x677   :  { %7695 = vmatpush3.bf16.msra.mxu0 %v7692_v57 }
 0x678   :  { %7697 = vmatprep.subr.bf16.mxu0 %v7696_v30  ;;  %7743 = vmatpush3.bf16.msra.mxu1 %v7740_v11  ;;  %v7764_v11 = vpack.c.bf16 %v2662_v19, %v2661_v14  ;;  %v4941_v14 = vld [vmem:[#allocation31] ss:$0 sm:$0xff] }
 0x67b   :  { %7699 = vmatpush3.bf16.msra.mxu0 %v7696_v30  ;;  %v7744_v30 = vpack.c.bf16 %v2567_v23, %v2566_v3  ;;  %v2665_v23 = vld [vmem:[#allocation18 + $0xe0] sm:$0xff] }
 0x67c   :  { %7701 = vmatprep.subr.bf16.mxu0 %v7700_v33 }
 0x67d   :  { %7745 = vmatprep.subr.bf16.mxu1 %v7744_v30 }
 0x67e   :  { %7747 = vmatpush3.bf16.msra.mxu1 %v7744_v30  ;;  %v2666_v30 = vld [vmem:[#allocation18 + $0xe8] sm:$0xff] }
 0x67f   :  { %7703 = vmatpush3.bf16.msra.mxu0 %v7700_v33  ;;  %v9623_v33 = vpop.permute.xlu1 %2145 }
 0x680   :  { %7705 = vmatprep.subr.bf16.mxu0 %v7704_v1 }
 0x683   :  { %7707 = vmatpush3.bf16.msra.mxu0 %v7704_v1  ;;  %v9625_v34 = vpop.permute.xlu1 %2150 }
 0x684   :  { %7709 = vmatprep.subr.bf16.mxu0 %v7708_v51 }
 0x687   :  { %7711 = vmatpush3.bf16.msra.mxu0 %v7708_v51  ;;  %v9629_v39 = vpop.permute.xlu1 %2536 }
 0x688   :  { %7713 = vmatprep.subr.bf16.mxu0 %v7712_v46 }
 0x68b   :  { %7715 = vmatpush3.bf16.msra.mxu0 %v7712_v46 }
 0x68e   :  { %6394 = vmatmul.mubr.f32.vlgmr.msra.gmra.mrb[8].mxu0 %v9536_v49 }
 0x68f   :  { %6553 = vmatprep.mubr.msk.f32.mxu0 %vm733_vm2, %v4973_v61  ;;  %v2653_v61 = vld [vmem:[#allocation18 + $0x80] sm:$0xff] }
 0x690   :  { %v7748_v15 = vpack.c.bf16 %v2654_v32, %v2653_v61  ;;  %v2667_v61 = vld [vmem:[#allocation18 + $0xf0] sm:$0xff]  ;;  %v2668_v32 = vld [vmem:[#allocation18 + $0xf8] sm:$0xff] }
 0x692   :  { %7749 = vmatprep.subr.bf16.mxu1 %v7748_v15 }
 0x6e1   :  { %v6255_v57 = vpop.f32.mrb[6].mxu0 }
 0x6e2   :  { %v2132_v49 = vpop.f32.mrb[7].mxu0  ;;  %v2154_v37 = vmul.f32 %v6255_v57, %v9625_v34  ;;  %v2663_v57 = vld [vmem:[#allocation18 + $0xd0] sm:$0xff] }
 0x6e3   :  { %v2153_v1 = vmul.f32 %v9623_v33, %v2132_v49  ;;  %v2664_v49 = vld [vmem:[#allocation18 + $0xd8] sm:$0xff] }
 0x6e4   :  { %v7768_v3 = vpack.c.bf16 %v2664_v49, %v2663_v57 }
 0x700   :  { %v6115_v16 = vpop.f32.mrb[16].mxu1 }
 0x701   :  { %v2156_v4 = vadd.f32 %v6115_v16, %v2154_v37  ;;  %v1762_v51 = vpop.f32.mrb[17].mxu1  ;;  %v2763_v37 = vld [vmem:[#allocation21 + $0x80] sm:$0xff] }
 0x702   :  { %v2155_v38 = vadd.f32 %v2153_v1, %v1762_v51  ;;  %v2764_v1 = vld [vmem:[#allocation21 + $0x88] sm:$0xff]  ;;  %v2766_v51 = vld [vmem:[#allocation21 + $0x98] sm:$0xff] }
 0x703   :  { %v7780_v16 = vpack.c.bf16 %v2764_v1, %v2763_v37  ;;  %v2861_v1 = vld [vmem:[#allocation22 + $0xb0] sm:$0xff] }
 0x761   :  { %v6395_v40 = vpop.f32.mrb[8].mxu0 }
 0x762   :  { %v2540_v43 = vmul.f32 %v6395_v40, %v9629_v39  ;;  %v2518_v44 = vpop.f32.mrb[9].mxu0  ;;  %v2767_v40 = vld [vmem:[#allocation21 + $0xa0] sm:$0xff] }
 0x763   :  { %v2539_v12 = vmul.f32 %v9631_v41, %v2518_v44 }
 0x764   :  { %v2542_v46 = vadd.f32 %v2540_v43, %v2156_v4  ;;  %v2765_v4 = vld [vmem:[#allocation21 + $0x90] sm:$0xff]  ;;  %v2768_v43 = vld [vmem:[#allocation21 + $0xa8] sm:$0xff] }
 0x765   :  { %v2541_v10 = vadd.f32 %v2539_v12, %v2155_v38  ;;  %v7784_v38 = vpack.c.bf16 %v2766_v51, %v2765_v4  ;;  %v7788_v44 = vpack.c.bf16 %v2768_v43, %v2767_v40  ;;  %v2769_v12 = vld [vmem:[#allocation21 + $0xb0] sm:$0xff]  ;;  %v2863_v51 = vld [vmem:[#allocation22 + $0xc0] sm:$0xff] }
 0x766   :  { %v2551_v47 = vadd.f32 %v4940_v17, %v2542_v46  ;;  %v2770_v46 = vld [vmem:[#allocation21 + $0xb8] sm:$0xff]  ;;  %v2865_v43 = vld [vmem:[#allocation22 + $0xd0] sm:$0xff] }
 0x767   :  { %v2550_v56 = vadd.f32 %v4940_v17, %v2541_v10  ;;  %v7792_v17 = vpack.c.bf16 %v2770_v46, %v2769_v12  ;;  %v2771_v10 = vld [vmem:[#allocation21 + $0xc0] sm:$0xff] }
 0x768   :  { %v7796_v6 = vpack.c.bf16 %v2772_v2, %v2771_v10  ;;  %v2867_v46 = vld [vmem:[#allocation22 + $0xe0] sm:$0xff]  ;;  %v2869_v2 = vld [vmem:[#allocation22 + $0xf0] sm:$0xff] }
 0x769   :  { %6428 = vmatprep.mubr.f32.mxu1 %v2550_v56  ;;  %v2773_v56 = vld [vmem:[#allocation21 + $0xd0] sm:$0xff] }
 0x76a   :  { %6429 = vmatmul.mubr.f32.vlgmr.msra.gmra.mrb[18].mxu1 %v2551_v47  ;;  %v2774_v47 = vld [vmem:[#allocation21 + $0xd8] sm:$0xff] }
 0x76b   :  { %7751 = vmatpush3.bf16.msra.mxu1 %v7748_v15  ;;  %6463 = vmatprep.mubr.f32.mxu1 %v9391_v58  ;;  %v7772_v58 = vpack.c.bf16 %v2666_v30, %v2665_v23  ;;  %v7776_v15 = vpack.c.bf16 %v2668_v32, %v2667_v61  ;;  %v2858_v23 = vld [vmem:[#allocation22 + $0x98] sm:$0xff]  ;;  %v2859_v32 = vld [vmem:[#allocation22 + $0xa0] sm:$0xff] }
 0x76c   :  { %7753 = vmatprep.subr.bf16.mxu1 %v7752_v50 }
 0x76f   :  { %7755 = vmatpush3.bf16.msra.mxu1 %v7752_v50  ;;  %v2776_v50 = vld [vmem:[#allocation21 + $0xe8] sm:$0xff] }
 0x770   :  { %7757 = vmatprep.subr.bf16.mxu1 %v7756_v54 }
 0x773   :  { %7759 = vmatpush3.bf16.msra.mxu1 %v7756_v54 }
 0x774   :  { %7761 = vmatprep.subr.bf16.mxu1 %v7760_v13 }
 0x777   :  { %7763 = vmatpush3.bf16.msra.mxu1 %v7760_v13  ;;  %v7812_v13 = vpack.c.bf16 %v2856_v53, %v2855_v59 }
 0x778   :  { %7765 = vmatprep.subr.bf16.mxu1 %v7764_v11 }
 0x77b   :  { %7767 = vmatpush3.bf16.msra.mxu1 %v7764_v11 }
 0x77c   :  { %7769 = vmatprep.subr.bf16.mxu1 %v7768_v3 }
 0x77f   :  { %7771 = vmatpush3.bf16.msra.mxu1 %v7768_v3  ;;  %v2857_v3 = vld [vmem:[#allocation22 + $0x90] sm:$0xff] }
 0x780   :  { %7773 = vmatprep.subr.bf16.mxu1 %v7772_v58  ;;  %v7816_v61 = vpack.c.bf16 %v2858_v23, %v2857_v3  ;;  %v3123_v23 = vld [vmem:[#allocation24 + $0xb0] sm:$0xff] }
 0x783   :  { %7775 = vmatpush3.bf16.msra.mxu1 %v7772_v58 }
 0x784   :  { %7777 = vmatprep.subr.bf16.mxu1 %v7776_v15 }
 0x787   :  { %7779 = vmatpush3.bf16.msra.mxu1 %v7776_v15  ;;  %v2860_v15 = vld [vmem:[#allocation22 + $0xa8] sm:$0xff] }
 0x788   :  { %7781 = vmatprep.subr.bf16.mxu1 %v7780_v16  ;;  %v7820_v37 = vpack.c.bf16 %v2860_v15, %v2859_v32  ;;  %v3125_v32 = vld [vmem:[#allocation24 + $0xc0] sm:$0xff] }
 0x78a   :  { %6464 = vmatmul.mubr.f32.vlgmr.msra.gmra.mrb[20].mxu1 %v9394_v25  ;;  %v7800_v25 = vpack.c.bf16 %v2774_v47, %v2773_v56 }
 0x78b   :  { %7783 = vmatpush3.bf16.msra.mxu1 %v7780_v16  ;;  %6466 = vmatprep.mubr.f32.mxu1 %v9397_v45  ;;  %v2775_v45 = vld [vmem:[#allocation21 + $0xe0] sm:$0xff]  ;;  %v2862_v16 = vld [vmem:[#allocation22 + $0xb8] sm:$0xff] }
 0x78c   :  { %7785 = vmatprep.subr.bf16.mxu1 %v7784_v38  ;;  %v7804_v52 = vpack.c.bf16 %v2776_v50, %v2775_v45  ;;  %v7824_v4 = vpack.c.bf16 %v2862_v16, %v2861_v1  ;;  %v3129_v16 = vld [vmem:[#allocation24 + $0xe0] sm:$0xff] }
 0x78e   :  { %6467 = vmatmul.mubr.f32.gmra.mrb[22].mxu1 %v9400_v48  ;;  %v2777_v48 = vld [vmem:[#allocation21 + $0xf0] sm:$0xff] }
 0x78f   :  { %7787 = vmatpush3.bf16.msra.mxu1 %v7784_v38  ;;  %v7808_v54 = vpack.c.bf16 %v2778_v55, %v2777_v48  ;;  %v2864_v38 = vld [vmem:[#allocation22 + $0xc8] sm:$0xff] }
 0x790   :  { %7789 = vmatprep.subr.bf16.mxu1 %v7788_v44  ;;  %v7828_v40 = vpack.c.bf16 %v2864_v38, %v2863_v51  ;;  %v3118_v48 = vld [vmem:[#allocation24 + $0x88] sm:$0xff]  ;;  %v3132_v51 = vld [vmem:[#allocation24 + $0xf8] sm:$0xff] }
 0x793   :  { %7791 = vmatpush3.bf16.msra.mxu1 %v7788_v44  ;;  %v2866_v44 = vld [vmem:[#allocation22 + $0xd8] sm:$0xff] }
 0x794   :  { %7793 = vmatprep.subr.bf16.mxu1 %v7792_v17  ;;  %v7832_v12 = vpack.c.bf16 %v2866_v44, %v2865_v43 }
 0x797   :  { %7795 = vmatpush3.bf16.msra.mxu1 %v7792_v17  ;;  %v2868_v17 = vld [vmem:[#allocation22 + $0xe8] sm:$0xff] }
 0x798   :  { %7797 = vmatprep.subr.bf16.mxu1 %v7796_v6  ;;  %v7836_v10 = vpack.c.bf16 %v2868_v17, %v2867_v46 }
 0x79b   :  { %7799 = vmatpush3.bf16.msra.mxu1 %v7796_v6  ;;  %v2870_v6 = vld [vmem:[#allocation22 + $0xf8] sm:$0xff] }
 0x79c   :  { %7801 = vmatprep.subr.bf16.mxu1 %v7800_v25  ;;  %v7840_v56 = vpack.c.bf16 %v2870_v6, %v2869_v2  ;;  %v4951_v2 = vld [vmem:[#allocation25 + $0x1] ss:$0 sm:$0xff] }
 0x79f   :  { %7803 = vmatpush3.bf16.msra.mxu1 %v7800_v25 }
 0x7a0   :  { %7805 = vmatprep.subr.bf16.mxu1 %v7804_v52 }
 0x7a3   :  { %7807 = vmatpush3.bf16.msra.mxu1 %v7804_v52  ;;  %v3117_v52 = vld [vmem:[#allocation24 + $0x80] sm:$0xff] }
 0x7a4   :  { %7809 = vmatprep.subr.bf16.mxu1 %v7808_v54  ;;  %v7852_v53 = vpack.c.bf16 %v3118_v48, %v3117_v52 }
 0x7a7   :  { %7811 = vmatpush3.bf16.msra.mxu1 %v7808_v54 }
 0x7a8   :  { %7813 = vmatprep.subr.bf16.mxu1 %v7812_v13 }
 0x83d   :  { %v6430_v19 = vpop.f32.mrb[18].mxu1 }
 0x83e   :  { %v2647_v11 = vadd.f32 %v6430_v19, %v4941_v14  ;;  %v2641_v57 = vpop.f32.mrb[19].mxu1 }
 0x83f   :  { %v2642_v49 = vadd.f32 %v4941_v14, %v2641_v57  ;;  %v3120_v14 = vld [vmem:[#allocation24 + $0x98] sm:$0xff]  ;;  %v3122_v57 = vld [vmem:[#allocation24 + $0xa8] sm:$0xff] }
 0x840   :  { %v9641_v58 = vmax.f32 %v2647_v11, 0.0  ;;  %v3121_v11 = vld [vmem:[#allocation24 + $0xa0] sm:$0xff] }
 0x841   :  { %v9639_v30 = vmax.f32 %v2642_v49, 0.0  ;;  %v4942_v49 = vld [vmem:[#allocation19 + $0x1] ss:$0 sm:$0xff] }
 0x843   :  { %6501 = vmatprep.mubr.f32.mxu1 %v9639_v30 }
 0x844   :  { %6502 = vmatmul.mubr.f32.vlgmr.msra.gmra.mrb[24].mxu1 %v9641_v58 }
 0x845   :  { %7815 = vmatpush3.bf16.msra.mxu1 %v7812_v13  ;;  %6536 = vmatprep.mubr.f32.mxu1 %v9639_v30  ;;  %v3119_v13 = vld [vmem:[#allocation24 + $0x90] sm:$0xff] }
 0x846   :  { %7817 = vmatprep.subr.bf16.mxu1 %v7816_v61  ;;  %v7856_v19 = vpack.c.bf16 %v3120_v14, %v3119_v13 }
 0x849   :  { %7819 = vmatpush3.bf16.msra.mxu1 %v7816_v61  ;;  %v3124_v61 = vld [vmem:[#allocation24 + $0xb8] sm:$0xff] }
 0x84a   :  { %7821 = vmatprep.subr.bf16.mxu1 %v7820_v37  ;;  %v7864_v60 = vpack.c.bf16 %v3124_v61, %v3123_v23 }
 0x84d   :  { %7823 = vmatpush3.bf16.msra.mxu1 %v7820_v37  ;;  %v3127_v37 = vld [vmem:[#allocation24 + $0xd0] sm:$0xff] }
 0x84e   :  { %7825 = vmatprep.subr.bf16.mxu1 %v7824_v4 }
 0x851   :  { %7827 = vmatpush3.bf16.msra.mxu1 %v7824_v4  ;;  %v3130_v4 = vld [vmem:[#allocation24 + $0xe8] sm:$0xff] }
 0x852   :  { %7829 = vmatprep.subr.bf16.mxu1 %v7828_v40  ;;  %v7876_v22 = vpack.c.bf16 %v3130_v4, %v3129_v16 }
 0x855   :  { %7831 = vmatpush3.bf16.msra.mxu1 %v7828_v40 }
 0x856   :  { %7833 = vmatprep.subr.bf16.mxu1 %v7832_v12 }
 0x859   :  { %7835 = vmatpush3.bf16.msra.mxu1 %v7832_v12 }
 0x85a   :  { %7837 = vmatprep.subr.bf16.mxu1 %v7836_v10 }
 0x85d   :  { %7839 = vmatpush3.bf16.msra.mxu1 %v7836_v10  ;;  %v9646_v47 = vpop.f32.mrb[20].mxu1 }
 0x85e   :  { %7841 = vmatprep.subr.bf16.mxu1 %v7840_v56  ;;  %v2743_v25 = vpop.f32.mrb[21].mxu1  ;;  %v2749_v12 = vadd.f32 %v9646_v47, %v4942_v49 }
 0x85f   :  { %v2744_v3 = vadd.f32 %v4942_v49, %v2743_v25 }
 0x861   :  { %7843 = vmatpush3.bf16.msra.mxu1 %v7840_v56  ;;  %v9648_v45 = vpop.f32.mrb[22].mxu1 }
 0x862   :  { %v2753_v50 = vpop.f32.mrb[23].mxu1  ;;  %v2759_v17 = vadd.f32 %v9648_v45, %v4942_v49 }
 0x863   :  { %v2754_v46 = vadd.f32 %v4942_v49, %v2753_v50 }
 0x864   :  { %6537 = vmatmul.mubr.f32.vlgmr.msra.gmra.mrb[26].mxu1 %v9641_v58 }
 0x865   :  { %6543 = vmatprep.mubr.msk.f32.mxu1 %vm733_vm2, %v4981_v63  ;;  %v7860_v63 = vpack.c.bf16 %v3122_v57, %v3121_v11 }
 0x917   :  { %v6503_v55 = vpop.f32.mrb[24].mxu1 }
 0x918   :  { %v2845_v54 = vpop.f32.mrb[25].mxu1 }
 0x919   :  { %v7848_v59 = vpack.c.bf16 %v6503_v55, %v2845_v54 }
 0x91b   :  { %7849 = vmatprep.subr.bf16.mxu0 %v7848_v59 }
 0x91c   :  { %7851 = vmatpush3.bf16.msra.mxu0 %v7848_v59 }
 0x91d   :  { %7853 = vmatprep.subr.bf16.mxu0 %v7852_v53 }
 0x91f   :  { %6554 = vmatmul.mubr.msk.f32.vlgmr.msra.gmra.mrb[10].mxu0 %vm733_vm2, %v4974_v27  ;;  %v3126_v27 = vld [vmem:[#allocation24 + $0xc8] sm:$0xff] }
 0x920   :  { %7855 = vmatpush3.bf16.msra.mxu0 %v7852_v53  ;;  %6556 = vmatprep.mubr.msk.f32.mxu0 %vm733_vm2, %v4977_v29  ;;  %v7868_v15 = vpack.c.bf16 %v3126_v27, %v3125_v32  ;;  %v3128_v29 = vld [vmem:[#allocation24 + $0xd8] sm:$0xff] }
 0x921   :  { %7857 = vmatprep.subr.bf16.mxu0 %v7856_v19  ;;  %v7872_v1 = vpack.c.bf16 %v3128_v29, %v3127_v37 }
 0x923   :  { %6557 = vmatmul.mubr.msk.f32.gmra.mrb[12].mxu0 %vm733_vm2, %v4978_v35  ;;  %v3131_v35 = vld [vmem:[#allocation24 + $0xf0] sm:$0xff] }
 0x924   :  { %7859 = vmatpush3.bf16.msra.mxu0 %v7856_v19  ;;  %6591 = vmatprep.mubr.f32.mxu0 %v2744_v3  ;;  %v7880_v38 = vpack.c.bf16 %v3132_v51, %v3131_v35 }
 0x925   :  { %7861 = vmatprep.subr.bf16.mxu0 %v7860_v63 }
 0x928   :  { %7863 = vmatpush3.bf16.msra.mxu0 %v7860_v63 }
 0x929   :  { %7865 = vmatprep.subr.bf16.mxu0 %v7864_v60 }
 0x92c   :  { %7867 = vmatpush3.bf16.msra.mxu0 %v7864_v60 }
 0x92d   :  { %7869 = vmatprep.subr.bf16.mxu0 %v7868_v15 }
 0x930   :  { %7871 = vmatpush3.bf16.msra.mxu0 %v7868_v15 }
 0x931   :  { %7873 = vmatprep.subr.bf16.mxu0 %v7872_v1 }
 0x934   :  { %7875 = vmatpush3.bf16.msra.mxu0 %v7872_v1 }
 0x935   :  { %7877 = vmatprep.subr.bf16.mxu0 %v7876_v22 }
 0x937   :  { %v6538_v40 = vpop.f32.mrb[26].mxu1 }
 0x938   :  { %v2937_v43 = vpop.f32.mrb[27].mxu1  ;;  %7879 = vmatpush3.bf16.msra.mxu0 %v7876_v22 }
 0x939   :  { %v7844_v44 = vpack.c.bf16 %v6538_v40, %v2937_v43  ;;  %7881 = vmatprep.subr.bf16.mxu0 %v7880_v38 }
 0x93b   :  { %7845 = vmatprep.subr.bf16.mxu1 %v7844_v44 }
 0x93c   :  { %7847 = vmatpush3.bf16.msra.mxu1 %v7844_v44  ;;  %7883 = vmatpush3.bf16.msra.mxu0 %v7880_v38 }
 0x93f   :  { %6544 = vmatmul.mubr.msk.f32.vlgmr.msra.gmra.mrb[28].mxu1 %vm733_vm2, %v4982_v28  ;;  %6592 = vmatmul.mubr.f32.vlgmr.msra.gmra.mrb[10].mxu0 %v2749_v12 }
 0x940   :  { %6594 = vmatprep.mubr.f32.mxu0 %v2754_v46  ;;  %6546 = vmatprep.mubr.msk.f32.mxu1 %vm733_vm2, %v4985_v31 }
 0x943   :  { %6547 = vmatmul.mubr.msk.f32.gmra.mrb[30].mxu1 %vm733_vm2, %v4986_v36  ;;  %6595 = vmatmul.mubr.f32.gmra.mrb[12].mxu0 %v2759_v17 }
 0x944   :  { %6605 = vmatprep.mubr.msk.f32.mxu1 %vm1072_vm3, %v9492_v7 }
 0xa12   :  { %v6545_v10 = vpop.f32.mrb[28].mxu1  ;;  %v6593_v62 = vpop.f32.mrb[10].mxu0 }
 0xa13   :  { %v3012_v28 = vpop.f32.mrb[29].mxu1  ;;  %v8355_v6 = vadd.f32 %v6593_v62, %v6545_v10  ;;  %v3199_v56 = vpop.f32.mrb[11].mxu0 }
 0xa14   :  { %v8356_v47 = vadd.f32 %v3199_v56, %v3012_v28 }
 0xa15   :  { %v3231_v25 = vadd.f32 %v8355_v6, %v4951_v2 }
 0xa16   :  { %v3230_v50 = vadd.f32 %v8356_v47, %v4951_v2  ;;  %v6548_v31 = vpop.f32.mrb[30].mxu1  ;;  %v6596_v52 = vpop.f32.mrb[12].mxu0 }
 0xa17   :  { %v3235_v45 = vmul.f32 %v3231_v25, %v9500_v24  ;;  %v3022_v26 = vpop.f32.mrb[31].mxu1  ;;  %v8357_v48 = vadd.f32 %v6596_v52, %v6548_v31  ;;  %v3209_v36 = vpop.f32.mrb[13].mxu0 }
 0xa18   :  { %v3234_v55 = vmul.f32 %v3230_v50, %v9496_v18  ;;  %v8358_v54 = vadd.f32 %v3209_v36, %v3022_v26 }
 0xa19   :  { %3239 = vst [vmem:[#allocation2 + $0x8] sm:$0xff] %v3235_v45  ;;  %v3233_v59 = vadd.f32 %v8357_v48, %v4951_v2  ;;  %v3318_v53 = vmul.f32 %v3235_v45, %v3235_v45 }
 0xa1a   :  { %3238 = vst [vmem:[#allocation2] sm:$0xff] %v3234_v55  ;;  %v3232_v13 = vadd.f32 %v8358_v54, %v4951_v2  ;;  %v7884_v14 = vpack.c.bf16 %v3235_v45, %v3234_v55  ;;  %v3317_v19 = vmul.f32 %v3234_v55, %v3234_v55 }
 0xa1b   :  { %v3237_v11 = vmul.f32 %v3233_v59, %v9504_v42 }
 0xa1c   :  { %v3236_v57 = vmul.f32 %v3232_v13, %v9498_v21  ;;  %7885 = vmatprep.subr.bf16.mxu1 %v7884_v14  ;;  %v7892_v49 = vpack.c.bf16 %v3318_v53, %v3317_v19 }
 0xa1d   :  { %3241 = vst [vmem:[#allocation2 + $0x18] sm:$0xff] %v3237_v11  ;;  %7887 = vmatpush3.bf16.msra.mxu1 %v7884_v14  ;;  %v3320_v24 = vmul.f32 %v3237_v11, %v3237_v11 }
 0xa1e   :  { %3240 = vst [vmem:[#allocation2 + $0x10] sm:$0xff] %v3236_v57  ;;  %v7888_v63 = vpack.c.bf16 %v3237_v11, %v3236_v57  ;;  %v3319_v18 = vmul.f32 %v3236_v57, %v3236_v57 }
 0xa20   :  { %7889 = vmatprep.subr.bf16.mxu1 %v7888_v63  ;;  %v7896_v3 = vpack.c.bf16 %v3320_v24, %v3319_v18 }
 0xa21   :  { %7891 = vmatpush3.bf16.msra.mxu1 %v7888_v63 }
 0xa22   :  { %7893 = vmatprep.subr.bf16.mxu1 %v7892_v49 }
 0xa24   :  { %6606 = vmatmul.mubr.msk.f32.vlgmr.msra.gmra.mrb[32].mxu1 %vm1072_vm3, %v9508_v0 }
 0xa25   :  { %7895 = vmatpush3.bf16.msra.mxu1 %v7892_v49  ;;  %6616 = vmatprep.mubr.msk.f32.mxu1 %vm1072_vm3, %v9492_v7 }
 0xa26   :  { %7897 = vmatprep.subr.bf16.mxu1 %v7896_v3 }
 0xa29   :  { %7899 = vmatpush3.bf16.msra.mxu1 %v7896_v3 }
 0xa2c   :  { %6617 = vmatmul.mubr.msk.f32.vlgmr.msra.gmra.mrb[34].mxu1 %vm1072_vm3, %v9508_v0 }
 0xaf7   :  { %v6607_v21 = vpop.f32.mrb[32].mxu1 }
 0xaf8   :  { %v3308_v42 = vpop.f32.mrb[33].mxu1  ;;  %v9687_v23 = vmul.f32 %v6607_v21, %v9520_v8 }
 0xaf9   :  { %v9690_v61 = vmul.f32 %v3308_v42, %v9522_v9 }
 0xafa   :  { %v3401_v32 = vmul.f32 %v9687_v23, %v9687_v23 }
 0xafb   :  { %v3400_v15 = vmul.f32 %v9690_v61, %v9690_v61 }
 0xaff   :  { %v6618_v60 = vpop.f32.mrb[34].mxu1 }
 0xb00   :  { %v3399_v27 = vmul.f32 %v6618_v60, %v9520_v8  ;;  %v3387_v7 = vpop.f32.mrb[35].mxu1 }
 0xb01   :  { %v3398_v0 = vmul.f32 %v3387_v7, %v9522_v9 }
 0xb02   :  { %v3403_v37 = vsub.f32 %v3399_v27, %v3401_v32 }
 0xb03   :  { %v3402_v29 = vsub.f32 %v3398_v0, %v3400_v15 }
 0xb04   :  { %v3405_v1 = vmax.f32 %v3403_v37, 0.0 }
 0xb05   :  { %v3404_v16 = vmax.f32 %v3402_v29, 0.0 }
 0xb06   :  { %v3407_v4 = vadd.f32 1e-05, %v3405_v1 }
 0xb07   :  { %v3406_v22 = vadd.f32 1e-05, %v3404_v16 }
 0xb08   :  { %8462 = vrsqrt.f32 %v3407_v4  ;;  %vm3417_vm10 = vcmp.eq.f32.partialorder %v3407_v4, inf  ;;  %v3420_v40 = vand.u32 2147483648, %v3407_v4  ;;  %vm3419_vm11 = vcmp.eq.f32.partialorder %v3407_v4, 0.0 }
 0xb09   :  { %8464 = vrsqrt.f32 %v3406_v22  ;;  %vm3410_vm12 = vcmp.eq.f32.partialorder %v3406_v22, inf  ;;  %v3413_v44 = vand.u32 2147483648, %v3406_v22  ;;  %vm3412_vm13 = vcmp.eq.f32.partialorder %v3406_v22, 0.0 }
 0xb12   :  { %v8463_v35 = vpop.eup %8462 }
 0xb13   :  { %v8465_v51 = vpop.eup %8464  ;;  %v3416_v38 = vmul.f32 %v8463_v35, %v3407_v4 }
 0xb14   :  { %v3409_v8 = vmul.f32 %v8465_v51, %v3406_v22 }
 0xb15   :  { %v3418_v43 = vsel %vm3417_vm10, %v3407_v4, %v3416_v38 }
 0xb16   :  { %v9698_v12 = vsel %vm3419_vm11, %v3420_v40, %v3418_v43  ;;  %v3411_v9 = vsel %vm3410_vm12, %v3406_v22, %v3409_v8 }
 0xb17   :  { %v9700_v46 = vsel %vm3412_vm13, %v3413_v44, %v3411_v9 }
 0xb18 LB: > { %s3432_s11 = sld [smem:[#allocation5 + %s8910_s10]]  ;;  %s3433_s6 = scalar_lea.vmem [#allocation2], %s8910_s10  ;;  %s8910_s10 = sphi %s8908_s10, %s3431_s10  }
 0xb19   : > { %v3434_v17 = vld [vmem:[%s3433_s6] sm:$0x1]  ;;  %s3431_s10 = sadd.s32 1, %s8910_s10  }
 0xb1a   : > { %p3428_p6 = scmp.ge.s32.totalorder %s3431_s10, 32  }
 0xb1b   :  { %v3486_v6 = vld [vmem:[#allocation27 + $0x780] sm:$0xff] (%p3428_p6)  ;;  %v3487_v56 = vld [vmem:[#allocation27 + $0x788] sm:$0xff] (%p3428_p6)  ;;  %v3488_v31 = vld [vmem:[#allocation27 + $0x790] sm:$0xff] (%p3428_p6)  ;;  %vm8939_vm14 = vmmov (%p3428_p6), 0   ;;  %s8941_s1 = smov (%p3428_p6), [#allocation33]  }
 0xb1c   :  { %v3933_v47 = vld [vmem:[#allocation27 + $0x980] sm:$0xff] (%p3428_p6)  ;;  %v7900_v25 = vpack.c.bf16 (%p3428_p6), %v3487_v56, %v3486_v6  ;;  %v3934_v50 = vld [vmem:[#allocation27 + $0x988] sm:$0xff] (%p3428_p6)  ;;  %v3489_v52 = vld [vmem:[#allocation27 + $0x798] sm:$0xff] (%p3428_p6)  ;;  %s4862_s14 = sshll.u32 (%p3428_p6), %s8941_s1, 4  ;;  %s4863_s14 = int_to_ptr.vmem [resolvable:$true] %s4862_s14 }
 0xb1d   :  { %3430 = sbr.rel (!%p3428_p6) target bundleno = 2840 (0xb18), region = 257  ;;  %v8060_v45 = vpack.c.bf16 (%p3428_p6), %v3934_v50, %v3933_v47  ;;  %v7904_v26 = vpack.c.bf16 (%p3428_p6), %v3489_v52, %v3488_v31  ;;  %v3935_v48 = vld [vmem:[#allocation27 + $0x990] sm:$0xff] (%p3428_p6)  ;;  %v3936_v36 = vld [vmem:[#allocation27 + $0x998] sm:$0xff] (%p3428_p6)  ;;  %v3490_v55 = vld [vmem:[#allocation27 + $0x7a0] sm:$0xff] (%p3428_p6)  ;;  %s8828_s19 = scalar_lea.vmem (%p3428_p6), %s4863_s14, 256 }
 0xb1e   : > { %s3435_s7 = scalar_lea.vmem [#allocation3], %s3432_s11  ;;  %s3439_s13 = scalar_lea.vmem [#allocation4], %s3432_s11  ;;  %7901 = vmatprep.subr.bf16.mxu1 (%p3428_p6), %v7900_v25  ;;  %v8064_v54 = vpack.c.bf16 (%p3428_p6), %v3936_v36, %v3935_v48  ;;  %v3491_v59 = vld [vmem:[#allocation27 + $0x7a8] sm:$0xff] (%p3428_p6)  ;;  %v3937_v53 = vld [vmem:[#allocation27 + $0x9a0] sm:$0xff] (%p3428_p6)  ;;  %v3492_v11 = vld [vmem:[#allocation27 + $0x7b0] sm:$0xff] (%p3428_p6) }
 0xb1f   : > { %v3436_v10 = vld [vmem:[%s3435_s7] sm:$0x1]  ;;  %v3938_v13 = vld [vmem:[#allocation27 + $0x9a8] sm:$0xff] (%p3428_p6)  ;;  %8061 = vmatprep.subr.bf16.mxu0 (%p3428_p6), %v8060_v45  ;;  %7903 = vmatpush3.bf16.msra.mxu1 (%p3428_p6), %v7900_v25  ;;  %v7908_v14 = vpack.c.bf16 (%p3428_p6), %v3491_v59, %v3490_v55  ;;  %v3493_v57 = vld [vmem:[#allocation27 + $0x7b8] sm:$0xff] (%p3428_p6)  ;;  %p8829_p7 = scmp.ne.s32.totalorder (%p3428_p6), %s4863_s14, %s8828_s19  ;;  %p8833_p8 = scmp.lt.s32.totalorder (%p3428_p6), %s4863_s14, %s4863_s14 }
 0xb20   : > { %v3440_v62 = vld [vmem:[%s3439_s13] sm:$0x1]  ;;  %v3437_v2 = vmax.f32 %v3436_v10, %v3434_v17  ;;  %8063 = vmatpush3.bf16.msra.mxu0 (%p3428_p6), %v8060_v45  ;;  %7905 = vmatprep.subr.bf16.mxu1 (%p3428_p6), %v7904_v26  ;;  %v8068_v19 = vpack.c.bf16 (%p3428_p6), %v3938_v13, %v3937_v53  ;;  %v3939_v49 = vld [vmem:[#allocation27 + $0x9b0] sm:$0xff] (%p3428_p6)  ;;  %v3940_v24 = vld [vmem:[#allocation27 + $0x9b8] sm:$0xff] (%p3428_p6)  ;;  %v7912_v63 = vpack.c.bf16 (%p3428_p6), %v3493_v57, %v3492_v11  ;;  %p8834_p9 = scmp.lt.s32.totalorder (%p3428_p6), %s8828_s19, %s8828_s19 }
 0xb21   : > { %v3441_v28 = vmin.f32 %v3440_v62, %v3434_v17  ;;  %8065 = vmatprep.subr.bf16.mxu0 (%p3428_p6), %v8064_v54  ;;  %v8072_v18 = vpack.c.bf16 (%p3428_p6), %v3940_v24, %v3939_v49  ;;  %v3494_v3 = vld [vmem:[#allocation27 + $0x7c0] sm:$0xff] (%p3428_p6)  ;;  %v3495_v21 = vld [vmem:[#allocation27 + $0x7c8] sm:$0xff] (%p3428_p6)  ;;  %v3496_v15 = vld [vmem:[#allocation27 + $0x7d0] sm:$0xff] (%p3428_p6) }
 0xb22   : > { %3438 = vst [vmem:[%s3435_s7] sm:$0x1] %v3437_v2  ;;  %v3941_v60 = vld [vmem:[#allocation27 + $0x9c0] sm:$0xff] (%p3428_p6)  ;;  %v3942_v32 = vld [vmem:[#allocation27 + $0x9c8] sm:$0xff] (%p3428_p6)  ;;  %v7916_v27 = vpack.c.bf16 (%p3428_p6), %v3495_v21, %v3494_v3  ;;  %v3497_v0 = vld [vmem:[#allocation27 + $0x7d8] sm:$0xff] (%p3428_p6)  ;;  %p8835_p10 = por (%p3428_p6), %p8834_p9, %p8833_p8 }
 0xb23   : > { %3442 = vst [vmem:[%s3439_s13] sm:$0x1] %v3441_v28  ;;  %7907 = vmatpush3.bf16.msra.mxu1 (%p3428_p6), %v7904_v26  ;;  %v8076_v7 = vpack.c.bf16 (%p3428_p6), %v3942_v32, %v3941_v60  ;;  %v3943_v37 = vld [vmem:[#allocation27 + $0x9d0] sm:$0xff] (%p3428_p6)  ;;  %v3944_v29 = vld [vmem:[#allocation27 + $0x9d8] sm:$0xff] (%p3428_p6)  ;;  %v7920_v1 = vpack.c.bf16 (%p3428_p6), %v3497_v0, %v3496_v15  ;;  %v3498_v4 = vld [vmem:[#allocation27 + $0x7e0] sm:$0xff] (%p3428_p6) }
 0xb24   :  { %8067 = vmatpush3.bf16.msra.mxu0 %v8064_v54  ;;  %7909 = vmatprep.subr.bf16.mxu1 %v7908_v14  ;;  %v8080_v16 = vpack.c.bf16 %v3944_v29, %v3943_v37  ;;  %v3499_v22 = vld [vmem:[#allocation27 + $0x7e8] sm:$0xff]  ;;  %v3945_v35 = vld [vmem:[#allocation27 + $0x9e0] sm:$0xff]  ;;  %v3500_v8 = vld [vmem:[#allocation27 + $0x7f0] sm:$0xff]  ;;  %p8836_p11 = pnand %p8835_p10, %p8829_p7 }
 0xb25   :  { %8069 = vmatprep.subr.bf16.mxu0 %v8068_v19  ;;  %v3946_v51 = vld [vmem:[#allocation27 + $0x9e8] sm:$0xff]  ;;  %v7924_v38 = vpack.c.bf16 %v3499_v22, %v3498_v4  ;;  %v3501_v43 = vld [vmem:[#allocation27 + $0x7f8] sm:$0xff]  ;;  %v3947_v44 = vld [vmem:[#allocation27 + $0x9f0] sm:$0xff] }
 0xb26   :  { %v8084_v40 = vpack.c.bf16 %v3946_v51, %v3945_v35  ;;  %v3948_v9 = vld [vmem:[#allocation27 + $0x9f8] sm:$0xff]  ;;  %v7928_v17 = vpack.c.bf16 %v3501_v43, %v3500_v8  ;;  %v3469_v62 = vld [vmem:[#allocation27 + $0x700] sm:$0xff]  ;;  %v3470_v2 = vld [vmem:[#allocation27 + $0x708] sm:$0xff] }
 0xb27   :  { %7911 = vmatpush3.bf16.msra.mxu1 %v7908_v14  ;;  %v8088_v10 = vpack.c.bf16 %v3948_v9, %v3947_v44  ;;  %v3916_v28 = vld [vmem:[#allocation27 + $0x900] sm:$0xff]  ;;  %v3917_v6 = vld [vmem:[#allocation27 + $0x908] sm:$0xff]  ;;  %v7932_v56 = vpack.c.bf16 %v3470_v2, %v3469_v62  ;;  %v3471_v25 = vld [vmem:[#allocation27 + $0x710] sm:$0xff] }
 0xb28   :  { %8071 = vmatpush3.bf16.msra.mxu0 %v8068_v19  ;;  %7913 = vmatprep.subr.bf16.mxu1 %v7912_v63  ;;  %v8092_v47 = vpack.c.bf16 %v3917_v6, %v3916_v28  ;;  %v3472_v50 = vld [vmem:[#allocation27 + $0x718] sm:$0xff]  ;;  %v3918_v31 = vld [vmem:[#allocation27 + $0x910] sm:$0xff]  ;;  %v3473_v36 = vld [vmem:[#allocation27 + $0x720] sm:$0xff] }
 0xb29   :  { %8073 = vmatprep.subr.bf16.mxu0 %v8072_v18  ;;  %v3919_v52 = vld [vmem:[#allocation27 + $0x918] sm:$0xff]  ;;  %v7936_v26 = vpack.c.bf16 %v3472_v50, %v3471_v25  ;;  %v3474_v55 = vld [vmem:[#allocation27 + $0x728] sm:$0xff]  ;;  %v3920_v54 = vld [vmem:[#allocation27 + $0x920] sm:$0xff] }
 0xb2a   :  { %v9702_v42 = vld [vmem:[#allocation4] sm:$0xff]  ;;  %v9710_v45 = vld [vmem:[#allocation4 + $0x8] sm:$0xff]  ;;  %v8096_v48 = vpack.c.bf16 %v3919_v52, %v3918_v31  ;;  %v3921_v59 = vld [vmem:[#allocation27 + $0x928] sm:$0xff]  ;;  %v7940_v53 = vpack.c.bf16 %v3474_v55, %v3473_v36 }
 0xb2b   :  { %6651 = vmatprep.mubr.msk.f32.mxu1 %vm1300_vm8, %v9702_v42  ;;  %6826 = vmatprep.mubr.msk.f32.mxu0 %vm1300_vm8, %v9702_v42  ;;  %v8100_v13 = vpack.c.bf16 %v3921_v59, %v3920_v54  ;;  %v3475_v14 = vld [vmem:[#allocation27 + $0x730] sm:$0xff]  ;;  %v3476_v19 = vld [vmem:[#allocation27 + $0x738] sm:$0xff]  ;;  %v3924_v3 = vld [vmem:[#allocation27 + $0x940] sm:$0xff] }
 0xb2c   :  { %7915 = vmatpush3.bf16.msra.mxu1 %v7912_v63  ;;  %8075 = vmatpush3.bf16.msra.mxu0 %v8072_v18  ;;  %v3922_v11 = vld [vmem:[#allocation27 + $0x930] sm:$0xff]  ;;  %v3923_v57 = vld [vmem:[#allocation27 + $0x938] sm:$0xff]  ;;  %v7944_v49 = vpack.c.bf16 %v3476_v19, %v3475_v14  ;;  %v3477_v63 = vld [vmem:[#allocation27 + $0x740] sm:$0xff] }
 0xb2d   :  { %7917 = vmatprep.subr.bf16.mxu1 %v7916_v27  ;;  %8077 = vmatprep.subr.bf16.mxu0 %v8076_v7  ;;  %v8104_v24 = vpack.c.bf16 %v3923_v57, %v3922_v11  ;;  %v3478_v18 = vld [vmem:[#allocation27 + $0x748] sm:$0xff]  ;;  %v3926_v15 = vld [vmem:[#allocation27 + $0x950] sm:$0xff]  ;;  %v3927_v0 = vld [vmem:[#allocation27 + $0x958] sm:$0xff] }
 0xb2e   :  { %v3925_v21 = vld [vmem:[#allocation27 + $0x948] sm:$0xff]  ;;  %v7948_v60 = vpack.c.bf16 %v3478_v18, %v3477_v63  ;;  %v8112_v29 = vpack.c.bf16 %v3927_v0, %v3926_v15  ;;  %v3928_v4 = vld [vmem:[#allocation27 + $0x960] sm:$0xff]  ;;  %v3930_v8 = vld [vmem:[#allocation27 + $0x970] sm:$0xff] }
 0xb2f   :  { %v8108_v32 = vpack.c.bf16 %v3925_v21, %v3924_v3  ;;  %v3929_v22 = vld [vmem:[#allocation27 + $0x968] sm:$0xff]  ;;  %v3931_v43 = vld [vmem:[#allocation27 + $0x978] sm:$0xff]  ;;  %v4100_v62 = vld [vmem:[#allocation27 + $0xa00] sm:$0xff] }
 0xb30   :  { %7919 = vmatpush3.bf16.msra.mxu1 %v7916_v27  ;;  %8079 = vmatpush3.bf16.msra.mxu0 %v8076_v7  ;;  %v3479_v27 = vld [vmem:[#allocation27 + $0x750] sm:$0xff]  ;;  %v3480_v7 = vld [vmem:[#allocation27 + $0x758] sm:$0xff]  ;;  %v8116_v51 = vpack.c.bf16 %v3929_v22, %v3928_v4  ;;  %v8120_v9 = vpack.c.bf16 %v3931_v43, %v3930_v8  ;;  %v4101_v2 = vld [vmem:[#allocation27 + $0xa08] sm:$0xff] }
 0xb31   :  { %7921 = vmatprep.subr.bf16.mxu1 %v7920_v1  ;;  %8081 = vmatprep.subr.bf16.mxu0 %v8080_v16  ;;  %v7952_v37 = vpack.c.bf16 %v3480_v7, %v3479_v27  ;;  %v8124_v6 = vpack.c.bf16 %v4101_v2, %v4100_v62  ;;  %v4102_v25 = vld [vmem:[#allocation27 + $0xa10] sm:$0xff]  ;;  %v4103_v50 = vld [vmem:[#allocation27 + $0xa18] sm:$0xff]  ;;  %v4104_v36 = vld [vmem:[#allocation27 + $0xa20] sm:$0xff] }
 0xb32   :  { %v8128_v52 = vpack.c.bf16 %v4103_v50, %v4102_v25  ;;  %v4105_v55 = vld [vmem:[#allocation27 + $0xa28] sm:$0xff]  ;;  %v9721_v54 = vld [vmem:[#allocation3] sm:$0xff]  ;;  %v3660_v14 = vld [vmem:[#allocation27 + $0x838] sm:$0xff] }
 0xb33   :  { %v4106_v19 = vld [vmem:[#allocation27 + $0xa30] sm:$0xff]  ;;  %v4107_v11 = vld [vmem:[#allocation27 + $0xa38] sm:$0xff]  ;;  %v3662_v63 = vld [vmem:[#allocation27 + $0x848] sm:$0xff] }
 0xb34   :  { %7923 = vmatpush3.bf16.msra.mxu1 %v7920_v1  ;;  %8083 = vmatpush3.bf16.msra.mxu0 %v8080_v16  ;;  %v3481_v1 = vld [vmem:[#allocation27 + $0x760] sm:$0xff]  ;;  %v3482_v16 = vld [vmem:[#allocation27 + $0x768] sm:$0xff]  ;;  %v3664_v27 = vld [vmem:[#allocation27 + $0x858] sm:$0xff] }
 0xb35   :  { %7925 = vmatprep.subr.bf16.mxu1 %v7924_v38  ;;  %8085 = vmatprep.subr.bf16.mxu0 %v8084_v40  ;;  %v7956_v35 = vpack.c.bf16 %v3482_v16, %v3481_v1  ;;  %v4108_v18 = vld [vmem:[#allocation27 + $0xa40] sm:$0xff]  ;;  %v4109_v3 = vld [vmem:[#allocation27 + $0xa48] sm:$0xff]  ;;  %v4110_v7 = vld [vmem:[#allocation27 + $0xa50] sm:$0xff] }
 0xb36   :  { %v4111_v15 = vld [vmem:[#allocation27 + $0xa58] sm:$0xff]  ;;  %v3666_v1 = vld [vmem:[#allocation27 + $0x868] sm:$0xff]  ;;  %v4112_v16 = vld [vmem:[#allocation27 + $0xa60] sm:$0xff] }
 0xb37   :  { %v4113_v4 = vld [vmem:[#allocation27 + $0xa68] sm:$0xff]  ;;  %v4115_v8 = vld [vmem:[#allocation27 + $0xa78] sm:$0xff] }
 0xb38   :  { %7927 = vmatpush3.bf16.msra.mxu1 %v7924_v38  ;;  %8087 = vmatpush3.bf16.msra.mxu0 %v8084_v40  ;;  %v3483_v38 = vld [vmem:[#allocation27 + $0x770] sm:$0xff]  ;;  %v3484_v40 = vld [vmem:[#allocation27 + $0x778] sm:$0xff]  ;;  %v4195_v62 = vld [vmem:[#allocation27 + $0xa88] sm:$0xff] }
 0xb39   :  { %7929 = vmatprep.subr.bf16.mxu1 %v7928_v17  ;;  %8089 = vmatprep.subr.bf16.mxu0 %v8088_v10  ;;  %v7960_v44 = vpack.c.bf16 %v3484_v40, %v3483_v38  ;;  %v3668_v38 = vld [vmem:[#allocation27 + $0x878] sm:$0xff]  ;;  %v4114_v40 = vld [vmem:[#allocation27 + $0xa70] sm:$0xff]  ;;  %v9730_v50 = vld [vmem:[#allocation3 + $0x8] sm:$0xff] }
 0xb3a   :  { %v4197_v25 = vld [vmem:[#allocation27 + $0xa98] sm:$0xff]  ;;  %v4489_v5 = vld [vmem:[#allocation27 + $0xc68] sm:$0xff] }
 0xb3c   :  { %7931 = vmatpush3.bf16.msra.mxu1 %v7928_v17  ;;  %8091 = vmatpush3.bf16.msra.mxu0 %v8088_v10  ;;  %v3653_v17 = vld [vmem:[#allocation27 + $0x800] sm:$0xff]  ;;  %v3654_v10 = vld [vmem:[#allocation27 + $0x808] sm:$0xff] }
 0xb3d   :  { %7933 = vmatprep.subr.bf16.mxu1 %v7932_v56  ;;  %8093 = vmatprep.subr.bf16.mxu0 %v8092_v47  ;;  %v7964_v28 = vpack.c.bf16 %v3654_v10, %v3653_v17  ;;  %v3748_v17 = vld [vmem:[#allocation27 + $0x888] sm:$0xff]  ;;  %v4194_v10 = vld [vmem:[#allocation27 + $0xa80] sm:$0xff] }
 0xb3f   :  { %6652 = vmatmul.mubr.msk.f32.vlgmr.msra.gmra.mrb[36].mxu1 %vm1301_vm9, %v9710_v45  ;;  %6827 = vmatmul.mubr.msk.f32.vlgmr.msra.gmra.mrb[14].mxu0 %vm1301_vm9, %v9710_v45 }
 0xb40   :  { %7935 = vmatpush3.bf16.msra.mxu1 %v7932_v56  ;;  %8095 = vmatpush3.bf16.msra.mxu0 %v8092_v47  ;;  %v3655_v56 = vld [vmem:[#allocation27 + $0x810] sm:$0xff]  ;;  %v3656_v47 = vld [vmem:[#allocation27 + $0x818] sm:$0xff] }
 0xb41   :  { %7937 = vmatprep.subr.bf16.mxu1 %v7936_v26  ;;  %8097 = vmatprep.subr.bf16.mxu0 %v8096_v48  ;;  %v7968_v31 = vpack.c.bf16 %v3656_v47, %v3655_v56  ;;  %v3750_v56 = vld [vmem:[#allocation27 + $0x898] sm:$0xff]  ;;  %v4196_v47 = vld [vmem:[#allocation27 + $0xa90] sm:$0xff] }
 0xb42   :  { %6686 = vmatprep.mubr.f32.mxu1 %v9690_v61  ;;  %6861 = vmatprep.mubr.f32.mxu0 %v9690_v61 }
 0xb44   :  { %7939 = vmatpush3.bf16.msra.mxu1 %v7936_v26  ;;  %8099 = vmatpush3.bf16.msra.mxu0 %v8096_v48  ;;  %v3657_v26 = vld [vmem:[#allocation27 + $0x820] sm:$0xff]  ;;  %v3658_v48 = vld [vmem:[#allocation27 + $0x828] sm:$0xff] }
 0xb45   :  { %7941 = vmatprep.subr.bf16.mxu1 %v7940_v53  ;;  %8101 = vmatprep.subr.bf16.mxu0 %v8100_v13  ;;  %v7972_v59 = vpack.c.bf16 %v3658_v48, %v3657_v26  ;;  %v3751_v26 = vld [vmem:[#allocation27 + $0x8a0] sm:$0xff]  ;;  %v3752_v48 = vld [vmem:[#allocation27 + $0x8a8] sm:$0xff] }
 0xb48   :  { %7943 = vmatpush3.bf16.msra.mxu1 %v7940_v53  ;;  %8103 = vmatpush3.bf16.msra.mxu0 %v8100_v13  ;;  %v8132_v53 = vpack.c.bf16 %v4105_v55, %v4104_v36  ;;  %v3659_v13 = vld [vmem:[#allocation27 + $0x830] sm:$0xff]  ;;  %v4198_v36 = vld [vmem:[#allocation27 + $0xaa0] sm:$0xff]  ;;  %v4199_v55 = vld [vmem:[#allocation27 + $0xaa8] sm:$0xff] }
 0xb49   :  { %7945 = vmatprep.subr.bf16.mxu1 %v7944_v49  ;;  %8105 = vmatprep.subr.bf16.mxu0 %v8104_v24  ;;  %v7976_v57 = vpack.c.bf16 %v3660_v14, %v3659_v13  ;;  %v3753_v13 = vld [vmem:[#allocation27 + $0x8b0] sm:$0xff]  ;;  %v3754_v14 = vld [vmem:[#allocation27 + $0x8b8] sm:$0xff] }
 0xb4c   :  { %7947 = vmatpush3.bf16.msra.mxu1 %v7944_v49  ;;  %8107 = vmatpush3.bf16.msra.mxu0 %v8104_v24  ;;  %v8136_v49 = vpack.c.bf16 %v4107_v11, %v4106_v19  ;;  %v3661_v24 = vld [vmem:[#allocation27 + $0x840] sm:$0xff]  ;;  %v4200_v19 = vld [vmem:[#allocation27 + $0xab0] sm:$0xff]  ;;  %v4201_v11 = vld [vmem:[#allocation27 + $0xab8] sm:$0xff] }
 0xb4d   :  { %7949 = vmatprep.subr.bf16.mxu1 %v7948_v60  ;;  %8109 = vmatprep.subr.bf16.mxu0 %v8108_v32  ;;  %v7980_v21 = vpack.c.bf16 %v3662_v63, %v3661_v24  ;;  %v3755_v24 = vld [vmem:[#allocation27 + $0x8c0] sm:$0xff]  ;;  %v3756_v63 = vld [vmem:[#allocation27 + $0x8c8] sm:$0xff] }
 0xb50   :  { %7951 = vmatpush3.bf16.msra.mxu1 %v7948_v60  ;;  %8111 = vmatpush3.bf16.msra.mxu0 %v8108_v32  ;;  %v8140_v60 = vpack.c.bf16 %v4109_v3, %v4108_v18  ;;  %v3663_v32 = vld [vmem:[#allocation27 + $0x850] sm:$0xff]  ;;  %v4202_v18 = vld [vmem:[#allocation27 + $0xac0] sm:$0xff]  ;;  %v4203_v3 = vld [vmem:[#allocation27 + $0xac8] sm:$0xff] }
 0xb51   :  { %7953 = vmatprep.subr.bf16.mxu1 %v7952_v37  ;;  %8113 = vmatprep.subr.bf16.mxu0 %v8112_v29  ;;  %v7984_v0 = vpack.c.bf16 %v3664_v27, %v3663_v32  ;;  %v3757_v32 = vld [vmem:[#allocation27 + $0x8d0] sm:$0xff]  ;;  %v3758_v27 = vld [vmem:[#allocation27 + $0x8d8] sm:$0xff] }
 0xb54   :  { %7955 = vmatpush3.bf16.msra.mxu1 %v7952_v37  ;;  %8115 = vmatpush3.bf16.msra.mxu0 %v8112_v29  ;;  %v8144_v37 = vpack.c.bf16 %v4111_v15, %v4110_v7  ;;  %v3665_v29 = vld [vmem:[#allocation27 + $0x860] sm:$0xff]  ;;  %v4204_v7 = vld [vmem:[#allocation27 + $0xad0] sm:$0xff]  ;;  %v4205_v15 = vld [vmem:[#allocation27 + $0xad8] sm:$0xff] }
 0xb55   :  { %7957 = vmatprep.subr.bf16.mxu1 %v7956_v35  ;;  %8117 = vmatprep.subr.bf16.mxu0 %v8116_v51  ;;  %v7988_v22 = vpack.c.bf16 %v3666_v1, %v3665_v29  ;;  %v3759_v29 = vld [vmem:[#allocation27 + $0x8e0] sm:$0xff]  ;;  %v3760_v1 = vld [vmem:[#allocation27 + $0x8e8] sm:$0xff] }
 0xb58   :  { %7959 = vmatpush3.bf16.msra.mxu1 %v7956_v35  ;;  %8119 = vmatpush3.bf16.msra.mxu0 %v8116_v51  ;;  %v8148_v35 = vpack.c.bf16 %v4113_v4, %v4112_v16  ;;  %v3667_v51 = vld [vmem:[#allocation27 + $0x870] sm:$0xff]  ;;  %v4206_v16 = vld [vmem:[#allocation27 + $0xae0] sm:$0xff]  ;;  %v4207_v4 = vld [vmem:[#allocation27 + $0xae8] sm:$0xff] }
 0xb59   :  { %7961 = vmatprep.subr.bf16.mxu1 %v7960_v44  ;;  %8121 = vmatprep.subr.bf16.mxu0 %v8120_v9  ;;  %v7992_v43 = vpack.c.bf16 %v3668_v38, %v3667_v51  ;;  %v3761_v51 = vld [vmem:[#allocation27 + $0x8f0] sm:$0xff]  ;;  %v3762_v38 = vld [vmem:[#allocation27 + $0x8f8] sm:$0xff] }
 0xb5c   :  { %7963 = vmatpush3.bf16.msra.mxu1 %v7960_v44  ;;  %8123 = vmatpush3.bf16.msra.mxu0 %v8120_v9  ;;  %v8152_v44 = vpack.c.bf16 %v4115_v8, %v4114_v40  ;;  %v3747_v9 = vld [vmem:[#allocation27 + $0x880] sm:$0xff]  ;;  %v4208_v40 = vld [vmem:[#allocation27 + $0xaf0] sm:$0xff]  ;;  %v4209_v8 = vld [vmem:[#allocation27 + $0xaf8] sm:$0xff] }
 0xb5d   :  { %7965 = vmatprep.subr.bf16.mxu1 %v7964_v28  ;;  %8125 = vmatprep.subr.bf16.mxu0 %v8124_v6  ;;  %v7996_v2 = vpack.c.bf16 %v3748_v17, %v3747_v9  ;;  %v3452_v9 = vld [vmem:[#allocation27 + $0x680] sm:$0xff]  ;;  %v3453_v17 = vld [vmem:[#allocation27 + $0x688] sm:$0xff] }
 0xb5f   :  { %6687 = vmatmul.mubr.f32.vlgmr.msra.gmra.mrb[36].mxu1 %v9687_v23  ;;  %6862 = vmatmul.mubr.f32.vlgmr.msra.gmra.mrb[14].mxu0 %v9687_v23 }
 0xb60   :  { %7967 = vmatpush3.bf16.msra.mxu1 %v7964_v28  ;;  %8127 = vmatpush3.bf16.msra.mxu0 %v8124_v6  ;;  %v8156_v28 = vpack.c.bf16 %v4195_v62, %v4194_v10  ;;  %v3749_v6 = vld [vmem:[#allocation27 + $0x890] sm:$0xff]  ;;  %v4309_v10 = vld [vmem:[#allocation27 + $0xb80] sm:$0xff]  ;;  %v4310_v62 = vld [vmem:[#allocation27 + $0xb88] sm:$0xff] }
 0xb61   :  { %7969 = vmatprep.subr.bf16.mxu1 %v7968_v31  ;;  %8129 = vmatprep.subr.bf16.mxu0 %v8128_v52 }
 0xb62   :  { %6721 = vmatprep.mubr.msk.f32.mxu1 %vm1300_vm8, %v9721_v54  ;;  %6896 = vmatprep.mubr.msk.f32.mxu0 %vm1300_vm8, %v9721_v54 }
 0xb64   :  { %7971 = vmatpush3.bf16.msra.mxu1 %v7968_v31  ;;  %8131 = vmatpush3.bf16.msra.mxu0 %v8128_v52  ;;  %v8000_v31 = vpack.c.bf16 %v3750_v56, %v3749_v6  ;;  %v8160_v52 = vpack.c.bf16 %v4197_v25, %v4196_v47  ;;  %v3454_v6 = vld [vmem:[#allocation27 + $0x690] sm:$0xff]  ;;  %v3455_v56 = vld [vmem:[#allocation27 + $0x698] sm:$0xff] }
 0xb65   :  { %7973 = vmatprep.subr.bf16.mxu1 %v7972_v59  ;;  %8133 = vmatprep.subr.bf16.mxu0 %v8132_v53  ;;  %v4311_v47 = vld [vmem:[#allocation27 + $0xb90] sm:$0xff]  ;;  %v4312_v25 = vld [vmem:[#allocation27 + $0xb98] sm:$0xff] }
 0xb68   :  { %7975 = vmatpush3.bf16.msra.mxu1 %v7972_v59  ;;  %8135 = vmatpush3.bf16.msra.mxu0 %v8132_v53  ;;  %v8004_v59 = vpack.c.bf16 %v3752_v48, %v3751_v26  ;;  %v8164_v53 = vpack.c.bf16 %v4199_v55, %v4198_v36  ;;  %v3456_v26 = vld [vmem:[#allocation27 + $0x6a0] sm:$0xff]  ;;  %v3457_v48 = vld [vmem:[#allocation27 + $0x6a8] sm:$0xff] }
 0xb69   :  { %7977 = vmatprep.subr.bf16.mxu1 %v7976_v57  ;;  %8137 = vmatprep.subr.bf16.mxu0 %v8136_v49  ;;  %v4313_v36 = vld [vmem:[#allocation27 + $0xba0] sm:$0xff]  ;;  %v4314_v55 = vld [vmem:[#allocation27 + $0xba8] sm:$0xff] }
 0xb6c   :  { %7979 = vmatpush3.bf16.msra.mxu1 %v7976_v57  ;;  %8139 = vmatpush3.bf16.msra.mxu0 %v8136_v49  ;;  %v8008_v57 = vpack.c.bf16 %v3754_v14, %v3753_v13  ;;  %v8168_v49 = vpack.c.bf16 %v4201_v11, %v4200_v19  ;;  %v3458_v13 = vld [vmem:[#allocation27 + $0x6b0] sm:$0xff]  ;;  %v3459_v14 = vld [vmem:[#allocation27 + $0x6b8] sm:$0xff] }
 0xb6d   :  { %7981 = vmatprep.subr.bf16.mxu1 %v7980_v21  ;;  %8141 = vmatprep.subr.bf16.mxu0 %v8140_v60  ;;  %v4315_v19 = vld [vmem:[#allocation27 + $0xbb0] sm:$0xff]  ;;  %v4316_v11 = vld [vmem:[#allocation27 + $0xbb8] sm:$0xff] }
 0xb70   :  { %7983 = vmatpush3.bf16.msra.mxu1 %v7980_v21  ;;  %8143 = vmatpush3.bf16.msra.mxu0 %v8140_v60  ;;  %v8012_v21 = vpack.c.bf16 %v3756_v63, %v3755_v24  ;;  %v8172_v60 = vpack.c.bf16 %v4203_v3, %v4202_v18  ;;  %v3460_v24 = vld [vmem:[#allocation27 + $0x6c0] sm:$0xff]  ;;  %v3461_v63 = vld [vmem:[#allocation27 + $0x6c8] sm:$0xff] }
 0xb71   :  { %7985 = vmatprep.subr.bf16.mxu1 %v7984_v0  ;;  %8145 = vmatprep.subr.bf16.mxu0 %v8144_v37  ;;  %v4317_v18 = vld [vmem:[#allocation27 + $0xbc0] sm:$0xff]  ;;  %v4318_v3 = vld [vmem:[#allocation27 + $0xbc8] sm:$0xff] }
 0xb74   :  { %7987 = vmatpush3.bf16.msra.mxu1 %v7984_v0  ;;  %8147 = vmatpush3.bf16.msra.mxu0 %v8144_v37  ;;  %v8016_v0 = vpack.c.bf16 %v3758_v27, %v3757_v32  ;;  %v8176_v37 = vpack.c.bf16 %v4205_v15, %v4204_v7  ;;  %v3463_v32 = vld [vmem:[#allocation27 + $0x6d8] sm:$0xff]  ;;  %v4319_v27 = vld [vmem:[#allocation27 + $0xbd0] sm:$0xff] }
 0xb75   :  { %7989 = vmatprep.subr.bf16.mxu1 %v7988_v22  ;;  %8149 = vmatprep.subr.bf16.mxu0 %v8148_v35 }
 0xb78   :  { %7991 = vmatpush3.bf16.msra.mxu1 %v7988_v22  ;;  %8151 = vmatpush3.bf16.msra.mxu0 %v8148_v35  ;;  %v8020_v22 = vpack.c.bf16 %v3760_v1, %v3759_v29  ;;  %v8180_v35 = vpack.c.bf16 %v4207_v4, %v4206_v16  ;;  %v4321_v29 = vld [vmem:[#allocation27 + $0xbe0] sm:$0xff]  ;;  %v4322_v1 = vld [vmem:[#allocation27 + $0xbe8] sm:$0xff] }
 0xb79   :  { %7993 = vmatprep.subr.bf16.mxu1 %v7992_v43  ;;  %8153 = vmatprep.subr.bf16.mxu0 %v8152_v44  ;;  %v8212_v4 = vpack.c.bf16 %v4322_v1, %v4321_v29  ;;  %v4491_v29 = vld [vmem:[#allocation27 + $0xc78] sm:$0xff] }
 0xb7c   :  { %7995 = vmatpush3.bf16.msra.mxu1 %v7992_v43  ;;  %8155 = vmatpush3.bf16.msra.mxu0 %v8152_v44  ;;  %v8024_v43 = vpack.c.bf16 %v3762_v38, %v3761_v51  ;;  %v8184_v44 = vpack.c.bf16 %v4209_v8, %v4208_v40  ;;  %v4323_v51 = vld [vmem:[#allocation27 + $0xbf0] sm:$0xff]  ;;  %v4324_v38 = vld [vmem:[#allocation27 + $0xbf8] sm:$0xff] }
 0xb7d   :  { %7997 = vmatprep.subr.bf16.mxu1 %v7996_v2  ;;  %8157 = vmatprep.subr.bf16.mxu0 %v8156_v28  ;;  %v8216_v8 = vpack.c.bf16 %v4324_v38, %v4323_v51  ;;  %v4573_v51 = vld [vmem:[#allocation27 + $0xc98] sm:$0xff] }
 0xb7f   :  { %6722 = vmatmul.mubr.msk.f32.vlgmr.msra.gmra.mrb[36].mxu1 %vm1301_vm9, %v9730_v50  ;;  %6897 = vmatmul.mubr.msk.f32.vlgmr.msra.gmra.mrb[14].mxu0 %vm1301_vm9, %v9730_v50 }
 0xb80   :  { %7999 = vmatpush3.bf16.msra.mxu1 %v7996_v2  ;;  %8159 = vmatpush3.bf16.msra.mxu0 %v8156_v28  ;;  %v8028_v2 = vpack.c.bf16 %v3453_v17, %v3452_v9  ;;  %v8188_v28 = vpack.c.bf16 %v4310_v62, %v4309_v10  ;;  %v4294_v17 = vld [vmem:[#allocation27 + $0xb10] sm:$0xff]  ;;  %v4295_v10 = vld [vmem:[#allocation27 + $0xb18] sm:$0xff] }
 0xb81   :  { %8001 = vmatprep.subr.bf16.mxu1 %v8000_v31  ;;  %8161 = vmatprep.subr.bf16.mxu0 %v8160_v52  ;;  %v8224_v62 = vpack.c.bf16 %v4295_v10, %v4294_v17  ;;  %v4578_v10 = vld [vmem:[#allocation27 + $0xcc0] sm:$0xff] }
 0xb82   :  { %6931 = vmatprep.mubr.f32.mxu0 %v9700_v46  ;;  %6756 = vmatprep.mubr.f32.mxu1 %v9700_v46 }
 0xb84   :  { %8003 = vmatpush3.bf16.msra.mxu1 %v8000_v31  ;;  %8163 = vmatpush3.bf16.msra.mxu0 %v8160_v52  ;;  %v8032_v31 = vpack.c.bf16 %v3455_v56, %v3454_v6  ;;  %v8192_v52 = vpack.c.bf16 %v4312_v25, %v4311_v47  ;;  %v4298_v56 = vld [vmem:[#allocation27 + $0xb30] sm:$0xff]  ;;  %v4299_v47 = vld [vmem:[#allocation27 + $0xb38] sm:$0xff] }
 0xb85   :  { %8005 = vmatprep.subr.bf16.mxu1 %v8004_v59  ;;  %8165 = vmatprep.subr.bf16.mxu0 %v8164_v53  ;;  %v8232_v25 = vpack.c.bf16 %v4299_v47, %v4298_v56  ;;  %v4583_v56 = vld [vmem:[#allocation27 + $0xce8] sm:$0xff]  ;;  %v4584_v47 = vld [vmem:[#allocation27 + $0xcf0] sm:$0xff] }
 0xb88   :  { %8007 = vmatpush3.bf16.msra.mxu1 %v8004_v59  ;;  %8167 = vmatpush3.bf16.msra.mxu0 %v8164_v53  ;;  %v8036_v59 = vpack.c.bf16 %v3457_v48, %v3456_v26  ;;  %v8196_v53 = vpack.c.bf16 %v4314_v55, %v4313_v36  ;;  %v4302_v26 = vld [vmem:[#allocation27 + $0xb50] sm:$0xff]  ;;  %v4303_v48 = vld [vmem:[#allocation27 + $0xb58] sm:$0xff]  ;;  %v4304_v36 = vld [vmem:[#allocation27 + $0xb60] sm:$0xff] }
 0xb89   :  { %8009 = vmatprep.subr.bf16.mxu1 %v8008_v57  ;;  %8169 = vmatprep.subr.bf16.mxu0 %v8168_v49  ;;  %v4305_v55 = vld [vmem:[#allocation27 + $0xb68] sm:$0xff] }
 0xb8c   :  { %8011 = vmatpush3.bf16.msra.mxu1 %v8008_v57  ;;  %8171 = vmatpush3.bf16.msra.mxu0 %v8168_v49  ;;  %v8040_v57 = vpack.c.bf16 %v3459_v14, %v3458_v13  ;;  %v8200_v49 = vpack.c.bf16 %v4316_v11, %v4315_v19  ;;  %v4476_v14 = vld [vmem:[#allocation27 + $0xc00] sm:$0xff]  ;;  %v4477_v19 = vld [vmem:[#allocation27 + $0xc08] sm:$0xff] }
 0xb8d   :  { %8013 = vmatprep.subr.bf16.mxu1 %v8012_v21  ;;  %8173 = vmatprep.subr.bf16.mxu0 %v8172_v60  ;;  %v8252_v11 = vpack.c.bf16 %v4477_v19, %v4476_v14  ;;  %v4686_v19 = vld [vmem:[#allocation30 + $0xc0] sm:$0xff] }
 0xb90   :  { %8015 = vmatpush3.bf16.msra.mxu1 %v8012_v21  ;;  %8175 = vmatpush3.bf16.msra.mxu0 %v8172_v60  ;;  %v8204_v21 = vpack.c.bf16 %v4318_v3, %v4317_v18  ;;  %v3462_v60 = vld [vmem:[#allocation27 + $0x6d0] sm:$0xff]  ;;  %v4481_v18 = vld [vmem:[#allocation27 + $0xc28] sm:$0xff] }
 0xb91   :  { %8017 = vmatprep.subr.bf16.mxu1 %v8016_v0  ;;  %8177 = vmatprep.subr.bf16.mxu0 %v8176_v37  ;;  %v8048_v7 = vpack.c.bf16 %v3463_v32, %v3462_v60  ;;  %v4484_v32 = vld [vmem:[#allocation27 + $0xc40] sm:$0xff] }
 0xb94   :  { %8019 = vmatpush3.bf16.msra.mxu1 %v8016_v0  ;;  %8179 = vmatpush3.bf16.msra.mxu0 %v8176_v37  ;;  %v3464_v0 = vld [vmem:[#allocation27 + $0x6e0] sm:$0xff]  ;;  %v3465_v37 = vld [vmem:[#allocation27 + $0x6e8] sm:$0xff] }
 0xb95   :  { %8021 = vmatprep.subr.bf16.mxu1 %v8020_v22  ;;  %8181 = vmatprep.subr.bf16.mxu0 %v8180_v35  ;;  %v8052_v16 = vpack.c.bf16 %v3465_v37, %v3464_v0  ;;  %v4488_v0 = vld [vmem:[#allocation27 + $0xc60] sm:$0xff]  ;;  %v4490_v37 = vld [vmem:[#allocation27 + $0xc70] sm:$0xff] }
 0xb96   :  { %v8280_v1 = vpack.c.bf16 %v4491_v29, %v4490_v37 }
 0xb98   :  { %8023 = vmatpush3.bf16.msra.mxu1 %v8020_v22  ;;  %8183 = vmatpush3.bf16.msra.mxu0 %v8180_v35  ;;  %v3466_v22 = vld [vmem:[#allocation27 + $0x6f0] sm:$0xff]  ;;  %v3467_v35 = vld [vmem:[#allocation27 + $0x6f8] sm:$0xff] }
 0xb99   :  { %8025 = vmatprep.subr.bf16.mxu1 %v8024_v43  ;;  %8185 = vmatprep.subr.bf16.mxu0 %v8184_v44  ;;  %v8056_v40 = vpack.c.bf16 %v3467_v35, %v3466_v22  ;;  %v4572_v35 = vld [vmem:[#allocation27 + $0xc90] sm:$0xff] }
 0xb9a   :  { %v8288_v38 = vpack.c.bf16 %v4573_v51, %v4572_v35 }
 0xb9c   :  { %8027 = vmatpush3.bf16.msra.mxu1 %v8024_v43  ;;  %8187 = vmatpush3.bf16.msra.mxu0 %v8184_v44  ;;  %v4292_v43 = vld [vmem:[#allocation27 + $0xb00] sm:$0xff]  ;;  %v4293_v44 = vld [vmem:[#allocation27 + $0xb08] sm:$0xff] }
 0xb9d   :  { %8029 = vmatprep.subr.bf16.mxu1 %v8028_v2  ;;  %8189 = vmatprep.subr.bf16.mxu0 %v8188_v28  ;;  %v8220_v9 = vpack.c.bf16 %v4293_v44, %v4292_v43  ;;  %v4576_v44 = vld [vmem:[#allocation27 + $0xcb0] sm:$0xff] }
 0xb9f   :  { %6757 = vmatmul.mubr.f32.vlgmr.msra.gmra.mrb[36].mxu1 %v9698_v12  ;;  %6932 = vmatmul.mubr.f32.vlgmr.msra.gmra.mrb[14].mxu0 %v9698_v12 }
 0xba0   :  { %8031 = vmatpush3.bf16.msra.mxu1 %v8028_v2  ;;  %8191 = vmatpush3.bf16.msra.mxu0 %v8188_v28  ;;  %v4296_v2 = vld [vmem:[#allocation27 + $0xb20] sm:$0xff]  ;;  %v4297_v28 = vld [vmem:[#allocation27 + $0xb28] sm:$0xff] }
 0xba1   :  { %8033 = vmatprep.subr.bf16.mxu1 %v8032_v31  ;;  %8193 = vmatprep.subr.bf16.mxu0 %v8192_v52  ;;  %v8228_v6 = vpack.c.bf16 %v4297_v28, %v4296_v2  ;;  %v4580_v28 = vld [vmem:[#allocation27 + $0xcd0] sm:$0xff] }
 0xba2   :  { %6791 = vmatprep.mubr.f32.mxu1 %v9639_v30  ;;  %6966 = vmatprep.mubr.msk.f32.mxu0 %vm1300_vm8, %v9702_v42  ;;  %v8044_v30 = vpack.c.bf16 %v3461_v63, %v3460_v24  ;;  %v4320_v42 = vld [vmem:[#allocation27 + $0xbd8] sm:$0xff]  ;;  %v4480_v63 = vld [vmem:[#allocation27 + $0xc20] sm:$0xff] }
 0xba3   :  { %v8208_v15 = vpack.c.bf16 %v4320_v42, %v4319_v27  ;;  %v8260_v3 = vpack.c.bf16 %v4481_v18, %v4480_v63  ;;  %v4485_v27 = vld [vmem:[#allocation27 + $0xc48] sm:$0xff] }
 0xba4   :  { %8035 = vmatpush3.bf16.msra.mxu1 %v8032_v31  ;;  %8195 = vmatpush3.bf16.msra.mxu0 %v8192_v52  ;;  %v4300_v31 = vld [vmem:[#allocation27 + $0xb40] sm:$0xff]  ;;  %v4301_v52 = vld [vmem:[#allocation27 + $0xb48] sm:$0xff]  ;;  %v8268_v42 = vpack.c.bf16 %v4485_v27, %v4484_v32  ;;  %v4692_v32 = vld [vmem:[#allocation30 + $0xf0] sm:$0xff] }
 0xba5   :  { %8037 = vmatprep.subr.bf16.mxu1 %v8036_v59  ;;  %8197 = vmatprep.subr.bf16.mxu0 %v8196_v53  ;;  %v4690_v18 = vld [vmem:[#allocation30 + $0xe0] sm:$0xff] }
 0xba8   :  { %8039 = vmatpush3.bf16.msra.mxu1 %v8036_v59  ;;  %8199 = vmatpush3.bf16.msra.mxu0 %v8196_v53  ;;  %v4306_v59 = vld [vmem:[#allocation27 + $0xb70] sm:$0xff]  ;;  %v4307_v53 = vld [vmem:[#allocation27 + $0xb78] sm:$0xff] }
 0xba9   :  { %8041 = vmatprep.subr.bf16.mxu1 %v8040_v57  ;;  %8201 = vmatprep.subr.bf16.mxu0 %v8200_v49  ;;  %v8248_v13 = vpack.c.bf16 %v4307_v53, %v4306_v59  ;;  %v4684_v53 = vld [vmem:[#allocation30 + $0xb0] sm:$0xff] }
 0xbac   :  { %8043 = vmatpush3.bf16.msra.mxu1 %v8040_v57  ;;  %8203 = vmatpush3.bf16.msra.mxu0 %v8200_v49  ;;  %v4478_v57 = vld [vmem:[#allocation27 + $0xc10] sm:$0xff]  ;;  %v4479_v49 = vld [vmem:[#allocation27 + $0xc18] sm:$0xff] }
 0xbad   :  { %8045 = vmatprep.subr.bf16.mxu1 %v8044_v30  ;;  %8205 = vmatprep.subr.bf16.mxu0 %v8204_v21  ;;  %v8256_v24 = vpack.c.bf16 %v4479_v49, %v4478_v57  ;;  %v4688_v49 = vld [vmem:[#allocation30 + $0xd0] sm:$0xff] }
 0xbb0   :  { %8047 = vmatpush3.bf16.msra.mxu1 %v8044_v30  ;;  %8207 = vmatpush3.bf16.msra.mxu0 %v8204_v21  ;;  %v4482_v30 = vld [vmem:[#allocation27 + $0xc30] sm:$0xff]  ;;  %v4483_v21 = vld [vmem:[#allocation27 + $0xc38] sm:$0xff] }
 0xbb1   :  { %8049 = vmatprep.subr.bf16.mxu1 %v8048_v7  ;;  %8209 = vmatprep.subr.bf16.mxu0 %v8208_v15  ;;  %v8264_v60 = vpack.c.bf16 %v4483_v21, %v4482_v30 }
 0xbb4   :  { %8051 = vmatpush3.bf16.msra.mxu1 %v8048_v7  ;;  %8211 = vmatpush3.bf16.msra.mxu0 %v8208_v15  ;;  %v4486_v7 = vld [vmem:[#allocation27 + $0xc50] sm:$0xff]  ;;  %v4487_v15 = vld [vmem:[#allocation27 + $0xc58] sm:$0xff] }
 0xbb5   :  { %8053 = vmatprep.subr.bf16.mxu1 %v8052_v16  ;;  %8213 = vmatprep.subr.bf16.mxu0 %v8212_v4 }
 0xbb8   :  { %8055 = vmatpush3.bf16.msra.mxu1 %v8052_v16  ;;  %8215 = vmatpush3.bf16.msra.mxu0 %v8212_v4  ;;  %v4570_v16 = vld [vmem:[#allocation27 + $0xc80] sm:$0xff]  ;;  %v4571_v4 = vld [vmem:[#allocation27 + $0xc88] sm:$0xff] }
 0xbb9   :  { %8057 = vmatprep.subr.bf16.mxu1 %v8056_v40  ;;  %8217 = vmatprep.subr.bf16.mxu0 %v8216_v8  ;;  %v8284_v22 = vpack.c.bf16 %v4571_v4, %v4570_v16  ;;  %v4968_v4 = vld [vmem:[#allocation28 + $0x1] ss:$0 sm:$0xff] }
 0xbbc   :  { %8059 = vmatpush3.bf16.msra.mxu1 %v8056_v40  ;;  %8219 = vmatpush3.bf16.msra.mxu0 %v8216_v8  ;;  %v4574_v40 = vld [vmem:[#allocation27 + $0xca0] sm:$0xff]  ;;  %v4575_v8 = vld [vmem:[#allocation27 + $0xca8] sm:$0xff] }
 0xbbd   :  { %8221 = vmatprep.subr.bf16.mxu0 %v8220_v9  ;;  %v8292_v43 = vpack.c.bf16 %v4575_v8, %v4574_v40 }
 0xbbf   :  { %6792 = vmatmul.mubr.f32.vlgmr.msra.gmra.mrb[36].mxu1 %v9641_v58  ;;  %6967 = vmatmul.mubr.msk.f32.vlgmr.msra.gmra.mrb[16].mxu0 %vm1301_vm9, %v9710_v45  ;;  %v8236_v58 = vpack.c.bf16 %v4301_v52, %v4300_v31  ;;  %v8240_v45 = vpack.c.bf16 %v4303_v48, %v4302_v26  ;;  %v4678_v31 = vld [vmem:[#allocation30 + $0x80] sm:$0xff]  ;;  %v4679_v52 = vld [vmem:[#allocation30 + $0x88] sm:$0xff]  ;;  %v4681_v48 = vld [vmem:[#allocation30 + $0x98] sm:$0xff] }
 0xbc0   :  { %8223 = vmatpush3.bf16.msra.mxu0 %v8220_v9  ;;  %7001 = vmatprep.mubr.f32.mxu0 %v9690_v61  ;;  %v8244_v61 = vpack.c.bf16 %v4305_v55, %v4304_v36  ;;  %v4577_v9 = vld [vmem:[#allocation27 + $0xcb8] sm:$0xff]  ;;  %v8316_v26 = vpack.c.bf16 %v4679_v52, %v4678_v31  ;;  %v4682_v55 = vld [vmem:[#allocation30 + $0xa0] sm:$0xff] }
 0xbc1   :  { %8225 = vmatprep.subr.bf16.mxu0 %v8224_v62  ;;  %v8296_v17 = vpack.c.bf16 %v4577_v9, %v4576_v44 }
 0xbc2   :  { %8317 = vmatprep.subr.bf16.mxu1 %v8316_v26 }
 0xbc3   :  { %8319 = vmatpush3.bf16.msra.mxu1 %v8316_v26 }
 0xbc4   :  { %8227 = vmatpush3.bf16.msra.mxu0 %v8224_v62  ;;  %v4579_v62 = vld [vmem:[#allocation27 + $0xcc8] sm:$0xff] }
 0xbc5   :  { %8229 = vmatprep.subr.bf16.mxu0 %v8228_v6  ;;  %v8300_v2 = vpack.c.bf16 %v4579_v62, %v4578_v10 }
 0xbc8   :  { %8231 = vmatpush3.bf16.msra.mxu0 %v8228_v6  ;;  %v4581_v6 = vld [vmem:[#allocation27 + $0xcd8] sm:$0xff] }
 0xbc9   :  { %8233 = vmatprep.subr.bf16.mxu0 %v8232_v25  ;;  %v8304_v20 = vpack.c.bf16 %v4581_v6, %v4580_v28 }
 0xbcc   :  { %8235 = vmatpush3.bf16.msra.mxu0 %v8232_v25  ;;  %v4585_v25 = vld [vmem:[#allocation27 + $0xcf8] sm:$0xff] }
 0xbcd   :  { %8237 = vmatprep.subr.bf16.mxu0 %v8236_v58 }
 0xbd0   :  { %8239 = vmatpush3.bf16.msra.mxu0 %v8236_v58  ;;  %v4680_v58 = vld [vmem:[#allocation30 + $0x90] sm:$0xff] }
 0xbd1   :  { %8241 = vmatprep.subr.bf16.mxu0 %v8240_v45  ;;  %v8320_v36 = vpack.c.bf16 %v4681_v48, %v4680_v58 }
 0xbd3   :  { %8321 = vmatprep.subr.bf16.mxu1 %v8320_v36 }
 0xbd4   :  { %8243 = vmatpush3.bf16.msra.mxu0 %v8240_v45  ;;  %v8312_v45 = vpack.c.bf16 %v4585_v25, %v4584_v47  ;;  %8323 = vmatpush3.bf16.msra.mxu1 %v8320_v36 }
 0xbd5   :  { %8245 = vmatprep.subr.bf16.mxu0 %v8244_v61 }
 0xbd8   :  { %8247 = vmatpush3.bf16.msra.mxu0 %v8244_v61  ;;  %v4683_v61 = vld [vmem:[#allocation30 + $0xa8] sm:$0xff] }
 0xbd9   :  { %8249 = vmatprep.subr.bf16.mxu0 %v8248_v13  ;;  %v8324_v59 = vpack.c.bf16 %v4683_v61, %v4682_v55 }
 0xbdb   :  { %8325 = vmatprep.subr.bf16.mxu1 %v8324_v59 }
 0xbdc   :  { %8251 = vmatpush3.bf16.msra.mxu0 %v8248_v13  ;;  %v4685_v13 = vld [vmem:[#allocation30 + $0xb8] sm:$0xff]  ;;  %8327 = vmatpush3.bf16.msra.mxu1 %v8324_v59 }
 0xbdd   :  { %8253 = vmatprep.subr.bf16.mxu0 %v8252_v11  ;;  %v8328_v14 = vpack.c.bf16 %v4685_v13, %v4684_v53 }
 0xbdf   :  { %7002 = vmatmul.mubr.f32.vlgmr.msra.gmra.mrb[16].mxu0 %v9687_v23  ;;  %v8272_v23 = vpack.c.bf16 %v4487_v15, %v4486_v7  ;;  %8329 = vmatprep.subr.bf16.mxu1 %v8328_v14 }
 0xbe0   :  { %8255 = vmatpush3.bf16.msra.mxu0 %v8252_v11  ;;  %7036 = vmatprep.mubr.msk.f32.mxu0 %vm1300_vm8, %v9721_v54  ;;  %v8276_v54 = vpack.c.bf16 %v4489_v5, %v4488_v0  ;;  %v4687_v11 = vld [vmem:[#allocation30 + $0xc8] sm:$0xff] }
 0xbe1   :  { %8257 = vmatprep.subr.bf16.mxu0 %v8256_v24  ;;  %v8332_v57 = vpack.c.bf16 %v4687_v11, %v4686_v19  ;;  %8331 = vmatpush3.bf16.msra.mxu1 %v8328_v14 }
 0xbe3   :  { %8333 = vmatprep.subr.bf16.mxu1 %v8332_v57 }
 0xbe4   :  { %8259 = vmatpush3.bf16.msra.mxu0 %v8256_v24  ;;  %v4689_v24 = vld [vmem:[#allocation30 + $0xd8] sm:$0xff] }
 0xbe5   :  { %8261 = vmatprep.subr.bf16.mxu0 %v8260_v3  ;;  %v8336_v63 = vpack.c.bf16 %v4689_v24, %v4688_v49  ;;  %8335 = vmatpush3.bf16.msra.mxu1 %v8332_v57 }
 0xbe7   :  { %8337 = vmatprep.subr.bf16.mxu1 %v8336_v63 }
 0xbe8   :  { %8263 = vmatpush3.bf16.msra.mxu0 %v8260_v3  ;;  %v4691_v3 = vld [vmem:[#allocation30 + $0xe8] sm:$0xff] }
 0xbe9   :  { %8265 = vmatprep.subr.bf16.mxu0 %v8264_v60  ;;  %8339 = vmatpush3.bf16.msra.mxu1 %v8336_v63  ;;  %v8340_v30 = vpack.c.bf16 %v4691_v3, %v4690_v18 }
 0xbeb   :  { %8341 = vmatprep.subr.bf16.mxu1 %v8340_v30 }
 0xbec   :  { %8267 = vmatpush3.bf16.msra.mxu0 %v8264_v60 }
 0xbed   :  { %8269 = vmatprep.subr.bf16.mxu0 %v8268_v42  ;;  %8343 = vmatpush3.bf16.msra.mxu1 %v8340_v30 }
 0xbf0   :  { %8271 = vmatpush3.bf16.msra.mxu0 %v8268_v42 }
 0xbf1   :  { %8273 = vmatprep.subr.bf16.mxu0 %v8272_v23 }
 0xbf4   :  { %8275 = vmatpush3.bf16.msra.mxu0 %v8272_v23 }
 0xbf5   :  { %8277 = vmatprep.subr.bf16.mxu0 %v8276_v54 }
 0xbf8   :  { %8279 = vmatpush3.bf16.msra.mxu0 %v8276_v54 }
 0xbf9   :  { %8281 = vmatprep.subr.bf16.mxu0 %v8280_v1 }
 0xbfc   :  { %8283 = vmatpush3.bf16.msra.mxu0 %v8280_v1 }
 0xbfd   :  { %8285 = vmatprep.subr.bf16.mxu0 %v8284_v22 }
 0xbff   :  { %7037 = vmatmul.mubr.msk.f32.vlgmr.msra.gmra.mrb[16].mxu0 %vm1301_vm9, %v9730_v50  ;;  %v4582_v50 = vld [vmem:[#allocation27 + $0xce0] sm:$0xff] }
 0xc00   :  { %8287 = vmatpush3.bf16.msra.mxu0 %v8284_v22  ;;  %7071 = vmatprep.mubr.f32.mxu0 %v9700_v46  ;;  %v8308_v46 = vpack.c.bf16 %v4583_v56, %v4582_v50 }
 0xc01   :  { %8289 = vmatprep.subr.bf16.mxu0 %v8288_v38 }
 0xc04   :  { %8291 = vmatpush3.bf16.msra.mxu0 %v8288_v38  ;;  %v4969_v38 = vld [vmem:[#allocation31 + $0x1] ss:$0 sm:$0xff] }
 0xc05   :  { %8293 = vmatprep.subr.bf16.mxu0 %v8292_v43 }
 0xc08   :  { %8295 = vmatpush3.bf16.msra.mxu0 %v8292_v43 }
 0xc09   :  { %8297 = vmatprep.subr.bf16.mxu0 %v8296_v17 }
 0xc0c   :  { %8299 = vmatpush3.bf16.msra.mxu0 %v8296_v17 }
 0xc0d   :  { %8301 = vmatprep.subr.bf16.mxu0 %v8300_v2 }
 0xc10   :  { %8303 = vmatpush3.bf16.msra.mxu0 %v8300_v2 }
 0xc11   :  { %8305 = vmatprep.subr.bf16.mxu0 %v8304_v20 }
 0xc14   :  { %8307 = vmatpush3.bf16.msra.mxu0 %v8304_v20 }
 0xc15   :  { %8309 = vmatprep.subr.bf16.mxu0 %v8308_v46 }
 0xc18   :  { %8311 = vmatpush3.bf16.msra.mxu0 %v8308_v46 }
 0xc19   :  { %8313 = vmatprep.subr.bf16.mxu0 %v8312_v45 }
 0xc1c   :  { %8315 = vmatpush3.bf16.msra.mxu0 %v8312_v45 }
 0xc1f   :  { %7072 = vmatmul.mubr.f32.vlgmr.msra.gmra.mrb[16].mxu0 %v9698_v12  ;;  %v4693_v12 = vld [vmem:[#allocation30 + $0xf8] sm:$0xff] }
 0xc20   :  { %v8344_v27 = vpack.c.bf16 %v4693_v12, %v4692_v32 }
 0xc22   :  { %8345 = vmatprep.subr.bf16.mxu1 %v8344_v27 }
 0xc23   :  { %8347 = vmatpush3.bf16.msra.mxu1 %v8344_v27 }
 0xc72   :  { %v6933_v21 = vpop.f32.mrb[14].mxu0 }
 0xc73   :  { %v4276_v60 = vpop.f32.mrb[15].mxu0  ;;  %v4288_v42 = vmul.f32 %v6933_v21, %v9625_v34  ;;  %v8938_v34 = vmov 0.0|0.0  }
 0xc74   :  { %v4287_v7 = vmul.f32 %v4276_v60, %v9623_v33  ;;  %8348 = vmatprep.subr.bf16.mxu1 %v8938_v34  ;;  %v8940_v33 = vmov 0.0  }
 0xc92   :  { %v6793_v15 = vpop.f32.mrb[36].mxu1 }
 0xc93   :  { %v4290_v23 = vadd.f32 %v6793_v15, %v4288_v42  ;;  %v3906_v0 = vpop.f32.mrb[37].mxu1 }
 0xc94   :  { %v4289_v5 = vadd.f32 %v4287_v7, %v3906_v0 }
 0xcf2   :  { %v7073_v54 = vpop.f32.mrb[16].mxu0 }
 0xcf3   :  { %v4664_v37 = vmul.f32 %v7073_v54, %v9629_v39  ;;  %v4652_v29 = vpop.f32.mrb[17].mxu0 }
 0xcf4   :  { %v4663_v1 = vmul.f32 %v4652_v29, %v9631_v41  ;;  %v4781_v41 = vld [vmem:[#allocation13] sm:$0x1] }
 0xcf5   :  { %v4666_v16 = vadd.f32 %v4664_v37, %v4290_v23  ;;  %v4782_v10 = vunpack.c.l.bf16 %v4781_v41 }
 0xcf6   :  { %v4665_v22 = vadd.f32 %v4663_v1, %v4289_v5 }
 0xcf7   :  { %v4676_v51 = vadd.f32 %v4968_v4, %v4666_v16 }
 0xcf8   :  { %v4675_v35 = vadd.f32 %v4968_v4, %v4665_v22 }
 0xcfa   :  { %7106 = vmatprep.mubr.f32.mxu1 %v4675_v35 }
 0xcfb   :  { %7107 = vmatmul.mubr.f32.vlgmr.msra.gmra.mrb[38].mxu1 %v4676_v51 }
 0xcfc   :  { %7113 = vmatprep.mubr.msk.f32.mxu1 %vm8939_vm14, %v8940_v33 }
 0xdce   :  { %v7108_v40 = vpop.f32.mrb[38].mxu1 }
 0xdcf   :  { %v4774_v8 = vadd.f32 %v7108_v40, %v4969_v38  ;;  %v4768_v43 = vpop.f32.mrb[39].mxu1 }
 0xdd0   :  { %v4769_v39 = vadd.f32 %v4969_v38, %v4768_v43 }
 0xdd1   :  { %v4778_v44 = vmax.f32 %v4774_v8, 0.0 }
 0xdd2   :  { %v4777_v9 = vmax.f32 %v4769_v39, 0.0 }
 0xdd3   :  { %4780 = vst [vmem:[#allocation33 + $0x8] sm:$0xff] %v4778_v44 }
 0xdd4   :  { %v8349_v17 = vpack.c.bf16 %v4778_v44, %v4777_v9  ;;  %4779 = vst [vmem:[#allocation33] sm:$0xff] %v4777_v9 }
 0xdd6   :  { %8350 = vmatpush3.bf16.msra.mxu1 %v8349_v17 }
 0xdd9   :  { %7114 = vmatmul.mubr.msk.f32.vlgmr.msra.gmra.mrb[40].mxu1 %vm733_vm2, %v4782_v10 }
 0xdda   :  { %8839 = shalt.err (!%p8836_p11)
}
 0xddb   :  { %s8840_s30 = scalar_lea.hbm %s9816_s24, 256 }
 0xddc   :  { %p8841_p12 = scmp.ne.s32.totalorder %s9816_s24, %s8840_s30  ;;  %p8844_p13 = scmp.lt.u32.totalorder %s8840_s30, %s9816_s24 }
 0xdde   :  { %p8846_p0 = pnand %p8844_p13, %p8841_p12 }
 0xde0   :  { %8849 = shalt.err (!%p8846_p0)
}
 0xde1   :  { %s9856_s2 = smov 8   ;;  %s9857_s23 = smov 128  }
 0xde2   :  { %4868 = dma.vmem_to_hbm [thread:$0]  %s4863_s14, 256, %s9816_s24, [#allocation7], %s9857_s23, %s9857_s23, %s9856_s2  }
 0xde3   :  { %s8942_s17 = smov [#allocation34]  }
 0xde4   :  { %s4875_s12 = sshll.u32 %s8942_s17, 4  ;;  %s4876_s12 = int_to_ptr.vmem [resolvable:$true] %s4875_s12 }
 0xde5   :  { %s8850_s28 = scalar_lea.vmem %s4876_s12, 32  ;;  %p8855_p2 = scmp.lt.s32.totalorder %s4876_s12, %s4876_s12 }
 0xde6   :  { %p8851_p1 = scmp.ne.s32.totalorder %s4876_s12, %s8850_s28  ;;  %p8856_p3 = scmp.lt.s32.totalorder %s8850_s28, %s8850_s28 }
 0xde8   :  { %p8857_p4 = por %p8856_p3, %p8855_p2 }
 0xdea   :  { %p8858_p5 = pnand %p8857_p4, %p8851_p1 }
 0xeac   :  { %v4852_v62 = vpop.f32.mrb[40].mxu1 }
 0xead   :  { %4856 = vst [vmem:[#allocation34] sm:$0x3] %v4852_v62  ;;  %v7115_v2 = vpop.f32.mrb[41].mxu1 }
 0xeae   :  { %8861 = shalt.err (!%p8858_p5)
}
 0xeaf   :  { %s8862_s9 = scalar_lea.hbm %s9817_s25, 32 }
 0xeb0   :  { %p8863_p6 = scmp.ne.s32.totalorder %s9817_s25, %s8862_s9  ;;  %p8866_p7 = scmp.lt.u32.totalorder %s8862_s9, %s9817_s25 }
 0xeb2   :  { %p8868_p8 = pnand %p8866_p7, %p8863_p6 }
 0xeb4   :  { %8871 = shalt.err (!%p8868_p8)
}
 0xeb5   :  { %4878 = dma.vmem_to_hbm [thread:$0]  %s4876_s12, 32, %s9817_s25, [#allocation35]  }
 0xeb6   :  { %8900 = dma.done.wait [#allocation7], 256  }
 0xeb7   :  { %8901 = vsyncadd [#allocation7], 4294967040 }
 0xeb8   :  { %8902 = dma.done.wait [#allocation35], 32  }
 0xeb9   :  { %8903 = vsyncadd [#allocation35], 4294967264 }
 0xeba   :  { %4885 = vsyncpa [#allocation6], 1 }
 0xebb   :  { %4886 = vsyncpa [#allocation11], 1 }
 0xebc   :  { %4887 = vsyncpa [#allocation14], 1 }
 0xebd   :  { %4888 = vsyncpa [#allocation17], 1 }
 0xebe   :  { %4889 = vsyncpa [#allocation20], 1 }
 0xebf   :  { %4890 = vsyncpa [#allocation23], 1 }
 0xec0   :  { %4891 = vsyncpa [#allocation26], 1 }
 0xec1   :  { %4892 = vsyncpa [#allocation29], 1 }
 0xec2   :  { %4893 = vsyncpa [#allocation32], 1 }
 0xec3   :  { %4894 = vsyncpa [#allocation7], 1 }
 0xec4   :  { %4895 = vsyncpa [#allocation35], 1 }
 0xec5   :  { %4896 = vsyncpa [#allocation8], 1 }

</bundles_post_ra>
